<compile_context>
chip_gen: v6e
topology: v6e:2x2x1
jax: 0.10.0
libtpu: 0.0.40
codegen_flags: <defaults>
</compile_context>

<pallas_src>
import jax
import jax.numpy as jnp
from jax.experimental import pallas as pl
from jax.experimental.pallas import tpu as pltpu

EPS = 1e-5
NF = 32                        # n_filters
C_TOT = NF * (1 + 2 + 4)       # 224 real channels after MultiResBlock
C_PAD = 256                    # channels padded to lane-dense 256
KSIZE = 15
K_PAD = 16                     # 15 conv taps + 1 all-ones bias tap
PAD = KSIZE // 2               # 'same' padding = 7
L = 256                        # sequence length implied by Linear(224*(8+16+32), 128)
POOLS = (8, 16, 32)
N_POOLED = sum(L // p for p in POOLS)   # 32 + 16 + 8 = 56
FEAT = C_TOT * N_POOLED                 # 12544 (torch flatten size)
FEAT_PAD = C_PAD * N_POOLED             # 14336 (kernel feature size, 128-aligned)
HID = 128
NC_PAD = 128                            # classes padded to a lane-dense 128
NEG = -1e30                             # bias for padded class columns


def _round_up(x, m):
    return ((x + m - 1) // m) * m


# ---------------------------------------------------------------------------
# Kernel 1: MultiResBlock (fused im2col-conv + BN + ReLU + shortcut) + SPP
# ---------------------------------------------------------------------------
def _multires_spp_kernel(xcol_ref, w_ref, sbn_ref, tbn_ref, out_ref):
    tb = xcol_ref.shape[0]
    xc = xcol_ref[...].reshape(tb * L, K_PAD)        # (TB*L, 16) im2col rows

    # One MXU matmul -> [branch conv(+BN folded) | shortcut conv(+BN folded)];
    # biases ride in the all-ones 16th tap, so no bias add is needed.
    act = jnp.maximum(
        jnp.dot(xc, w_ref[...], preferred_element_type=jnp.float32), 0.0)
    branch = act[:, :C_PAD]                # cat([conv3x3, conv5x5, conv7x7]) path
    sc = act[:, C_PAD:]                    # shortcut path

    sbn = sbn_ref[...]
    tbn = tbn_ref[...]
    t = branch * sbn + tbn                 # self.bn(x)
    t = jnp.maximum(t + sc, 0.0)           # add shortcut, relu
    t = t * sbn + tbn                      # self.bn(x) again (same params)

    # SPP: hierarchical max pooling along the length (sublane) axis.
    # Batch boundaries are 256-row aligned, so pooling the flat slab is safe.
    p8 = jnp.max(t.reshape(tb * (L // 8), 8, C_PAD), axis=1)     # (TB*32, 256)
    p16 = jnp.max(p8.reshape(tb * (L // 16), 2, C_PAD), axis=1)  # (TB*16, 256)
    p32 = jnp.max(p16.reshape(tb * (L // 32), 2, C_PAD), axis=1) # (TB*8, 256)

    dt = out_ref.dtype
    out_ref[:, 0:32, :] = p8.reshape(tb, L // 8, C_PAD).astype(dt)
    out_ref[:, 32:48, :] = p16.reshape(tb, L // 16, C_PAD).astype(dt)
    out_ref[:, 48:56, :] = p32.reshape(tb, L // 32, C_PAD).astype(dt)


def multires_spp(x, params, tb):
    b_pad = x.shape[0]
    # im2col in the wrapper via static slices (fusable, no gather):
    # xcol[b, i, k] = x[b, 0, i + k - PAD], plus an all-ones bias tap at k=15.
    xpad = jnp.pad(x[:, 0, :], ((0, 0), (PAD, PAD)))             # (B, L+14)
    taps = [xpad[:, k:k + L] for k in range(KSIZE)]
    taps.append(jnp.ones_like(taps[0]))                          # bias tap = 1.0
    xcol = jnp.stack(taps, axis=-1)                              # (B, L, 16)

    in_specs = [
        pl.BlockSpec((tb, L, K_PAD), lambda b: (b, 0, 0)),
        pl.BlockSpec((K_PAD, 2 * C_PAD), lambda b: (0, 0)),
        pl.BlockSpec((1, C_PAD), lambda b: (0, 0)),
        pl.BlockSpec((1, C_PAD), lambda b: (0, 0)),
    ]
    out_spec = pl.BlockSpec((tb, N_POOLED, C_PAD), lambda b: (b, 0, 0))
    return pl.pallas_call(
        _multires_spp_kernel,
        out_shape=jax.ShapeDtypeStruct((b_pad, N_POOLED, C_PAD), jnp.bfloat16),
        grid_spec=pltpu.PrefetchScalarGridSpec(
            num_scalar_prefetch=0, grid=(b_pad // tb,),
            in_specs=in_specs, out_specs=out_spec),
        compiler_params=pltpu.CompilerParams(
            dimension_semantics=("parallel",)),      # batch blocks are independent
    )(xcol, params['wconv'], params['sbn'], params['tbn'])


# ---------------------------------------------------------------------------
# Kernel 2: head — Linear(14336,128) (bf16 wf resident) + BN + ReLU
#           + Linear(128, 128-padded classes) + softmax, batch-tiled
# ---------------------------------------------------------------------------
def _head_kernel(feat_ref, wf_ref, bf_ref, sfb_ref, tfb_ref, wo_ref, bo_ref,
                 out_ref):
    h = jnp.dot(feat_ref[...], wf_ref[...],
                preferred_element_type=jnp.float32) + bf_ref[...]
    h = h * sfb_ref[...] + tfb_ref[...]          # BatchNorm1d(128), eval mode
    h = jnp.maximum(h, 0.0)                      # ReLU
    # TODO(synk): Dropout(0.25) is eval-mode identity (no RNG masking).
    logits = jnp.dot(h, wo_ref[...],
                     preferred_element_type=jnp.float32) + bo_ref[...]
    m = jnp.max(logits, axis=-1, keepdims=True)
    e = jnp.exp(logits - m)                      # padded cols have bias -1e30 -> 0
    out_ref[...] = e * pl.reciprocal(jnp.sum(e, axis=-1, keepdims=True),
                                     approx=True)


def head(feats, params, tbh):
    b_pad = feats.shape[0]
    in_specs = [
        pl.BlockSpec((tbh, FEAT_PAD), lambda i: (i, 0)),
        pl.BlockSpec((FEAT_PAD, HID), lambda i: (0, 0)),   # wf stays resident
        pl.BlockSpec((1, HID), lambda i: (0, 0)),
        pl.BlockSpec((1, HID), lambda i: (0, 0)),
        pl.BlockSpec((1, HID), lambda i: (0, 0)),
        pl.BlockSpec((HID, NC_PAD), lambda i: (0, 0)),
        pl.BlockSpec((1, NC_PAD), lambda i: (0, 0)),
    ]
    out_spec = pl.BlockSpec((tbh, NC_PAD), lambda i: (i, 0))
    return pl.pallas_call(
        _head_kernel,
        out_shape=jax.ShapeDtypeStruct((b_pad, NC_PAD), jnp.float32),
        grid_spec=pltpu.PrefetchScalarGridSpec(
            num_scalar_prefetch=0, grid=(b_pad // tbh,),
            in_specs=in_specs, out_specs=out_spec),
        compiler_params=pltpu.CompilerParams(
            dimension_semantics=("parallel",),
            vmem_limit_bytes=32 * 1024 * 1024),  # safe on v5e/v6e/v7x budgets
    )(feats, params['wf'], params['bf'], params['sfb'], params['tfb'],
      params['wo'], params['bo'])


# ---------------------------------------------------------------------------
# Parameter setup: torch-layout weights, then folded / padded into kernel form
# ---------------------------------------------------------------------------
def init_params(key, n_classes):
    ks = jax.random.split(key, 18)

    def nrm(k, shape, s=0.1):
        return jax.random.normal(k, shape, jnp.float32) * s

    w3, b3 = nrm(ks[0], (NF, 1, KSIZE)), nrm(ks[1], (NF,))
    w5, b5 = nrm(ks[2], (2 * NF, 1, KSIZE)), nrm(ks[3], (2 * NF,))
    w7, b7 = nrm(ks[4], (4 * NF, 1, KSIZE)), nrm(ks[5], (4 * NF,))
    wsc, bsc = nrm(ks[6], (C_TOT, 1, 1)), nrm(ks[7], (C_TOT,))

    def bn(k, n):
        k1, k2, k3, k4 = jax.random.split(k, 4)
        gamma = 1.0 + 0.1 * jax.random.normal(k1, (n,), jnp.float32)
        beta = 0.1 * jax.random.normal(k2, (n,), jnp.float32)
        mean = 0.1 * jax.random.normal(k3, (n,), jnp.float32)
        var = jax.random.uniform(k4, (n,), jnp.float32, 0.5, 1.5)
        return gamma, beta, mean, var

    def fold(gamma, beta, mean, var):
        s = gamma / jnp.sqrt(var + EPS)
        return s, beta - mean * s

    bn3, bn5, bn7 = bn(ks[8], NF), bn(ks[9], 2 * NF), bn(ks[10], 4 * NF)
    bnsc, bnblk = bn(ks[11], C_TOT), bn(ks[12], C_TOT)
    wf_t, bf = nrm(ks[13], (HID, FEAT), 0.02), nrm(ks[14], (HID,))
    bnf = bn(ks[15], HID)
    wo_t, bo = nrm(ks[16], (n_classes, HID)), nrm(ks[17], (n_classes,))

    raw = dict(w3=w3, b3=b3, w5=w5, b5=b5, w7=w7, b7=b7, wsc=wsc, bsc=bsc,
               bn3=bn3, bn5=bn5, bn7=bn7, bnsc=bnsc, bnblk=bnblk,
               wf=wf_t, bf=bf, bnf=bnf, wo=wo_t, bo=bo)

    # --- fold branch convs + their BNs, concat to 224 channels (rows = taps)
    wcat_t = jnp.concatenate([w3, w5, w7], axis=0)[:, 0, :]       # (224, 15)
    bcat_t = jnp.concatenate([b3, b5, b7], axis=0)                # (224,)
    s3, t3 = fold(*bn3); s5, t5 = fold(*bn5); s7, t7 = fold(*bn7)
    scat = jnp.concatenate([s3, s5, s7])
    tcat = jnp.concatenate([t3, t5, t7])
    wbr = (wcat_t * scat[:, None]).T                              # (15, 224)
    bbr = bcat_t * scat + tcat                                    # (224,)

    # --- fold shortcut conv1x1 + BN (only the center tap of the im2col row)
    ssc, tsc = fold(*bnsc)
    wsc_eff = wsc[:, 0, 0] * ssc                                  # (224,)
    bsc_eff = bsc * ssc + tsc                                     # (224,)

    # --- single fused matmul weight, columns [branch(256) | shortcut(256)];
    #     biases ride in tap row 15 (the wrapper's all-ones tap).
    wconv = jnp.zeros((K_PAD, 2 * C_PAD), jnp.float32)
    wconv = wconv.at[:KSIZE, :C_TOT].set(wbr)
    wconv = wconv.at[PAD, C_PAD:C_PAD + C_TOT].set(wsc_eff)
    wconv = wconv.at[KSIZE, :C_TOT].set(bbr)
    wconv = wconv.at[KSIZE, C_PAD:C_PAD + C_TOT].set(bsc_eff)

    # --- block-level BN (applied twice in forward), channel-padded
    sb, tb = fold(*bnblk)
    sbn = jnp.zeros((1, C_PAD), jnp.float32).at[0, :C_TOT].set(sb)
    tbn = jnp.zeros((1, C_PAD), jnp.float32).at[0, :C_TOT].set(tb)

    # --- Linear f: permute rows of W.T so torch Flatten ordering
    #     (off_p + c*(L//p) + j) matches the kernel's row-major (56, 256)
    #     features; padded channels get zero rows; stored bf16 (HBM-bound).
    parts = []
    off = 0
    c = jnp.arange(C_TOT)
    for p in POOLS:
        lp = L // p
        j = jnp.arange(lp)
        parts.append(off + c[None, :] * lp + j[:, None])          # (lp, 224)
        off += C_TOT * lp
    src = jnp.concatenate(parts, axis=0)                          # (56, 224)
    wf_g = wf_t.T[src]                                            # (56, 224, 128)
    wf_g = jnp.pad(wf_g, ((0, 0), (0, C_PAD - C_TOT), (0, 0)))    # (56, 256, 128)
    wf = wf_g.reshape(FEAT_PAD, HID).astype(jnp.bfloat16)

    sfb, tfb = fold(*bnf)

    # --- output Linear padded to 128 lane-dense classes; pad bias = -1e30 so
    #     the in-kernel softmax gives them exactly zero probability.
    wo_pad = jnp.zeros((HID, NC_PAD), jnp.float32).at[:, :n_classes].set(wo_t.T)
    bo_pad = jnp.full((1, NC_PAD), NEG, jnp.float32).at[0, :n_classes].set(bo)

    params = dict(
        wconv=wconv, sbn=sbn, tbn=tbn,
        wf=wf, bf=bf.reshape(1, HID),
        sfb=sfb.reshape(1, HID), tfb=tfb.reshape(1, HID),
        wo=wo_pad, bo=bo_pad,
    )
    return params, raw


def base_model_forward(x, params, n_classes):
    B = x.shape[0]
    tb1 = min(8, B)                                  # kernel-1 batch block
    tbh = min(128, _round_up(B, tb1))                # head batch tile (mult of tb1)
    b_pad = _round_up(B, tbh)                        # single pad, fits both grids
    if b_pad != B:
        x = jnp.pad(x, ((0, b_pad - B), (0, 0), (0, 0)))
    pooled = multires_spp(x, params, tb1)            # (B_pad, 56, 256) bf16
    feats = pooled.reshape(b_pad, FEAT_PAD)          # free flatten (lane-dense)
    probs = head(feats, params, tbh)                 # (B_pad, 128), softmaxed
    return probs[:B, :n_classes]


# ---------------------------------------------------------------------------
# Pure-JAX reference in torch layout (validates folding, permutation, kernels)
# ---------------------------------------------------------------------------
def reference_forward(x, raw, n_classes):
    xp = jnp.pad(x[:, 0, :], ((0, 0), (PAD, PAD)))                    # (B, L+14)
    idx = jnp.arange(L)[:, None] + jnp.arange(KSIZE)[None, :]
    cols = xp[:, idx]                                                 # (B, L, 15)

    def bn_c(h, p):                                                   # h: (B, C, L)
        g, be, m, v = p
        return ((h - m[None, :, None]) / jnp.sqrt(v[None, :, None] + EPS)
                * g[None, :, None] + be[None, :, None])

    def conv_bn_relu(w, b, p):
        y = jnp.einsum('blk,ck->bcl', cols, w[:, 0, :]) + b[None, :, None]
        return jnp.maximum(bn_c(y, p), 0.0)

    x3 = conv_bn_relu(raw['w3'], raw['b3'], raw['bn3'])
    x5 = conv_bn_relu(raw['w5'], raw['b5'], raw['bn5'])
    x7 = conv_bn_relu(raw['w7'], raw['b7'], raw['bn7'])

    sc = x[:, 0, :][:, None, :] * raw['wsc'][None, :, 0, :] + raw['bsc'][None, :, None]
    sc = jnp.maximum(bn_c(sc, raw['bnsc']), 0.0)

    t = jnp.concatenate([x3, x5, x7], axis=1)                         # (B, 224, L)
    t = bn_c(t, raw['bnblk'])
    t = jnp.maximum(t + sc, 0.0)
    t = bn_c(t, raw['bnblk'])

    B = x.shape[0]
    feats = []
    for p in POOLS:
        pooled = t.reshape(B, C_TOT, L // p, p).max(axis=-1)          # (B, 224, L//p)
        feats.append(pooled.reshape(B, -1))
    feats = jnp.concatenate(feats, axis=1)                            # (B, 12544)

    g, be, m, v = raw['bnf']
    h = feats @ raw['wf'].T + raw['bf']
    h = (h - m) / jnp.sqrt(v + EPS) * g + be
    h = jnp.maximum(h, 0.0)
    logits = h @ raw['wo'].T + raw['bo']
    z = logits - logits.max(axis=1, keepdims=True)
    e = jnp.exp(z)
    return e / e.sum(axis=1, keepdims=True)


if __name__ == "__main__":
    key = jax.random.PRNGKey(0)
    kx, kp = jax.random.split(key)
    B, n_classes = 2, 5
    x = jax.random.normal(kx, (B, 1, L), jnp.float32)   # NCW, like torch Conv1d
    params, raw = init_params(kp, n_classes)

    out = jax.block_until_ready(base_model_forward(x, params, n_classes))
    assert out.shape == (B, n_classes)
    assert bool(jnp.all(jnp.isfinite(out)))

    ref = reference_forward(x, raw, n_classes)
    err = float(jnp.max(jnp.abs(out - ref)))
    assert err < 2e-2, f"mismatch vs pure-JAX reference: {err}"
    print("KERNEL_OK")
</pallas_src>

<mosaic_0001>
module attributes {stable_mosaic.version = 11 : i64} {
  func.func @_multires_spp_kernel(%arg0: i32, %arg1: memref<2x256x16xf32, #tpu.memory_space<vmem>>, %arg2: memref<16x512xf32, #tpu.memory_space<vmem>>, %arg3: memref<1x256xf32, #tpu.memory_space<vmem>>, %arg4: memref<1x256xf32, #tpu.memory_space<vmem>>, %arg5: memref<2x56x256xbf16, #tpu.memory_space<vmem>>) attributes {dimension_semantics = [#tpu.dimension_semantics<parallel>], iteration_bounds = array<i64: 1>, scalar_prefetch = 0 : i64, scratch_operands = 0 : i64, tpu.core_type = #tpu.core_type<tc>, window_params = [{transform_indices = @transform_0, window_bounds = array<i64: 2, 256, 16>}, {pipeline_mode = #tpu.pipeline_mode<synchronous>, transform_indices = @transform_1, window_bounds = array<i64: 16, 512>}, {pipeline_mode = #tpu.pipeline_mode<synchronous>, transform_indices = @transform_2, window_bounds = array<i64: 1, 256>}, {pipeline_mode = #tpu.pipeline_mode<synchronous>, transform_indices = @transform_3, window_bounds = array<i64: 1, 256>}, {transform_indices = @transform_4, window_bounds = array<i64: 2, 56, 256>}]} {
    %c0 = arith.constant 0 : index
    %c0_0 = arith.constant 0 : index
    %c0_1 = arith.constant 0 : index
    %0 = vector.load %arg1[%c0, %c0_0, %c0_1] : memref<2x256x16xf32, #tpu.memory_space<vmem>>, vector<2x256x16xf32>
    %1 = vector.shape_cast %0 : vector<2x256x16xf32> to vector<512x16xf32>
    %c0_2 = arith.constant 0 : index
    %c0_3 = arith.constant 0 : index
    %2 = vector.load %arg2[%c0_2, %c0_3] : memref<16x512xf32, #tpu.memory_space<vmem>>, vector<16x512xf32>
    %cst = arith.constant dense<0.000000e+00> : vector<512x512xf32>
    %3 = tpu.matmul %1, %2, %cst {dimension_numbers = #tpu.dot_dimension_numbers<[1], [0], [0], [1], [0, 0, 1, 1], [], []>} : vector<512x16xf32>, vector<16x512xf32>, vector<512x512xf32> -> vector<512x512xf32>
    %cst_4 = arith.constant 0.000000e+00 : f32
    %4 = vector.broadcast %cst_4 : f32 to vector<512x512xf32>
    %5 = arith.maximumf %3, %4 : vector<512x512xf32>
    %6 = vector.extract_strided_slice %5 {offsets = [0, 0], sizes = [512, 256], strides = [1, 1]} : vector<512x512xf32> to vector<512x256xf32>
    %7 = vector.extract_strided_slice %5 {offsets = [0, 256], sizes = [512, 256], strides = [1, 1]} : vector<512x512xf32> to vector<512x256xf32>
    %c0_5 = arith.constant 0 : index
    %c0_6 = arith.constant 0 : index
    %8 = vector.load %arg3[%c0_5, %c0_6] : memref<1x256xf32, #tpu.memory_space<vmem>>, vector<1x256xf32>
    %c0_7 = arith.constant 0 : index
    %c0_8 = arith.constant 0 : index
    %9 = vector.load %arg4[%c0_7, %c0_8] : memref<1x256xf32, #tpu.memory_space<vmem>>, vector<1x256xf32>
    %10 = vector.broadcast %8 : vector<1x256xf32> to vector<512x256xf32>
    %11 = arith.mulf %6, %10 : vector<512x256xf32>
    %12 = vector.broadcast %9 : vector<1x256xf32> to vector<512x256xf32>
    %13 = arith.addf %11, %12 : vector<512x256xf32>
    %14 = arith.addf %13, %7 : vector<512x256xf32>
    %cst_9 = arith.constant 0.000000e+00 : f32
    %15 = vector.broadcast %cst_9 : f32 to vector<512x256xf32>
    %16 = arith.maximumf %14, %15 : vector<512x256xf32>
    %17 = vector.broadcast %8 : vector<1x256xf32> to vector<512x256xf32>
    %18 = arith.mulf %16, %17 : vector<512x256xf32>
    %19 = vector.broadcast %9 : vector<1x256xf32> to vector<512x256xf32>
    %20 = arith.addf %18, %19 : vector<512x256xf32>
    %21 = vector.shape_cast %20 : vector<512x256xf32> to vector<64x8x256xf32>
    %cst_10 = arith.constant dense<0xFF800000> : vector<64x256xf32>
    %22 = vector.multi_reduction <maximumf>, %21, %cst_10 [1] : vector<64x8x256xf32> to vector<64x256xf32>
    %23 = vector.shape_cast %22 : vector<64x256xf32> to vector<32x2x256xf32>
    %cst_11 = arith.constant dense<0xFF800000> : vector<32x256xf32>
    %24 = vector.multi_reduction <maximumf>, %23, %cst_11 [1] : vector<32x2x256xf32> to vector<32x256xf32>
    %25 = vector.shape_cast %24 : vector<32x256xf32> to vector<16x2x256xf32>
    %cst_12 = arith.constant dense<0xFF800000> : vector<16x256xf32>
    %26 = vector.multi_reduction <maximumf>, %25, %cst_12 [1] : vector<16x2x256xf32> to vector<16x256xf32>
    %27 = vector.shape_cast %22 : vector<64x256xf32> to vector<2x32x256xf32>
    %28 = arith.truncf %27 : vector<2x32x256xf32> to vector<2x32x256xbf16>
    %c0_13 = arith.constant 0 : index
    %c0_14 = arith.constant 0 : index
    %c0_15 = arith.constant 0 : index
    %29 = vector.load %arg5[%c0_13, %c0_14, %c0_15] : memref<2x56x256xbf16, #tpu.memory_space<vmem>>, vector<2x32x256xbf16>
    tpu.vector_store %arg5[%c0_13, %c0_14, %c0_15], %28 {strides = array<i32>} : memref<2x56x256xbf16, #tpu.memory_space<vmem>>, vector<2x32x256xbf16>,
    %30 = vector.shape_cast %24 : vector<32x256xf32> to vector<2x16x256xf32>
    %31 = arith.truncf %30 : vector<2x16x256xf32> to vector<2x16x256xbf16>
    %c0_16 = arith.constant 0 : index
    %c32 = arith.constant 32 : index
    %c0_17 = arith.constant 0 : index
    %32 = vector.load %arg5[%c0_16, %c32, %c0_17] : memref<2x56x256xbf16, #tpu.memory_space<vmem>>, vector<2x16x256xbf16>
    tpu.vector_store %arg5[%c0_16, %c32, %c0_17], %31 {strides = array<i32>} : memref<2x56x256xbf16, #tpu.memory_space<vmem>>, vector<2x16x256xbf16>,
    %33 = vector.shape_cast %26 : vector<16x256xf32> to vector<2x8x256xf32>
    %34 = arith.truncf %33 : vector<2x8x256xf32> to vector<2x8x256xbf16>
    %c0_18 = arith.constant 0 : index
    %c48 = arith.constant 48 : index
    %c0_19 = arith.constant 0 : index
    %35 = vector.load %arg5[%c0_18, %c48, %c0_19] : memref<2x56x256xbf16, #tpu.memory_space<vmem>>, vector<2x8x256xbf16>
    tpu.vector_store %arg5[%c0_18, %c48, %c0_19], %34 {strides = array<i32>} : memref<2x56x256xbf16, #tpu.memory_space<vmem>>, vector<2x8x256xbf16>,
    return
  }
  func.func @transform_0(%arg0: i32) -> (i32, i32, i32) {
    %c0_i32 = arith.constant 0 : i32
    %c0_i32_0 = arith.constant 0 : i32
    %c0_i32_1 = arith.constant 0 : i32
    return %arg0, %c0_i32, %c0_i32_0 : i32, i32, i32
  }
  func.func @transform_1(%arg0: i32) -> (i32, i32) {
    %c0_i32 = arith.constant 0 : i32
    %c0_i32_0 = arith.constant 0 : i32
    %c0_i32_1 = arith.constant 0 : i32
    return %c0_i32, %c0_i32_0 : i32, i32
  }
  func.func @transform_2(%arg0: i32) -> (i32, i32) {
    %c0_i32 = arith.constant 0 : i32
    %c0_i32_0 = arith.constant 0 : i32
    %c0_i32_1 = arith.constant 0 : i32
    return %c0_i32, %c0_i32_0 : i32, i32
  }
  func.func @transform_3(%arg0: i32) -> (i32, i32) {
    %c0_i32 = arith.constant 0 : i32
    %c0_i32_0 = arith.constant 0 : i32
    %c0_i32_1 = arith.constant 0 : i32
    return %c0_i32, %c0_i32_0 : i32, i32
  }
  func.func @transform_4(%arg0: i32) -> (i32, i32, i32) {
    %c0_i32 = arith.constant 0 : i32
    %c0_i32_0 = arith.constant 0 : i32
    %c0_i32_1 = arith.constant 0 : i32
    return %arg0, %c0_i32, %c0_i32_0 : i32, i32, i32
  }
}

</mosaic_0001>

<bundles_post_ra>
// kernel: tpu_custom_call.1
= control target key start
LH: loop header
LB: loop body
LE: loop exit
PB: predicated region body
PF: predicated region fallthrough
CT: control target
= control target key end

     0   :  { %v4740_v5 = vmov 0.0   ;;  %vm90_vm0 = vcmask 130048   ;;  %s6449_s0 = inlined_call_operand.vmem [shape: f32[2,256,16], index: 0, kind: input, shape index: {}]   ;;  %s6450_s1 = inlined_call_operand.vmem [shape: f32[16,512], index: 1, kind: input, shape index: {}]   ;;  %s6451_s2 = inlined_call_operand.vmem [shape: f32[1,256], index: 2, kind: input, shape index: {}]   ;;  %s6452_s3 = inlined_call_operand.vmem [shape: f32[1,256], index: 3, kind: input, shape index: {}]   ;;  %s6453_s4 = inlined_call_operand.hbm [shape: bf16[2,56,256], index: 4, kind: output, shape index: {}]  }
   0x1   :  { %v87_v0 = vld [vmem:[%s6450_s1 + $0x28] sm:$0xff]  ;;  %v86_v1 = vld [vmem:[%s6450_s1 + $0x20] sm:$0xff]  ;;  %v89_v3 = vld [vmem:[%s6450_s1 + $0x38] sm:$0xff]  ;;  %347 = vmatprep.mubr.f32.mxu0 %v4740_v5  ;;  %796 = vmatprep.mubr.f32.mxu1 %v4740_v5 }
   0x2   :  { %v83_v2 = vld [vmem:[%s6450_s1 + $0x8] sm:$0xff]  ;;  %311 = vmatprep.subr.mxu0 %v87_v0  ;;  %v82_v4 = vld [vmem:[%s6450_s1] sm:$0xff]  ;;  %v88_v6 = vld [vmem:[%s6450_s1 + $0x30] sm:$0xff]  ;;  %760 = vmatprep.subr.mxu1 %v89_v3 }
   0x3   :  { %312 = vmatpush1.msra.mxu0 %v86_v1  ;;  %v18_v7 = vld [vmem:[%s6449_s0] sm:$0xff]  ;;  %v85_v8 = vld [vmem:[%s6450_s1 + $0x18] sm:$0xff]  ;;  %v84_v9 = vld [vmem:[%s6450_s1 + $0x10] sm:$0xff]  ;;  %761 = vmatpush1.msra.mxu1 %v88_v6 }
   0x4   :  { %313 = vmatprep.subr.mxu0 %v83_v2  ;;  %762 = vmatprep.subr.mxu1 %v85_v8  ;;  %v19_v10 = vld [vmem:[%s6449_s0 + $0x8] sm:$0xff]  ;;  %v20_v11 = vld [vmem:[%s6449_s0 + $0x10] sm:$0xff]  ;;  %v21_v12 = vld [vmem:[%s6449_s0 + $0x18] sm:$0xff] }
   0x5   :  { %314 = vmatpush1.msra.mxu0 %v82_v4  ;;  %763 = vmatpush1.msra.mxu1 %v84_v9 }
   0x6   :  { %4362 = vmatmul.mubr.msk.f32.vlgmr.msra.gmra.mxu0 %vm90_vm0, %v18_v7  ;;  %4426 = vmatmul.mubr.msk.f32.vlgmr.msra.gmra.mxu1 %vm90_vm0, %v18_v7 }
   0x7   :  { %353 = vmatprep.mubr.f32.mxu0 %v4740_v5  ;;  %802 = vmatprep.mubr.f32.mxu1 %v4740_v5 }
   0xa   :  { %4363 = vmatmul.mubr.msk.f32.gmra.mxu0 %vm90_vm0, %v19_v10  ;;  %4427 = vmatmul.mubr.msk.f32.gmra.mxu1 %vm90_vm0, %v19_v10 }
   0xb   :  { %359 = vmatprep.mubr.f32.mxu0 %v4740_v5  ;;  %808 = vmatprep.mubr.f32.mxu1 %v4740_v5 }
   0xe   :  { %4364 = vmatmul.mubr.msk.f32.gmra.mxu0 %vm90_vm0, %v20_v11 }
   0xf   :  { %365 = vmatprep.mubr.f32.mxu0 %v4740_v5 }
  0x10   :  { %9 = vsyncpa [#allocation3], 0  ;;  %4428 = vmatmul.mubr.msk.f32.gmra.mxu1 %vm90_vm0, %v20_v11  ;;  %v22_v13 = vld [vmem:[%s6449_s0 + $0x20] sm:$0xff]  ;;  %v23_v14 = vld [vmem:[%s6449_s0 + $0x28] sm:$0xff]  ;;  %v1440_v55 = vlaneseq  ;;  %vm3669_vm1 = vcmask 1041409   ;;  %vm3671_vm2 = vcmask 1042434  }
  0x11   :  { %814 = vmatprep.mubr.f32.mxu1 %v4740_v5  ;;  %v24_v15 = vld [vmem:[%s6449_s0 + $0x30] sm:$0xff]  ;;  %v25_v16 = vld [vmem:[%s6449_s0 + $0x38] sm:$0xff]  ;;  %v26_v17 = vld [vmem:[%s6449_s0 + $0x40] sm:$0xff]  ;;  %vm3673_vm3 = vcmask 1043459   ;;  %vm3675_vm4 = vcmask 1044484   ;;  %vm3677_vm5 = vcmask 1045509  }
  0x12   :  { %4365 = vmatmul.mubr.msk.f32.gmra.mxu0 %vm90_vm0, %v21_v12  ;;  %v27_v18 = vld [vmem:[%s6449_s0 + $0x48] sm:$0xff]  ;;  %v28_v19 = vld [vmem:[%s6449_s0 + $0x50] sm:$0xff]  ;;  %v29_v20 = vld [vmem:[%s6449_s0 + $0x58] sm:$0xff]  ;;  %v1441_v57 = vshrl.u32 %v1440_v55, 7  ;;  %vm3679_vm6 = vcmask 1046534   ;;  %vm3681_vm7 = vcmask 1047559  }
  0x13   :  { %371 = vmatprep.mubr.f32.mxu0 %v4740_v5  ;;  %v30_v21 = vld [vmem:[%s6449_s0 + $0x60] sm:$0xff]  ;;  %v31_v22 = vld [vmem:[%s6449_s0 + $0x68] sm:$0xff]  ;;  %v32_v23 = vld [vmem:[%s6449_s0 + $0x70] sm:$0xff] }
  0x14   :  { %4429 = vmatmul.mubr.msk.f32.gmra.mxu1 %vm90_vm0, %v21_v12  ;;  %v33_v24 = vld [vmem:[%s6449_s0 + $0x78] sm:$0xff]  ;;  %v34_v25 = vld [vmem:[%s6449_s0 + $0x80] sm:$0xff]  ;;  %v35_v26 = vld [vmem:[%s6449_s0 + $0x88] sm:$0xff]  ;;  %v1442_v59 = vsub.s32 0, %v1441_v57  ;;  %v1446_v62 = vsub.s32 1, %v1441_v57 }
  0x15   :  { %820 = vmatprep.mubr.f32.mxu1 %v4740_v5  ;;  %v36_v27 = vld [vmem:[%s6449_s0 + $0x90] sm:$0xff]  ;;  %v37_v28 = vld [vmem:[%s6449_s0 + $0x98] sm:$0xff]  ;;  %v38_v29 = vld [vmem:[%s6449_s0 + $0xa0] sm:$0xff] }
  0x16   :  { %4366 = vmatmul.mubr.msk.f32.gmra.mxu0 %vm90_vm0, %v22_v13  ;;  %v39_v30 = vld [vmem:[%s6449_s0 + $0xa8] sm:$0xff]  ;;  %v40_v31 = vld [vmem:[%s6449_s0 + $0xb0] sm:$0xff]  ;;  %v41_v32 = vld [vmem:[%s6449_s0 + $0xb8] sm:$0xff] }
  0x17   :  { %377 = vmatprep.mubr.f32.mxu0 %v4740_v5  ;;  %v42_v33 = vld [vmem:[%s6449_s0 + $0xc0] sm:$0xff]  ;;  %v43_v34 = vld [vmem:[%s6449_s0 + $0xc8] sm:$0xff]  ;;  %v44_v35 = vld [vmem:[%s6449_s0 + $0xd0] sm:$0xff] }
  0x18   :  { %4430 = vmatmul.mubr.msk.f32.gmra.mxu1 %vm90_vm0, %v22_v13  ;;  %v45_v36 = vld [vmem:[%s6449_s0 + $0xd8] sm:$0xff]  ;;  %v46_v37 = vld [vmem:[%s6449_s0 + $0xe0] sm:$0xff]  ;;  %v47_v38 = vld [vmem:[%s6449_s0 + $0xe8] sm:$0xff] }
  0x19   :  { %826 = vmatprep.mubr.f32.mxu1 %v4740_v5  ;;  %v48_v39 = vld [vmem:[%s6449_s0 + $0xf0] sm:$0xff]  ;;  %v49_v40 = vld [vmem:[%s6449_s0 + $0xf8] sm:$0xff]  ;;  %v50_v41 = vld [vmem:[%s6449_s0 + $0x100] sm:$0xff] }
  0x1a   :  { %4367 = vmatmul.mubr.msk.f32.gmra.mxu0 %vm90_vm0, %v23_v14  ;;  %v51_v42 = vld [vmem:[%s6449_s0 + $0x108] sm:$0xff]  ;;  %v52_v43 = vld [vmem:[%s6449_s0 + $0x110] sm:$0xff]  ;;  %v53_v44 = vld [vmem:[%s6449_s0 + $0x118] sm:$0xff] }
  0x1b   :  { %383 = vmatprep.mubr.f32.mxu0 %v4740_v5  ;;  %v54_v45 = vld [vmem:[%s6449_s0 + $0x120] sm:$0xff]  ;;  %v55_v46 = vld [vmem:[%s6449_s0 + $0x128] sm:$0xff]  ;;  %v56_v47 = vld [vmem:[%s6449_s0 + $0x130] sm:$0xff] }
  0x1c   :  { %4431 = vmatmul.mubr.msk.f32.gmra.mxu1 %vm90_vm0, %v23_v14  ;;  %v57_v48 = vld [vmem:[%s6449_s0 + $0x138] sm:$0xff]  ;;  %v58_v49 = vld [vmem:[%s6449_s0 + $0x140] sm:$0xff]  ;;  %v59_v50 = vld [vmem:[%s6449_s0 + $0x148] sm:$0xff] }
  0x1d   :  { %832 = vmatprep.mubr.f32.mxu1 %v4740_v5  ;;  %v60_v51 = vld [vmem:[%s6449_s0 + $0x150] sm:$0xff]  ;;  %v61_v52 = vld [vmem:[%s6449_s0 + $0x158] sm:$0xff]  ;;  %v62_v53 = vld [vmem:[%s6449_s0 + $0x160] sm:$0xff] }
  0x1e   :  { %4368 = vmatmul.mubr.msk.f32.gmra.mxu0 %vm90_vm0, %v24_v15  ;;  %v63_v54 = vld [vmem:[%s6449_s0 + $0x168] sm:$0xff]  ;;  %v64_v56 = vld [vmem:[%s6449_s0 + $0x170] sm:$0xff]  ;;  %v65_v58 = vld [vmem:[%s6449_s0 + $0x178] sm:$0xff] }
  0x1f   :  { %389 = vmatprep.mubr.f32.mxu0 %v4740_v5  ;;  %v1437_v60 = vld [vmem:[%s6451_s2] sm:$0x3]  ;;  %v67_v6 = vld [vmem:[%s6449_s0 + $0x188] sm:$0xff] }
  0x20   :  { %4432 = vmatmul.mubr.msk.f32.gmra.mxu1 %vm90_vm0, %v24_v15  ;;  %v66_v61 = vld [vmem:[%s6449_s0 + $0x180] sm:$0xff]  ;;  %v5139_v0 = vrot.slane %v1437_v60, %v1442_v59  ;;  %v5143_v3 = vrot.slane %v1437_v60, %v1446_v62 }
  0x21   :  { %838 = vmatprep.mubr.f32.mxu1 %v4740_v5  ;;  %v1438_v63 = vld [vmem:[%s6452_s3] sm:$0x3] }
  0x22   :  { %4369 = vmatmul.mubr.msk.f32.gmra.mxu0 %vm90_vm0, %v25_v16  ;;  %v5145_v4 = vrot.slane %v1438_v63, %v1442_v59  ;;  %v5153_v12 = vrot.slane %v1438_v63, %v1446_v62 }
  0x23   :  { %395 = vmatprep.mubr.f32.mxu0 %v4740_v5 }
  0x24   :  { %4433 = vmatmul.mubr.msk.f32.gmra.mxu1 %vm90_vm0, %v25_v16 }
  0x25   :  { %844 = vmatprep.mubr.f32.mxu1 %v4740_v5 }
  0x26   :  { %4370 = vmatmul.mubr.msk.f32.gmra.mxu0 %vm90_vm0, %v26_v17 }
  0x27   :  { %401 = vmatprep.mubr.f32.mxu0 %v4740_v5 }
  0x28   :  { %4434 = vmatmul.mubr.msk.f32.gmra.mxu1 %vm90_vm0, %v26_v17 }
  0x29   :  { %850 = vmatprep.mubr.f32.mxu1 %v4740_v5 }
  0x2a   :  { %4371 = vmatmul.mubr.msk.f32.gmra.mxu0 %vm90_vm0, %v27_v18 }
  0x2b   :  { %407 = vmatprep.mubr.f32.mxu0 %v4740_v5 }
  0x2c   :  { %4435 = vmatmul.mubr.msk.f32.gmra.mxu1 %vm90_vm0, %v27_v18  ;;  %v68_v18 = vld [vmem:[%s6449_s0 + $0x190] sm:$0xff] }
  0x2d   :  { %856 = vmatprep.mubr.f32.mxu1 %v4740_v5 }
  0x2e   :  { %4372 = vmatmul.mubr.msk.f32.gmra.mxu0 %vm90_vm0, %v28_v19 }
  0x2f   :  { %413 = vmatprep.mubr.f32.mxu0 %v4740_v5 }
  0x30   :  { %4436 = vmatmul.mubr.msk.f32.gmra.mxu1 %vm90_vm0, %v28_v19 }
  0x31   :  { %862 = vmatprep.mubr.f32.mxu1 %v4740_v5 }
  0x32   :  { %4373 = vmatmul.mubr.msk.f32.gmra.mxu0 %vm90_vm0, %v29_v20 }
  0x33   :  { %419 = vmatprep.mubr.f32.mxu0 %v4740_v5 }
  0x34   :  { %4437 = vmatmul.mubr.msk.f32.gmra.mxu1 %vm90_vm0, %v29_v20 }
  0x35   :  { %868 = vmatprep.mubr.f32.mxu1 %v4740_v5 }
  0x36   :  { %4374 = vmatmul.mubr.msk.f32.gmra.mxu0 %vm90_vm0, %v30_v21 }
  0x37   :  { %425 = vmatprep.mubr.f32.mxu0 %v4740_v5 }
  0x38   :  { %4438 = vmatmul.mubr.msk.f32.gmra.mxu1 %vm90_vm0, %v30_v21 }
  0x39   :  { %874 = vmatprep.mubr.f32.mxu1 %v4740_v5 }
  0x3a   :  { %4375 = vmatmul.mubr.msk.f32.gmra.mxu0 %vm90_vm0, %v31_v22 }
  0x3b   :  { %431 = vmatprep.mubr.f32.mxu0 %v4740_v5 }
  0x3c   :  { %4439 = vmatmul.mubr.msk.f32.gmra.mxu1 %vm90_vm0, %v31_v22 }
  0x3d   :  { %880 = vmatprep.mubr.f32.mxu1 %v4740_v5 }
  0x3e   :  { %4376 = vmatmul.mubr.msk.f32.gmra.mxu0 %vm90_vm0, %v32_v23 }
  0x3f   :  { %437 = vmatprep.mubr.f32.mxu0 %v4740_v5 }
  0x40   :  { %4440 = vmatmul.mubr.msk.f32.gmra.mxu1 %vm90_vm0, %v32_v23 }
  0x41   :  { %886 = vmatprep.mubr.f32.mxu1 %v4740_v5 }
  0x42   :  { %4377 = vmatmul.mubr.msk.f32.gmra.mxu0 %vm90_vm0, %v33_v24 }
  0x43   :  { %443 = vmatprep.mubr.f32.mxu0 %v4740_v5 }
  0x44   :  { %4441 = vmatmul.mubr.msk.f32.gmra.mxu1 %vm90_vm0, %v33_v24 }
  0x45   :  { %892 = vmatprep.mubr.f32.mxu1 %v4740_v5 }
  0x46   :  { %4378 = vmatmul.mubr.msk.f32.gmra.mxu0 %vm90_vm0, %v34_v25 }
  0x47   :  { %449 = vmatprep.mubr.f32.mxu0 %v4740_v5 }
  0x48   :  { %4442 = vmatmul.mubr.msk.f32.gmra.mxu1 %vm90_vm0, %v34_v25 }
  0x49   :  { %898 = vmatprep.mubr.f32.mxu1 %v4740_v5 }
  0x4a   :  { %4379 = vmatmul.mubr.msk.f32.gmra.mxu0 %vm90_vm0, %v35_v26 }
  0x4b   :  { %455 = vmatprep.mubr.f32.mxu0 %v4740_v5 }
  0x4c   :  { %4443 = vmatmul.mubr.msk.f32.gmra.mxu1 %vm90_vm0, %v35_v26 }
  0x4d   :  { %904 = vmatprep.mubr.f32.mxu1 %v4740_v5 }
  0x4e   :  { %4380 = vmatmul.mubr.msk.f32.gmra.mxu0 %vm90_vm0, %v36_v27 }
  0x4f   :  { %461 = vmatprep.mubr.f32.mxu0 %v4740_v5 }
  0x50   :  { %4444 = vmatmul.mubr.msk.f32.gmra.mxu1 %vm90_vm0, %v36_v27 }
  0x51   :  { %910 = vmatprep.mubr.f32.mxu1 %v4740_v5 }
  0x52   :  { %4381 = vmatmul.mubr.msk.f32.gmra.mxu0 %vm90_vm0, %v37_v28 }
  0x53   :  { %467 = vmatprep.mubr.f32.mxu0 %v4740_v5 }
  0x54   :  { %4445 = vmatmul.mubr.msk.f32.gmra.mxu1 %vm90_vm0, %v37_v28 }
  0x55   :  { %916 = vmatprep.mubr.f32.mxu1 %v4740_v5 }
  0x56   :  { %4382 = vmatmul.mubr.msk.f32.gmra.mxu0 %vm90_vm0, %v38_v29 }
  0x57   :  { %473 = vmatprep.mubr.f32.mxu0 %v4740_v5 }
  0x58   :  { %4446 = vmatmul.mubr.msk.f32.gmra.mxu1 %vm90_vm0, %v38_v29 }
  0x59   :  { %922 = vmatprep.mubr.f32.mxu1 %v4740_v5 }
  0x5a   :  { %4383 = vmatmul.mubr.msk.f32.gmra.mxu0 %vm90_vm0, %v39_v30 }
  0x5b   :  { %479 = vmatprep.mubr.f32.mxu0 %v4740_v5 }
  0x5c   :  { %4447 = vmatmul.mubr.msk.f32.gmra.mxu1 %vm90_vm0, %v39_v30 }
  0x5d   :  { %928 = vmatprep.mubr.f32.mxu1 %v4740_v5 }
  0x5e   :  { %4384 = vmatmul.mubr.msk.f32.gmra.mxu0 %vm90_vm0, %v40_v31 }
  0x5f   :  { %485 = vmatprep.mubr.f32.mxu0 %v4740_v5 }
  0x60   :  { %4448 = vmatmul.mubr.msk.f32.gmra.mxu1 %vm90_vm0, %v40_v31 }
  0x61   :  { %934 = vmatprep.mubr.f32.mxu1 %v4740_v5 }
  0x62   :  { %4385 = vmatmul.mubr.msk.f32.gmra.mxu0 %vm90_vm0, %v41_v32 }
  0x63   :  { %491 = vmatprep.mubr.f32.mxu0 %v4740_v5 }
  0x64   :  { %4449 = vmatmul.mubr.msk.f32.gmra.mxu1 %vm90_vm0, %v41_v32 }
  0x65   :  { %940 = vmatprep.mubr.f32.mxu1 %v4740_v5 }
  0x66   :  { %4386 = vmatmul.mubr.msk.f32.gmra.mxu0 %vm90_vm0, %v42_v33 }
  0x67   :  { %497 = vmatprep.mubr.f32.mxu0 %v4740_v5 }
  0x68   :  { %4450 = vmatmul.mubr.msk.f32.gmra.mxu1 %vm90_vm0, %v42_v33  ;;  %v69_v33 = vld [vmem:[%s6449_s0 + $0x198] sm:$0xff] }
  0x69   :  { %946 = vmatprep.mubr.f32.mxu1 %v4740_v5 }
  0x6a   :  { %4387 = vmatmul.mubr.msk.f32.gmra.mxu0 %vm90_vm0, %v43_v34 }
  0x6b   :  { %503 = vmatprep.mubr.f32.mxu0 %v4740_v5 }
  0x6c   :  { %4451 = vmatmul.mubr.msk.f32.gmra.mxu1 %vm90_vm0, %v43_v34 }
  0x6d   :  { %952 = vmatprep.mubr.f32.mxu1 %v4740_v5 }
  0x6e   :  { %4388 = vmatmul.mubr.msk.f32.gmra.mxu0 %vm90_vm0, %v44_v35 }
  0x6f   :  { %509 = vmatprep.mubr.f32.mxu0 %v4740_v5 }
  0x70   :  { %4452 = vmatmul.mubr.msk.f32.gmra.mxu1 %vm90_vm0, %v44_v35 }
  0x71   :  { %958 = vmatprep.mubr.f32.mxu1 %v4740_v5 }
  0x72   :  { %4389 = vmatmul.mubr.msk.f32.gmra.mxu0 %vm90_vm0, %v45_v36 }
  0x73   :  { %515 = vmatprep.mubr.f32.mxu0 %v4740_v5 }
  0x74   :  { %4453 = vmatmul.mubr.msk.f32.gmra.mxu1 %vm90_vm0, %v45_v36 }
  0x75   :  { %964 = vmatprep.mubr.f32.mxu1 %v4740_v5 }
  0x76   :  { %4390 = vmatmul.mubr.msk.f32.gmra.mxu0 %vm90_vm0, %v46_v37 }
  0x77   :  { %521 = vmatprep.mubr.f32.mxu0 %v4740_v5 }
  0x78   :  { %4454 = vmatmul.mubr.msk.f32.gmra.mxu1 %vm90_vm0, %v46_v37 }
  0x79   :  { %970 = vmatprep.mubr.f32.mxu1 %v4740_v5 }
  0x7a   :  { %4391 = vmatmul.mubr.msk.f32.gmra.mxu0 %vm90_vm0, %v47_v38 }
  0x7b   :  { %527 = vmatprep.mubr.f32.mxu0 %v4740_v5 }
  0x7c   :  { %4455 = vmatmul.mubr.msk.f32.gmra.mxu1 %vm90_vm0, %v47_v38 }
  0x7d   :  { %976 = vmatprep.mubr.f32.mxu1 %v4740_v5 }
  0x7e   :  { %4392 = vmatmul.mubr.msk.f32.gmra.mxu0 %vm90_vm0, %v48_v39 }
  0x7f   :  { %533 = vmatprep.mubr.f32.mxu0 %v4740_v5 }
  0x80   :  { %4456 = vmatmul.mubr.msk.f32.gmra.mxu1 %vm90_vm0, %v48_v39 }
  0x81   :  { %982 = vmatprep.mubr.f32.mxu1 %v4740_v5 }
  0x82   :  { %4393 = vmatmul.mubr.msk.f32.gmra.mxu0 %vm90_vm0, %v49_v40 }
  0x83   :  { %539 = vmatprep.mubr.f32.mxu0 %v4740_v5 }
  0x84   :  { %4457 = vmatmul.mubr.msk.f32.gmra.mxu1 %vm90_vm0, %v49_v40 }
  0x85   :  { %988 = vmatprep.mubr.f32.mxu1 %v4740_v5 }
  0x86   :  { %4394 = vmatmul.mubr.msk.f32.gmra.mxu0 %vm90_vm0, %v50_v41 }
  0x87   :  { %545 = vmatprep.mubr.f32.mxu0 %v4740_v5 }
  0x88   :  { %4458 = vmatmul.mubr.msk.f32.gmra.mxu1 %vm90_vm0, %v50_v41 }
  0x89   :  { %994 = vmatprep.mubr.f32.mxu1 %v4740_v5 }
  0x8a   :  { %4395 = vmatmul.mubr.msk.f32.gmra.mxu0 %vm90_vm0, %v51_v42 }
  0x8b   :  { %551 = vmatprep.mubr.f32.mxu0 %v4740_v5 }
  0x8c   :  { %4459 = vmatmul.mubr.msk.f32.gmra.mxu1 %vm90_vm0, %v51_v42 }
  0x8d   :  { %1000 = vmatprep.mubr.f32.mxu1 %v4740_v5 }
  0x8e   :  { %4396 = vmatmul.mubr.msk.f32.gmra.mxu0 %vm90_vm0, %v52_v43 }
  0x8f   :  { %557 = vmatprep.mubr.f32.mxu0 %v4740_v5 }
  0x90   :  { %4460 = vmatmul.mubr.msk.f32.gmra.mxu1 %vm90_vm0, %v52_v43 }
  0x91   :  { %1006 = vmatprep.mubr.f32.mxu1 %v4740_v5 }
  0x92   :  { %4397 = vmatmul.mubr.msk.f32.gmra.mxu0 %vm90_vm0, %v53_v44 }
  0x93   :  { %563 = vmatprep.mubr.f32.mxu0 %v4740_v5 }
  0x94   :  { %4461 = vmatmul.mubr.msk.f32.gmra.mxu1 %vm90_vm0, %v53_v44 }
  0x95   :  { %1012 = vmatprep.mubr.f32.mxu1 %v4740_v5 }
  0x96   :  { %4398 = vmatmul.mubr.msk.f32.gmra.mxu0 %vm90_vm0, %v54_v45 }
  0x97   :  { %569 = vmatprep.mubr.f32.mxu0 %v4740_v5 }
  0x98   :  { %4462 = vmatmul.mubr.msk.f32.gmra.mxu1 %vm90_vm0, %v54_v45 }
  0x99   :  { %1018 = vmatprep.mubr.f32.mxu1 %v4740_v5 }
  0x9a   :  { %4399 = vmatmul.mubr.msk.f32.gmra.mxu0 %vm90_vm0, %v55_v46 }
  0x9b   :  { %575 = vmatprep.mubr.f32.mxu0 %v4740_v5 }
  0x9c   :  { %4463 = vmatmul.mubr.msk.f32.gmra.mxu1 %vm90_vm0, %v55_v46 }
  0x9d   :  { %1024 = vmatprep.mubr.f32.mxu1 %v4740_v5 }
  0x9e   :  { %4400 = vmatmul.mubr.msk.f32.gmra.mxu0 %vm90_vm0, %v56_v47 }
  0x9f   :  { %581 = vmatprep.mubr.f32.mxu0 %v4740_v5 }
  0xa0   :  { %4464 = vmatmul.mubr.msk.f32.gmra.mxu1 %vm90_vm0, %v56_v47 }
  0xa1   :  { %1030 = vmatprep.mubr.f32.mxu1 %v4740_v5 }
  0xa2   :  { %4401 = vmatmul.mubr.msk.f32.gmra.mxu0 %vm90_vm0, %v57_v48 }
  0xa3   :  { %587 = vmatprep.mubr.f32.mxu0 %v4740_v5 }
  0xa4   :  { %4465 = vmatmul.mubr.msk.f32.gmra.mxu1 %vm90_vm0, %v57_v48 }
  0xa5   :  { %1036 = vmatprep.mubr.f32.mxu1 %v4740_v5 }
  0xa6   :  { %4402 = vmatmul.mubr.msk.f32.gmra.mxu0 %vm90_vm0, %v58_v49 }
  0xa7   :  { %593 = vmatprep.mubr.f32.mxu0 %v4740_v5 }
  0xa8   :  { %4466 = vmatmul.mubr.msk.f32.gmra.mxu1 %vm90_vm0, %v58_v49 }
  0xa9   :  { %1042 = vmatprep.mubr.f32.mxu1 %v4740_v5 }
  0xaa   :  { %4403 = vmatmul.mubr.msk.f32.gmra.mxu0 %vm90_vm0, %v59_v50 }
  0xab   :  { %599 = vmatprep.mubr.f32.mxu0 %v4740_v5 }
  0xac   :  { %4467 = vmatmul.mubr.msk.f32.gmra.mxu1 %vm90_vm0, %v59_v50 }
  0xad   :  { %1048 = vmatprep.mubr.f32.mxu1 %v4740_v5 }
  0xae   :  { %4404 = vmatmul.mubr.msk.f32.gmra.mxu0 %vm90_vm0, %v60_v51 }
  0xaf   :  { %605 = vmatprep.mubr.f32.mxu0 %v4740_v5 }
  0xb0   :  { %4468 = vmatmul.mubr.msk.f32.gmra.mxu1 %vm90_vm0, %v60_v51  ;;  %v70_v51 = vld [vmem:[%s6449_s0 + $0x1a0] sm:$0xff] }
  0xb1   :  { %1054 = vmatprep.mubr.f32.mxu1 %v4740_v5 }
  0xb2   :  { %4405 = vmatmul.mubr.msk.f32.gmra.mxu0 %vm90_vm0, %v61_v52 }
  0xb3   :  { %611 = vmatprep.mubr.f32.mxu0 %v4740_v5 }
  0xb4   :  { %4469 = vmatmul.mubr.msk.f32.gmra.mxu1 %vm90_vm0, %v61_v52 }
  0xb5   :  { %1060 = vmatprep.mubr.f32.mxu1 %v4740_v5 }
  0xb6   :  { %4406 = vmatmul.mubr.msk.f32.gmra.mxu0 %vm90_vm0, %v62_v53 }
  0xb7   :  { %617 = vmatprep.mubr.f32.mxu0 %v4740_v5 }
  0xb8   :  { %4470 = vmatmul.mubr.msk.f32.gmra.mxu1 %vm90_vm0, %v62_v53 }
  0xb9   :  { %1066 = vmatprep.mubr.f32.mxu1 %v4740_v5 }
  0xba   :  { %4407 = vmatmul.mubr.msk.f32.gmra.mxu0 %vm90_vm0, %v63_v54 }
  0xbb   :  { %623 = vmatprep.mubr.f32.mxu0 %v4740_v5 }
  0xbc   :  { %4471 = vmatmul.mubr.msk.f32.gmra.mxu1 %vm90_vm0, %v63_v54 }
  0xbd   :  { %1072 = vmatprep.mubr.f32.mxu1 %v4740_v5 }
  0xbe   :  { %4408 = vmatmul.mubr.msk.f32.gmra.mxu0 %vm90_vm0, %v64_v56 }
  0xbf   :  { %629 = vmatprep.mubr.f32.mxu0 %v4740_v5 }
  0xc0   :  { %4472 = vmatmul.mubr.msk.f32.gmra.mxu1 %vm90_vm0, %v64_v56 }
  0xc1   :  { %1078 = vmatprep.mubr.f32.mxu1 %v4740_v5 }
  0xc2   :  { %4409 = vmatmul.mubr.msk.f32.gmra.mxu0 %vm90_vm0, %v65_v58 }
  0xc3   :  { %635 = vmatprep.mubr.f32.mxu0 %v4740_v5 }
  0xc4   :  { %4473 = vmatmul.mubr.msk.f32.gmra.mxu1 %vm90_vm0, %v65_v58 }
  0xc5   :  { %1084 = vmatprep.mubr.f32.mxu1 %v4740_v5 }
  0xc6   :  { %v349_v1 = vpop.f32.mrf.mxu0  ;;  %4410 = vmatmul.mubr.msk.f32.gmra.mxu0 %vm90_vm0, %v66_v61  ;;  %v798_v8 = vpop.f32.mrf.mxu1 }
  0xc7   :  { %v1181_v2 = vmax.f32 %v349_v1, 0.0  ;;  %641 = vmatprep.mubr.f32.mxu0 %v4740_v5  ;;  %v1183_v11 = vmax.f32 %v798_v8, 0.0 }
  0xc8   :  { %v351_v7 = vpop.f32.mrf.mxu0  ;;  %4474 = vmatmul.mubr.msk.f32.gmra.mxu1 %vm90_vm0, %v66_v61  ;;  %v800_v14 = vpop.f32.mrf.mxu1 }
  0xc9   :  { %v1450_v9 = vmul.f32 %v5139_v0, %v1181_v2  ;;  %v1182_v10 = vmax.f32 %v351_v7, 0.0  ;;  %1090 = vmatprep.mubr.f32.mxu1 %v4740_v5  ;;  %v1184_v19 = vmax.f32 %v800_v14, 0.0 }
  0xca   :  { %v355_v13 = vpop.f32.mrf.mxu0  ;;  %4411 = vmatmul.mubr.msk.f32.gmra.mxu0 %vm90_vm0, %v67_v6  ;;  %v804_v21 = vpop.f32.mrf.mxu1 }
  0xcb   :  { %v1451_v15 = vmul.f32 %v5143_v3, %v1182_v10  ;;  %v1589_v16 = vadd.f32 %v5145_v4, %v1450_v9  ;;  %v1185_v17 = vmax.f32 %v355_v13, 0.0  ;;  %647 = vmatprep.mubr.f32.mxu0 %v4740_v5  ;;  %v1187_v26 = vmax.f32 %v804_v21, 0.0 }
  0xcc   :  { %v357_v20 = vpop.f32.mrf.mxu0  ;;  %4475 = vmatmul.mubr.msk.f32.gmra.mxu1 %vm90_vm0, %v67_v6  ;;  %v806_v28 = vpop.f32.mrf.mxu1 }
  0xcd   :  { %v1717_v22 = vadd.f32 %v1589_v16, %v1183_v11  ;;  %v1452_v23 = vmul.f32 %v5139_v0, %v1185_v17  ;;  %v1590_v24 = vadd.f32 %v5153_v12, %v1451_v15  ;;  %v1186_v25 = vmax.f32 %v357_v20, 0.0  ;;  %1096 = vmatprep.mubr.f32.mxu1 %v4740_v5  ;;  %v71_v11 = vld [vmem:[%s6449_s0 + $0x1a8] sm:$0xff] }
  0xce   :  { %v361_v27 = vpop.f32.mrf.mxu0  ;;  %4412 = vmatmul.mubr.msk.f32.gmra.mxu0 %vm90_vm0, %v68_v18  ;;  %v1188_v35 = vmax.f32 %v806_v28, 0.0 }
  0xcf   :  { %v1845_v29 = vmax.f32 %v1717_v22, 0.0  ;;  %v1718_v30 = vadd.f32 %v1590_v24, %v1184_v19  ;;  %v1453_v31 = vmul.f32 %v5143_v3, %v1186_v25  ;;  %v1591_v32 = vadd.f32 %v5145_v4, %v1452_v23  ;;  %653 = vmatprep.mubr.f32.mxu0 %v4740_v5 }
  0xd0   :  { %v1189_v34 = vmax.f32 %v361_v27, 0.0  ;;  %v363_v36 = vpop.f32.mrf.mxu0  ;;  %v810_v37 = vpop.f32.mrf.mxu1  ;;  %4476 = vmatmul.mubr.msk.f32.gmra.mxu1 %vm90_vm0, %v68_v18 }
  0xd1   :  { %v1973_v38 = vmul.f32 %v1845_v29, %v5139_v0  ;;  %v1846_v39 = vmax.f32 %v1718_v30, 0.0  ;;  %v1719_v40 = vadd.f32 %v1591_v32, %v1187_v26  ;;  %v1592_v41 = vadd.f32 %v5153_v12, %v1453_v31  ;;  %1102 = vmatprep.mubr.f32.mxu1 %v4740_v5  ;;  %v72_v30 = vld [vmem:[%s6449_s0 + $0x1b0] sm:$0xff] }
  0xd2   :  { %v1454_v42 = vmul.f32 %v5139_v0, %v1189_v34  ;;  %v1190_v43 = vmax.f32 %v363_v36, 0.0  ;;  %v1191_v44 = vmax.f32 %v810_v37, 0.0  ;;  %v367_v45 = vpop.f32.mrf.mxu0  ;;  %4413 = vmatmul.mubr.msk.f32.gmra.mxu0 %vm90_vm0, %v69_v33  ;;  %v812_v46 = vpop.f32.mrf.mxu1 }
  0xd3   :  { %v2101_v47 = vadd.f32 %v1973_v38, %v5145_v4  ;;  %v1974_v48 = vmul.f32 %v1846_v39, %v5143_v3  ;;  %v1847_v49 = vmax.f32 %v1719_v40, 0.0  ;;  %v1720_v50 = vadd.f32 %v1592_v41, %v1188_v35  ;;  %659 = vmatprep.mubr.f32.mxu0 %v4740_v5 }
  0xd4   :  { %v1455_v52 = vmul.f32 %v5143_v3, %v1190_v43  ;;  %v1593_v53 = vadd.f32 %v5145_v4, %v1454_v42  ;;  %v1193_v54 = vmax.f32 %v367_v45, 0.0  ;;  %v1192_v55 = vmax.f32 %v812_v46, 0.0  ;;  %v369_v56 = vpop.f32.mrf.mxu0  ;;  %4477 = vmatmul.mubr.msk.f32.gmra.mxu1 %vm90_vm0, %v69_v33  ;;  %v816_v9 = vpop.f32.mrf.mxu1 }
  0xd5   :  { %v2229_v57 = vrot.slane %v2101_v47, 4  ;;  %v2102_v58 = vadd.f32 %v1974_v48, %v5153_v12  ;;  %v1975_v59 = vmul.f32 %v1847_v49, %v5139_v0  ;;  %v1848_v60 = vmax.f32 %v1720_v50, 0.0  ;;  %1108 = vmatprep.mubr.f32.mxu1 %v4740_v5  ;;  %v73_v48 = vld [vmem:[%s6449_s0 + $0x1b8] sm:$0xff] }
  0xd6   :  { %v1721_v61 = vadd.f32 %v1593_v53, %v1191_v44  ;;  %v1456_v62 = vmul.f32 %v5139_v0, %v1193_v54  ;;  %v1594_v63 = vadd.f32 %v5153_v12, %v1455_v52  ;;  %v1194_v1 = vmax.f32 %v369_v56, 0.0  ;;  %4414 = vmatmul.mubr.msk.f32.gmra.mxu0 %vm90_vm0, %v70_v51  ;;  %v373_v10 = vpop.f32.mrf.mxu0  ;;  %v818_v29 = vpop.f32.mrf.mxu1 }
  0xd7   :  { %v2230_v2 = vmax.f32 %v2101_v47, %v2229_v57  ;;  %v2235_v6 = vrot.slane %v2102_v58, 4  ;;  %v2103_v7 = vadd.f32 %v1975_v59, %v5145_v4  ;;  %v1976_v8 = vmul.f32 %v1848_v60, %v5143_v3  ;;  %665 = vmatprep.mubr.f32.mxu0 %v4740_v5 }
  0xd8   :  { %v1849_v13 = vmax.f32 %v1721_v61, 0.0  ;;  %v1722_v14 = vadd.f32 %v1594_v63, %v1192_v55  ;;  %v1457_v15 = vmul.f32 %v5143_v3, %v1194_v1  ;;  %v1195_v16 = vmax.f32 %v816_v9, 0.0  ;;  %4478 = vmatmul.mubr.msk.f32.gmra.mxu1 %vm90_vm0, %v70_v51  ;;  %v375_v43 = vpop.f32.mrf.mxu0 }
  0xd9   :  { %v2231_v17 = vrot.slane %v2230_v2, 2  ;;  %v2236_v18 = vmax.f32 %v2102_v58, %v2235_v6  ;;  %v2241_v19 = vrot.slane %v2103_v7, 4  ;;  %v2104_v20 = vadd.f32 %v1976_v8, %v5153_v12  ;;  %1114 = vmatprep.mubr.f32.mxu1 %v4740_v5  ;;  %v74_v6 = vld [vmem:[%s6449_s0 + $0x1c0] sm:$0xff] }
  0xda   :  { %v1977_v21 = vmul.f32 %v1849_v13, %v5139_v0  ;;  %v1850_v22 = vmax.f32 %v1722_v14, 0.0  ;;  %v1595_v23 = vadd.f32 %v5145_v4, %v1456_v62  ;;  %v1197_v24 = vmax.f32 %v373_v10, 0.0  ;;  %4415 = vmatmul.mubr.msk.f32.gmra.mxu0 %vm90_vm0, %v71_v11 }
  0xdb   :  { %v2232_v25 = vmax.f32 %v2230_v2, %v2231_v17  ;;  %v2237_v26 = vrot.slane %v2236_v18, 2  ;;  %v2242_v27 = vmax.f32 %v2103_v7, %v2241_v19  ;;  %v2247_v28 = vrot.slane %v2104_v20, 4  ;;  %671 = vmatprep.mubr.f32.mxu0 %v4740_v5  ;;  %v822_v2 = vpop.f32.mrf.mxu1 }
  0xdc   :  { %v2105_v31 = vadd.f32 %v1977_v21, %v5145_v4  ;;  %v1978_v32 = vmul.f32 %v1850_v22, %v5143_v3  ;;  %v1723_v33 = vadd.f32 %v1595_v23, %v1195_v16  ;;  %v1458_v34 = vmul.f32 %v5139_v0, %v1197_v24  ;;  %4479 = vmatmul.mubr.msk.f32.gmra.mxu1 %vm90_vm0, %v71_v11  ;;  %v379_v16 = vpop.f32.mrf.mxu0 }
  0xdd   :  { %v2233_v35 = vrot.slane %v2232_v25, 1  ;;  %v2238_v36 = vmax.f32 %v2236_v18, %v2237_v26  ;;  %v2243_v37 = vrot.slane %v2242_v27, 2  ;;  %v2248_v38 = vmax.f32 %v2104_v20, %v2247_v28  ;;  %1120 = vmatprep.mubr.f32.mxu1 %v4740_v5  ;;  %v75_v26 = vld [vmem:[%s6449_s0 + $0x1c8] sm:$0xff] }
  0xde   :  { %v2253_v39 = vrot.slane %v2105_v31, 4  ;;  %v2106_v40 = vadd.f32 %v1978_v32, %v5153_v12  ;;  %v1851_v41 = vmax.f32 %v1723_v33, 0.0  ;;  %v1196_v42 = vmax.f32 %v818_v29, 0.0  ;;  %4416 = vmatmul.mubr.msk.f32.gmra.mxu0 %vm90_vm0, %v72_v30 }
  0xdf   :  { %v2234_v44 = vmax.f32 %v2232_v25, %v2233_v35  ;;  %v2239_v45 = vrot.slane %v2238_v36, 1  ;;  %v2244_v46 = vmax.f32 %v2242_v27, %v2243_v37  ;;  %v2249_v47 = vrot.slane %v2248_v38, 2  ;;  %677 = vmatprep.mubr.f32.mxu0 %v4740_v5  ;;  %v824_v25 = vpop.f32.mrf.mxu1  ;;  %v381_v35 = vpop.f32.mrf.mxu0 }
  0xe0   :  { %v2254_v49 = vmax.f32 %v2105_v31, %v2253_v39  ;;  %v2259_v50 = vrot.slane %v2106_v40, 4  ;;  %v1979_v51 = vmul.f32 %v1851_v41, %v5139_v0  ;;  %v1596_v52 = vadd.f32 %v5153_v12, %v1457_v15  ;;  %4480 = vmatmul.mubr.msk.f32.gmra.mxu1 %vm90_vm0, %v72_v30 }
  0xe1   :  { %v2240_v53 = vmax.f32 %v2238_v36, %v2239_v45  ;;  %v2245_v54 = vrot.slane %v2244_v46, 1  ;;  %v2250_v55 = vmax.f32 %v2248_v38, %v2249_v47  ;;  %v1198_v56 = vmax.f32 %v375_v43, 0.0  ;;  %1126 = vmatprep.mubr.f32.mxu1 %v4740_v5  ;;  %v76_v45 = vld [vmem:[%s6449_s0 + $0x1d0] sm:$0xff] }
  0xe2   :  { %v2255_v57 = vrot.slane %v2254_v49, 2  ;;  %v2260_v58 = vmax.f32 %v2106_v40, %v2259_v50  ;;  %v2107_v59 = vadd.f32 %v1979_v51, %v5145_v4  ;;  %v1724_v60 = vadd.f32 %v1596_v52, %v1196_v42  ;;  %4417 = vmatmul.mubr.msk.f32.gmra.mxu0 %vm90_vm0, %v73_v48 }
  0xe3   :  { %v4602_v61 = vpack.c.bf16 %v2240_v53, %v2234_v44  ;;  %v2246_v62 = vmax.f32 %v2244_v46, %v2245_v54  ;;  %v2251_v63 = vrot.slane %v2250_v55, 1  ;;  %v1459_v1 = vmul.f32 %v5143_v3, %v1198_v56  ;;  %683 = vmatprep.mubr.f32.mxu0 %v4740_v5  ;;  %v385_v54 = vpop.f32.mrf.mxu0 }
  0xe4   :  { %v2256_v7 = vmax.f32 %v2254_v49, %v2255_v57  ;;  %v2261_v8 = vrot.slane %v2260_v58, 2  ;;  %v2265_v9 = vrot.slane %v2107_v59, 4  ;;  %v1852_v10 = vmax.f32 %v1724_v60, 0.0  ;;  %4481 = vmatmul.mubr.msk.f32.gmra.mxu1 %vm90_vm0, %v73_v48 }
  0xe5   :  { %v3541_v11 = vunpack.c.l.b16 %v4602_v61  ;;  %v3542_v13 = vunpack.c.h.b16 %v4602_v61  ;;  %v5235_v14 = vmax.f32 %v2234_v44, %v2246_v62  ;;  %v2252_v15 = vmax.f32 %v2250_v55, %v2251_v63  ;;  %1132 = vmatprep.mubr.f32.mxu1 %v4740_v5  ;;  %v828_v44 = vpop.f32.mrf.mxu1 }
  0xe6   :  { %v2257_v17 = vrot.slane %v2256_v7, 1  ;;  %v2262_v18 = vmax.f32 %v2260_v58, %v2261_v8  ;;  %v2266_v19 = vmax.f32 %v2107_v59, %v2265_v9  ;;  %v1980_v20 = vmul.f32 %v1852_v10, %v5143_v3  ;;  %4418 = vmatmul.mubr.msk.f32.gmra.mxu0 %vm90_vm0, %v74_v6 }
  0xe7   :  { %v5240_v21 = vmax.f32 %v2240_v53, %v2252_v15  ;;  %v4603_v22 = vpack.c.bf16 %v2252_v15, %v2246_v62  ;;  %v1199_v23 = vmax.f32 %v822_v2, 0.0  ;;  %v1597_v24 = vadd.f32 %v5145_v4, %v1458_v34  ;;  %689 = vmatprep.mubr.f32.mxu0 %v4740_v5  ;;  %v830_v63 = vpop.f32.mrf.mxu1  ;;  %v387_v15 = vpop.f32.mrf.mxu0 }
  0xe8   :  { %v2258_v27 = vmax.f32 %v2256_v7, %v2257_v17  ;;  %v2263_v28 = vrot.slane %v2262_v18, 1  ;;  %v2267_v29 = vrot.slane %v2266_v19, 2  ;;  %v2108_v30 = vadd.f32 %v1980_v20, %v5153_v12  ;;  %4482 = vmatmul.mubr.msk.f32.gmra.mxu1 %vm90_vm0, %v74_v6 }
  0xe9   :  { %v3543_v31 = vunpack.c.l.b16 %v4603_v22  ;;  %v3544_v32 = vunpack.c.h.b16 %v4603_v22  ;;  %v5251_v33 = vpack.c.bf16 %v5240_v21, %v5235_v14  ;;  %v1725_v34 = vadd.f32 %v1597_v24, %v1199_v23  ;;  %1138 = vmatprep.mubr.f32.mxu1 %v4740_v5 }
  0xea   :  { %v5254_v36 = vmax.f32 %v2262_v18, %v2263_v28  ;;  %v2268_v37 = vmax.f32 %v2266_v19, %v2267_v29  ;;  %v2271_v38 = vrot.slane %v2108_v30, 4  ;;  %v1201_v39 = vmax.f32 %v379_v16, 0.0  ;;  %4419 = vmatmul.mubr.msk.f32.gmra.mxu0 %vm90_vm0, %v75_v26 }
  0xeb   :  { %v3670_v40 = vsel %vm3669_vm1, %v3543_v31, %v3541_v11  ;;  %v3683_v41 = vsel %vm3669_vm1, %v3544_v32, %v3542_v13  ;;  %v4036_v42 = vunpack.c.l.b16 %v5251_v33  ;;  %v4037_v43 = vunpack.c.h.b16 %v5251_v33  ;;  %695 = vmatprep.mubr.f32.mxu0 %v4740_v5 }
  0xec   :  { %v4604_v46 = vpack.c.bf16 %v5254_v36, %v2258_v27  ;;  %v2269_v47 = vrot.slane %v2268_v37, 1  ;;  %v2272_v48 = vmax.f32 %v2108_v30, %v2271_v38  ;;  %v1853_v49 = vmax.f32 %v1725_v34, 0.0  ;;  %4483 = vmatmul.mubr.msk.f32.gmra.mxu1 %vm90_vm0, %v75_v26  ;;  %v78_v26 = vld [vmem:[%s6449_s0 + $0x1e0] sm:$0xff] }
  0xed   :  { %v1460_v50 = vmul.f32 %v5139_v0, %v1201_v39  ;;  %v1200_v51 = vmax.f32 %v824_v25, 0.0  ;;  %v1598_v52 = vadd.f32 %v5153_v12, %v1459_v1  ;;  %v1202_v53 = vmax.f32 %v381_v35, 0.0  ;;  %1144 = vmatprep.mubr.f32.mxu1 %v4740_v5  ;;  %v77_v1 = vld [vmem:[%s6449_s0 + $0x1d8] sm:$0xff]  ;;  %v834_v25 = vpop.f32.mrf.mxu1 }
  0xee   :  { %v3545_v55 = vunpack.c.l.b16 %v4604_v46  ;;  %v3546_v56 = vunpack.c.h.b16 %v4604_v46  ;;  %v2270_v57 = vmax.f32 %v2268_v37, %v2269_v47  ;;  %v2273_v58 = vrot.slane %v2272_v48, 2  ;;  %4420 = vmatmul.mubr.msk.f32.gmra.mxu0 %vm90_vm0, %v76_v45  ;;  %v79_v46 = vld [vmem:[%s6449_s0 + $0x1e8] sm:$0xff] }
  0xef   :  { %v1981_v59 = vmul.f32 %v1853_v49, %v5139_v0  ;;  %v1726_v60 = vadd.f32 %v1598_v52, %v1200_v51  ;;  %v1461_v61 = vmul.f32 %v5143_v3, %v1202_v53  ;;  %v1203_v62 = vmax.f32 %v828_v44, 0.0  ;;  %701 = vmatprep.mubr.f32.mxu0 %v4740_v5  ;;  %v836_v51 = vpop.f32.mrf.mxu1 }
  0xf0   :  { %v3672_v2 = vsel %vm3671_vm2, %v3545_v55, %v3670_v40  ;;  %v3684_v6 = vsel %vm3671_vm2, %v3546_v56, %v3683_v41  ;;  %v2999_v7 = vmax.f32 %v2258_v27, %v2270_v57  ;;  %v2274_v8 = vmax.f32 %v2272_v48, %v2273_v58  ;;  %4484 = vmatmul.mubr.msk.f32.gmra.mxu1 %vm90_vm0, %v76_v45 }
  0xf1   :  { %v2109_v9 = vadd.f32 %v1981_v59, %v5145_v4  ;;  %v1854_v10 = vmax.f32 %v1726_v60, 0.0  ;;  %v1599_v11 = vadd.f32 %v5145_v4, %v1460_v50  ;;  %v1205_v13 = vmax.f32 %v385_v54, 0.0  ;;  %1150 = vmatprep.mubr.f32.mxu1 %v4740_v5  ;;  %v391_v50 = vpop.f32.mrf.mxu0 }
  0xf2   :  { %v3061_v16 = vmax.f32 %v5235_v14, %v2999_v7  ;;  %v2275_v17 = vrot.slane %v2274_v8, 1  ;;  %v1204_v18 = vmax.f32 %v830_v63, 0.0  ;;  %v1600_v19 = vadd.f32 %v5153_v12, %v1461_v61  ;;  %4421 = vmatmul.mubr.msk.f32.gmra.mxu0 %vm90_vm0, %v77_v1  ;;  %v80_v63 = vld [vmem:[%s6449_s0 + $0x1f0] sm:$0xff] }
  0xf3   :  { %v2277_v20 = vrot.slane %v2109_v9, 4  ;;  %v1982_v22 = vmul.f32 %v1854_v10, %v5143_v3  ;;  %v1727_v23 = vadd.f32 %v1599_v11, %v1203_v62  ;;  %v1462_v24 = vmul.f32 %v5139_v0, %v1205_v13  ;;  %707 = vmatprep.mubr.f32.mxu0 %v4740_v5 }
  0xf4   :  { %v2276_v14 = vmax.f32 %v2274_v8, %v2275_v17  ;;  %v1728_v27 = vadd.f32 %v1600_v19, %v1204_v18  ;;  %v1206_v28 = vmax.f32 %v387_v15, 0.0  ;;  %v1207_v29 = vmax.f32 %v834_v25, 0.0  ;;  %4485 = vmatmul.mubr.msk.f32.gmra.mxu1 %vm90_vm0, %v77_v1  ;;  %v393_v8 = vpop.f32.mrf.mxu0 }
  0xf5   :  { %v2278_v30 = vmax.f32 %v2109_v9, %v2277_v20  ;;  %v2110_v31 = vadd.f32 %v1982_v22, %v5153_v12  ;;  %v1855_v32 = vmax.f32 %v1727_v23, 0.0  ;;  %v1601_v34 = vadd.f32 %v5145_v4, %v1462_v24  ;;  %1156 = vmatprep.mubr.f32.mxu1 %v4740_v5  ;;  %v840_v9 = vpop.f32.mrf.mxu1  ;;  %v81_v22 = vld [vmem:[%s6449_s0 + $0x1f8] sm:$0xff]  ;;  %s4741_s0 = smov [#allocation2]  }
  0xf6   :  { %v3000_v35 = vmax.f32 %v5254_v36, %v2276_v14  ;;  %v4605_v37 = vpack.c.bf16 %v2276_v14, %v2270_v57  ;;  %v1856_v38 = vmax.f32 %v1728_v27, 0.0  ;;  %v1463_v39 = vmul.f32 %v5143_v3, %v1206_v28  ;;  %4422 = vmatmul.mubr.msk.f32.gmra.mxu0 %vm90_vm0, %v78_v26  ;;  %v397_v14 = vpop.f32.mrf.mxu0  ;;  %s4351_s25 = sshll.u32 %s4741_s0, 4  ;;  %s4352_s25 = int_to_ptr.vmem [resolvable:$true] %s4351_s25 }
  0xf7   :  { %v2279_v40 = vrot.slane %v2278_v30, 2  ;;  %v2283_v41 = vrot.slane %v2110_v31, 4  ;;  %v1983_v44 = vmul.f32 %v1855_v32, %v5139_v0  ;;  %v1729_v45 = vadd.f32 %v1601_v34, %v1207_v29  ;;  %713 = vmatprep.mubr.f32.mxu0 %v4740_v5  ;;  %v842_v27 = vpop.f32.mrf.mxu1  ;;  %s4718_s3 = scalar_lea.vmem %s4352_s25, 1792  ;;  %p4723_p1 = scmp.lt.s32.totalorder %s4352_s25, %s4352_s25 }
  0xf8   :  { %v3062_v47 = vmax.f32 %v5240_v21, %v3000_v35  ;;  %v3547_v36 = vunpack.c.l.b16 %v4605_v37  ;;  %v3548_v48 = vunpack.c.h.b16 %v4605_v37  ;;  %v4667_v49 = vpack.c.bf16 %v3000_v35, %v2999_v7  ;;  %4486 = vmatmul.mubr.msk.f32.gmra.mxu1 %vm90_vm0, %v78_v26  ;;  %p4719_p0 = scmp.ne.s32.totalorder %s4352_s25, %s4718_s3  ;;  %p4724_p2 = scmp.lt.s32.totalorder %s4718_s3, %s4718_s3 }
  0xf9   :  { %v2280_v52 = vmax.f32 %v2278_v30, %v2279_v40  ;;  %v2284_v53 = vmax.f32 %v2110_v31, %v2283_v41  ;;  %v2111_v54 = vadd.f32 %v1983_v44, %v5145_v4  ;;  %v1984_v55 = vmul.f32 %v1856_v38, %v5143_v3  ;;  %1162 = vmatprep.mubr.f32.mxu1 %v4740_v5 }
  0xfa   :  { %v5310_v56 = vsel %vm3673_vm3, %v3547_v36, %v3672_v2  ;;  %v5313_v21 = vsel %vm3673_vm3, %v3548_v48, %v3684_v6  ;;  %v4038_v57 = vunpack.c.l.b16 %v4667_v49  ;;  %v4039_v58 = vunpack.c.h.b16 %v4667_v49  ;;  %4423 = vmatmul.mubr.msk.f32.gmra.mxu0 %vm90_vm0, %v79_v46  ;;  %p4725_p3 = por %p4724_p2, %p4723_p1 }
  0xfb   :  { %v5316_v59 = vpack.c.bf16 %v3062_v47, %v3061_v16  ;;  %v2281_v60 = vrot.slane %v2280_v52, 1  ;;  %v2285_v61 = vrot.slane %v2284_v53, 2  ;;  %v2289_v62 = vrot.slane %v2111_v54, 4  ;;  %719 = vmatprep.mubr.f32.mxu0 %v4740_v5 }
  0xfc   :  { %v5325_v1 = vsel %vm3669_vm1, %v4038_v57, %v4036_v42  ;;  %v5330_v2 = vsel %vm3669_vm1, %v4039_v58, %v4037_v43  ;;  %v2112_v6 = vadd.f32 %v1984_v55, %v5153_v12  ;;  %v1857_v7 = vmax.f32 %v1729_v45, 0.0  ;;  %4487 = vmatmul.mubr.msk.f32.gmra.mxu1 %vm90_vm0, %v79_v46  ;;  %p4726_p4 = pnand %p4725_p3, %p4719_p0 }
  0xfd   :  { %v4280_v10 = vunpack.c.l.b16 %v5316_v59  ;;  %v4281_v11 = vunpack.c.h.b16 %v5316_v59  ;;  %v2282_v13 = vmax.f32 %v2280_v52, %v2281_v60  ;;  %v2286_v42 = vmax.f32 %v2284_v53, %v2285_v61  ;;  %1168 = vmatprep.mubr.f32.mxu1 %v4740_v5  ;;  %v846_v61 = vpop.f32.mrf.mxu1 }
  0xfe   :  { %v2290_v33 = vmax.f32 %v2111_v54, %v2289_v62  ;;  %v2295_v15 = vrot.slane %v2112_v6, 4  ;;  %v1985_v43 = vmul.f32 %v1857_v7, %v5139_v0  ;;  %v1209_v16 = vmax.f32 %v391_v50, 0.0  ;;  %4424 = vmatmul.mubr.msk.f32.gmra.mxu0 %vm90_vm0, %v80_v63  ;;  %v399_v50 = vpop.f32.mrf.mxu0 }
  0xff   :  { %v2287_v17 = vrot.slane %v2286_v42, 1  ;;  %v1208_v18 = vmax.f32 %v836_v51, 0.0  ;;  %v1602_v19 = vadd.f32 %v5153_v12, %v1463_v39  ;;  %v1210_v20 = vmax.f32 %v393_v8, 0.0  ;;  %725 = vmatprep.mubr.f32.mxu0 %v4740_v5 }
 0x100   :  { %v2291_v23 = vrot.slane %v2290_v33, 2  ;;  %v2296_v24 = vmax.f32 %v2112_v6, %v2295_v15  ;;  %v2113_v25 = vadd.f32 %v1985_v43, %v5145_v4  ;;  %v1464_v26 = vmul.f32 %v5139_v0, %v1209_v16  ;;  %4488 = vmatmul.mubr.msk.f32.gmra.mxu1 %vm90_vm0, %v80_v63  ;;  %v403_v15 = vpop.f32.mrf.mxu0 }
 0x101   :  { %v2288_v28 = vmax.f32 %v2286_v42, %v2287_v17  ;;  %v1730_v29 = vadd.f32 %v1602_v19, %v1208_v18  ;;  %v1465_v30 = vmul.f32 %v5143_v3, %v1210_v20  ;;  %v1211_v31 = vmax.f32 %v840_v9, 0.0  ;;  %1174 = vmatprep.mubr.f32.mxu1 %v4740_v5  ;;  %v848_v20 = vpop.f32.mrf.mxu1 }
 0x102   :  { %v2292_v32 = vmax.f32 %v2290_v33, %v2291_v23  ;;  %v2297_v34 = vrot.slane %v2296_v24, 2  ;;  %v2301_v35 = vrot.slane %v2113_v25, 4  ;;  %v1603_v37 = vadd.f32 %v5145_v4, %v1464_v26  ;;  %4425 = vmatmul.mubr.msk.f32.gmra.mxu0 %vm90_vm0, %v81_v22 }
 0x103   :  { %v4606_v38 = vpack.c.bf16 %v2288_v28, %v2282_v13  ;;  %v1858_v39 = vmax.f32 %v1730_v29, 0.0  ;;  %v1213_v40 = vmax.f32 %v397_v14, 0.0  ;;  %v1212_v41 = vmax.f32 %v842_v27, 0.0  ;;  %v405_v29 = vpop.f32.mrf.mxu0 }
 0x104   :  { %v2293_v44 = vrot.slane %v2292_v32, 1  ;;  %v2298_v45 = vmax.f32 %v2296_v24, %v2297_v34  ;;  %v2302_v46 = vmax.f32 %v2113_v25, %v2301_v35  ;;  %v1731_v47 = vadd.f32 %v1603_v37, %v1211_v31  ;;  %4489 = vmatmul.mubr.msk.f32.gmra.mxu1 %vm90_vm0, %v81_v22 }
 0x105   :  { %v3549_v36 = vunpack.c.l.b16 %v4606_v38  ;;  %v3550_v5 = vunpack.c.h.b16 %v4606_v38  ;;  %v1986_v48 = vmul.f32 %v1858_v39, %v5143_v3  ;;  %v1466_v49 = vmul.f32 %v5139_v0, %v1213_v40  ;;  %v852_v40 = vpop.f32.mrf.mxu1 }
 0x106   :  { %v2294_v51 = vmax.f32 %v2292_v32, %v2293_v44  ;;  %v2299_v52 = vrot.slane %v2298_v45, 1  ;;  %v2303_v53 = vrot.slane %v2302_v46, 2  ;;  %v1859_v54 = vmax.f32 %v1731_v47, 0.0 }
 0x107   :  { %v3676_v55 = vsel %vm3675_vm4, %v3549_v36, %v5310_v56  ;;  %v3686_v57 = vsel %vm3675_vm4, %v3550_v5, %v5313_v21  ;;  %v2114_v58 = vadd.f32 %v1986_v48, %v5153_v12  ;;  %v1604_v60 = vadd.f32 %v5153_v12, %v1465_v30 }
 0x108   :  { %v5360_v62 = vmax.f32 %v2282_v13, %v2294_v51  ;;  %v2300_v63 = vmax.f32 %v2298_v45, %v2299_v52  ;;  %v2304_v6 = vmax.f32 %v2302_v46, %v2303_v53  ;;  %v1987_v7 = vmul.f32 %v1859_v54, %v5139_v0 }
 0x109   :  { %v2307_v8 = vrot.slane %v2114_v58, 4  ;;  %v1732_v9 = vadd.f32 %v1604_v60, %v1212_v41  ;;  %v1214_v42 = vmax.f32 %v399_v50, 0.0  ;;  %v1215_v33 = vmax.f32 %v846_v61, 0.0 }
 0x10a   :  { %v5363_v56 = vmax.f32 %v2288_v28, %v2300_v63  ;;  %v4607_v43 = vpack.c.bf16 %v2300_v63, %v2294_v51  ;;  %v2305_v21 = vrot.slane %v2304_v6, 1  ;;  %v2115_v16 = vadd.f32 %v1987_v7, %v5145_v4 }
 0x10b   :  { %v2308_v17 = vmax.f32 %v2114_v58, %v2307_v8  ;;  %v1860_v18 = vmax.f32 %v1732_v9, 0.0  ;;  %v1467_v13 = vmul.f32 %v5143_v3, %v1214_v42  ;;  %v1605_v19 = vadd.f32 %v5145_v4, %v1466_v49  ;;  %v409_v49 = vpop.f32.mrf.mxu0 }
 0x10c   :  { %v3551_v22 = vunpack.c.l.b16 %v4607_v43  ;;  %v3552_v23 = vunpack.c.h.b16 %v4607_v43  ;;  %v4668_v24 = vpack.c.bf16 %v5363_v56, %v5360_v62  ;;  %v2306_v25 = vmax.f32 %v2304_v6, %v2305_v21 }
 0x10d   :  { %v2309_v26 = vrot.slane %v2308_v17, 2  ;;  %v2313_v14 = vrot.slane %v2115_v16, 4  ;;  %v1988_v27 = vmul.f32 %v1860_v18, %v5143_v3  ;;  %v1733_v28 = vadd.f32 %v1605_v19, %v1215_v33 }
 0x10e   :  { %v3678_v30 = vsel %vm3677_vm5, %v3551_v22, %v3676_v55  ;;  %v3687_v31 = vsel %vm3677_vm5, %v3552_v23, %v3686_v57  ;;  %v4040_v32 = vunpack.c.l.b16 %v4668_v24  ;;  %v4041_v34 = vunpack.c.h.b16 %v4668_v24  ;;  %v854_v57 = vpop.f32.mrf.mxu1  ;;  %v411_v23 = vpop.f32.mrf.mxu0 }
 0x10f   :  { %v2310_v35 = vmax.f32 %v2308_v17, %v2309_v26  ;;  %v2314_v37 = vmax.f32 %v2115_v16, %v2313_v14  ;;  %v2116_v38 = vadd.f32 %v1988_v27, %v5153_v12  ;;  %v1861_v39 = vmax.f32 %v1733_v28, 0.0 }
 0x110   :  { %v5376_v41 = vsel %vm3671_vm2, %v4040_v32, %v5325_v1  ;;  %v5380_v44 = vsel %vm3671_vm2, %v4041_v34, %v5330_v2  ;;  %v1217_v45 = vmax.f32 %v403_v15, 0.0  ;;  %v1216_v46 = vmax.f32 %v848_v20, 0.0 }
 0x111   :  { %v2311_v47 = vrot.slane %v2310_v35, 1  ;;  %v2315_v36 = vrot.slane %v2314_v37, 2  ;;  %v2319_v5 = vrot.slane %v2116_v38, 4  ;;  %v1989_v48 = vmul.f32 %v1861_v39, %v5139_v0 }
 0x112   :  { %v1468_v50 = vmul.f32 %v5139_v0, %v1217_v45  ;;  %v1606_v51 = vadd.f32 %v5153_v12, %v1467_v13  ;;  %v1218_v52 = vmax.f32 %v405_v29, 0.0  ;;  %v1219_v53 = vmax.f32 %v852_v40, 0.0 }
 0x113   :  { %v2312_v1 = vmax.f32 %v2310_v35, %v2311_v47  ;;  %v2316_v54 = vmax.f32 %v2314_v37, %v2315_v36  ;;  %v2320_v55 = vmax.f32 %v2116_v38, %v2319_v5  ;;  %v2117_v2 = vadd.f32 %v1989_v48, %v5145_v4  ;;  %v858_v35 = vpop.f32.mrf.mxu1  ;;  %v415_v48 = vpop.f32.mrf.mxu0 }
 0x114   :  { %v1734_v58 = vadd.f32 %v1606_v51, %v1216_v46  ;;  %v1469_v60 = vmul.f32 %v5143_v3, %v1218_v52  ;;  %v1607_v61 = vadd.f32 %v5145_v4, %v1468_v50  ;;  %v1221_v63 = vmax.f32 %v409_v49, 0.0 }
 0x115   :  { %v4608_v6 = vpack.c.bf16 %v2312_v1, %v2306_v25  ;;  %v2317_v7 = vrot.slane %v2316_v54, 1  ;;  %v2321_v8 = vrot.slane %v2320_v55, 2  ;;  %v2325_v9 = vrot.slane %v2117_v2, 4 }
 0x116   :  { %v1862_v42 = vmax.f32 %v1734_v58, 0.0  ;;  %v1735_v33 = vadd.f32 %v1607_v61, %v1219_v53  ;;  %v1470_v15 = vmul.f32 %v5139_v0, %v1221_v63  ;;  %v1220_v43 = vmax.f32 %v854_v57, 0.0 }
 0x117   :  { %v3553_v21 = vunpack.c.l.b16 %v4608_v6  ;;  %v3554_v16 = vunpack.c.h.b16 %v4608_v6  ;;  %v2318_v17 = vmax.f32 %v2316_v54, %v2317_v7  ;;  %v2322_v18 = vmax.f32 %v2320_v55, %v2321_v8  ;;  %v417_v8 = vpop.f32.mrf.mxu0 }
 0x118   :  { %v2326_v13 = vmax.f32 %v2117_v2, %v2325_v9  ;;  %v1990_v19 = vmul.f32 %v1862_v42, %v5143_v3  ;;  %v1863_v20 = vmax.f32 %v1735_v33, 0.0  ;;  %v1608_v22 = vadd.f32 %v5153_v12, %v1469_v60  ;;  %v860_v60 = vpop.f32.mrf.mxu1 }
 0x119   :  { %v3680_v24 = vsel %vm3679_vm6, %v3553_v21, %v3678_v30  ;;  %v3688_v26 = vsel %vm3679_vm6, %v3554_v16, %v3687_v31  ;;  %v3003_v14 = vmax.f32 %v2306_v25, %v2318_v17  ;;  %v2323_v27 = vrot.slane %v2322_v18, 1 }
 0x11a   :  { %v2327_v28 = vrot.slane %v2326_v13, 2  ;;  %v2118_v29 = vadd.f32 %v1990_v19, %v5153_v12  ;;  %v1991_v32 = vmul.f32 %v1863_v20, %v5139_v0  ;;  %v1736_v34 = vadd.f32 %v1608_v22, %v1220_v43  ;;  %v864_v20 = vpop.f32.mrf.mxu1 }
 0x11b   :  { %v3063_v37 = vmax.f32 %v5360_v62, %v3003_v14  ;;  %v2324_v38 = vmax.f32 %v2322_v18, %v2323_v27  ;;  %v1222_v39 = vmax.f32 %v411_v23, 0.0  ;;  %v1223_v40 = vmax.f32 %v858_v35, 0.0 }
 0x11c   :  { %v2328_v45 = vmax.f32 %v2326_v13, %v2327_v28  ;;  %v2331_v46 = vrot.slane %v2118_v29, 4  ;;  %v2119_v30 = vadd.f32 %v1991_v32, %v5145_v4  ;;  %v1864_v47 = vmax.f32 %v1736_v34, 0.0 }
 0x11d   :  { %v3004_v31 = vmax.f32 %v2312_v1, %v2324_v38  ;;  %v4609_v25 = vpack.c.bf16 %v2324_v38, %v2318_v17  ;;  %v1471_v36 = vmul.f32 %v5143_v3, %v1222_v39  ;;  %v1609_v5 = vadd.f32 %v5145_v4, %v1470_v15 }
 0x11e   :  { %v2329_v49 = vrot.slane %v2328_v45, 1  ;;  %v2332_v50 = vmax.f32 %v2118_v29, %v2331_v46  ;;  %v2337_v51 = vrot.slane %v2119_v30, 4  ;;  %v1992_v62 = vmul.f32 %v1864_v47, %v5143_v3 }
 0x11f   :  { %v3064_v52 = vmax.f32 %v5363_v56, %v3004_v31  ;;  %v3555_v53 = vunpack.c.l.b16 %v4609_v25  ;;  %v3556_v54 = vunpack.c.h.b16 %v4609_v25  ;;  %v4669_v55 = vpack.c.bf16 %v3004_v31, %v3003_v14  ;;  %v421_v14 = vpop.f32.mrf.mxu0 }
 0x120   :  { %v2330_v2 = vmax.f32 %v2328_v45, %v2329_v49  ;;  %v2333_v57 = vrot.slane %v2332_v50, 2  ;;  %v2338_v58 = vmax.f32 %v2119_v30, %v2337_v51  ;;  %v2120_v1 = vadd.f32 %v1992_v62, %v5153_v12 }
 0x121   :  { %v3682_v61 = vsel %vm3681_vm7, %v3555_v53, %v3680_v24  ;;  %v3689_v63 = vsel %vm3681_vm7, %v3556_v54, %v3688_v26  ;;  %v4042_v6 = vunpack.c.l.b16 %v4669_v55  ;;  %v4043_v7 = vunpack.c.h.b16 %v4669_v55  ;;  %v423_v30 = vpop.f32.mrf.mxu0 }
 0x122   :  { %v3788_v9 = vpack.c.b16 %v3689_v63, %v3682_v61  ;;  %v4699_v42 = vpack.c.bf16 %v3064_v52, %v3063_v37  ;;  %v2334_v33 = vmax.f32 %v2332_v50, %v2333_v57  ;;  %v2339_v56 = vrot.slane %v2338_v58, 2 }
 0x123   :  { %v5406_v15 = vsel %vm3673_vm3, %v4042_v6, %v5376_v41  ;;  %v5410_v43 = vsel %vm3673_vm3, %v4043_v7, %v5380_v44  ;;  %v2343_v21 = vrot.slane %v2120_v1, 4  ;;  %v1737_v16 = vadd.f32 %v1609_v5, %v1223_v40 }
 0x124   :  { %3804 = vst [vmem:[#allocation2] sm:$0xff] %v3788_v9  ;;  %v4282_v17 = vunpack.c.l.b16 %v4699_v42  ;;  %v4283_v18 = vunpack.c.h.b16 %v4699_v42  ;;  %v2335_v13 = vrot.slane %v2334_v33, 1  ;;  %v2340_v19 = vmax.f32 %v2338_v58, %v2339_v56 }
 0x125   :  { %v2344_v22 = vmax.f32 %v2120_v1, %v2343_v21  ;;  %v1865_v23 = vmax.f32 %v1737_v16, 0.0  ;;  %v1225_v24 = vmax.f32 %v415_v48, 0.0  ;;  %v1224_v26 = vmax.f32 %v860_v60, 0.0  ;;  %v427_v60 = vpop.f32.mrf.mxu0 }
 0x126   :  { %v5415_v41 = vsel %vm3669_vm1, %v4282_v17, %v4280_v10  ;;  %v5420_v44 = vsel %vm3669_vm1, %v4283_v18, %v4281_v11  ;;  %v2336_v27 = vmax.f32 %v2334_v33, %v2335_v13  ;;  %v2341_v28 = vrot.slane %v2340_v19, 1  ;;  %v866_v10 = vpop.f32.mrf.mxu1 }
 0x127   :  { %v2345_v29 = vrot.slane %v2344_v22, 2  ;;  %v1993_v32 = vmul.f32 %v1865_v23, %v5139_v0  ;;  %v1472_v34 = vmul.f32 %v5139_v0, %v1225_v24  ;;  %v1610_v35 = vadd.f32 %v5153_v12, %v1471_v36 }
 0x128   :  { %v4610_v37 = vpack.c.bf16 %v2336_v27, %v2330_v2  ;;  %v2342_v38 = vmax.f32 %v2340_v19, %v2341_v28  ;;  %v1226_v39 = vmax.f32 %v417_v8, 0.0  ;;  %v1227_v40 = vmax.f32 %v864_v20, 0.0  ;;  %v870_v54 = vpop.f32.mrf.mxu1 }
 0x129   :  { %v2346_v45 = vmax.f32 %v2344_v22, %v2345_v29  ;;  %v2121_v59 = vadd.f32 %v1993_v32, %v5145_v4  ;;  %v1738_v46 = vadd.f32 %v1610_v35, %v1224_v26  ;;  %v1611_v11 = vadd.f32 %v5145_v4, %v1472_v34  ;;  %v429_v32 = vpop.f32.mrf.mxu0 }
 0x12a   :  { %v3557_v47 = vunpack.c.l.b16 %v4610_v37  ;;  %v3558_v31 = vunpack.c.h.b16 %v4610_v37  ;;  %v5427_v25 = vmax.f32 %v2330_v2, %v2342_v38  ;;  %v1473_v5 = vmul.f32 %v5143_v3, %v1226_v39  ;;  %v872_v17 = vpop.f32.mrf.mxu1 }
 0x12b   :  { %v2347_v48 = vrot.slane %v2346_v45, 1  ;;  %v2349_v36 = vrot.slane %v2121_v59, 4  ;;  %v1866_v49 = vmax.f32 %v1738_v46, 0.0  ;;  %v1739_v50 = vadd.f32 %v1611_v11, %v1227_v40 }
 0x12c   :  { %v1229_v51 = vmax.f32 %v421_v14, 0.0  ;;  %v1228_v62 = vmax.f32 %v866_v10, 0.0  ;;  %v1612_v52 = vadd.f32 %v5153_v12, %v1473_v5  ;;  %v1230_v53 = vmax.f32 %v423_v30, 0.0  ;;  %v876_v39 = vpop.f32.mrf.mxu1 }
 0x12d   :  { %v2348_v55 = vmax.f32 %v2346_v45, %v2347_v48  ;;  %v2350_v57 = vmax.f32 %v2121_v59, %v2349_v36  ;;  %v1994_v58 = vmul.f32 %v1866_v49, %v5143_v3  ;;  %v1867_v1 = vmax.f32 %v1739_v50, 0.0  ;;  %v433_v49 = vpop.f32.mrf.mxu0 }
 0x12e   :  { %v1474_v2 = vmul.f32 %v5139_v0, %v1229_v51  ;;  %v1740_v61 = vadd.f32 %v1612_v52, %v1228_v62  ;;  %v1475_v63 = vmul.f32 %v5143_v3, %v1230_v53  ;;  %v1231_v6 = vmax.f32 %v870_v54, 0.0 }
 0x12f   :  { %v5434_v7 = vmax.f32 %v2336_v27, %v2348_v55  ;;  %v4611_v8 = vpack.c.bf16 %v2348_v55, %v2342_v38  ;;  %v2351_v9 = vrot.slane %v2350_v57, 2  ;;  %v2122_v42 = vadd.f32 %v1994_v58, %v5153_v12 }
 0x130   :  { %v1995_v33 = vmul.f32 %v1867_v1, %v5139_v0  ;;  %v1868_v56 = vmax.f32 %v1740_v61, 0.0  ;;  %v1613_v21 = vadd.f32 %v5145_v4, %v1474_v2  ;;  %v1233_v16 = vmax.f32 %v427_v60, 0.0 }
 0x131   :  { %v3559_v18 = vunpack.c.l.b16 %v4611_v8  ;;  %v3560_v13 = vunpack.c.h.b16 %v4611_v8  ;;  %v4670_v19 = vpack.c.bf16 %v5434_v7, %v5427_v25  ;;  %v2352_v20 = vmax.f32 %v2350_v57, %v2351_v9  ;;  %v435_v8 = vpop.f32.mrf.mxu0 }
 0x132   :  { %v2355_v22 = vrot.slane %v2122_v42, 4  ;;  %v2123_v23 = vadd.f32 %v1995_v33, %v5145_v4  ;;  %v1996_v24 = vmul.f32 %v1868_v56, %v5143_v3  ;;  %v1741_v26 = vadd.f32 %v1613_v21, %v1231_v6 }
 0x133   :  { %v5444_v14 = vsel %vm3669_vm1, %v3559_v18, %v3557_v47  ;;  %v5447_v27 = vsel %vm3669_vm1, %v3560_v13, %v3558_v31  ;;  %v4044_v28 = vunpack.c.l.b16 %v4670_v19  ;;  %v4045_v29 = vunpack.c.h.b16 %v4670_v19 }
 0x134   :  { %v2353_v34 = vrot.slane %v2352_v20, 1  ;;  %v2356_v35 = vmax.f32 %v2122_v42, %v2355_v22  ;;  %v2361_v37 = vrot.slane %v2123_v23, 4  ;;  %v2124_v38 = vadd.f32 %v1996_v24, %v5153_v12 }
 0x135   :  { %v5452_v40 = vsel %vm3675_vm4, %v4044_v28, %v5406_v15  ;;  %v5456_v10 = vsel %vm3675_vm4, %v4045_v29, %v5410_v43  ;;  %v1869_v45 = vmax.f32 %v1741_v26, 0.0  ;;  %v1476_v59 = vmul.f32 %v5139_v0, %v1233_v16  ;;  %v878_v43 = vpop.f32.mrf.mxu1 }
 0x136   :  { %v2354_v46 = vmax.f32 %v2352_v20, %v2353_v34  ;;  %v2357_v11 = vrot.slane %v2356_v35, 2  ;;  %v2362_v30 = vmax.f32 %v2123_v23, %v2361_v37  ;;  %v2367_v47 = vrot.slane %v2124_v38, 4 }
 0x137   :  { %v1997_v31 = vmul.f32 %v1869_v45, %v5139_v0  ;;  %v1232_v5 = vmax.f32 %v872_v17, 0.0  ;;  %v1614_v48 = vadd.f32 %v5153_v12, %v1475_v63  ;;  %v1234_v36 = vmax.f32 %v429_v32, 0.0 }
 0x138   :  { %v2358_v15 = vmax.f32 %v2356_v35, %v2357_v11  ;;  %v2363_v50 = vrot.slane %v2362_v30, 2  ;;  %v2368_v51 = vmax.f32 %v2124_v38, %v2367_v47  ;;  %v1235_v62 = vmax.f32 %v876_v39, 0.0 }
 0x139   :  { %v2125_v52 = vadd.f32 %v1997_v31, %v5145_v4  ;;  %v1742_v53 = vadd.f32 %v1614_v48, %v1232_v5  ;;  %v1477_v54 = vmul.f32 %v5143_v3, %v1234_v36  ;;  %v1615_v55 = vadd.f32 %v5145_v4, %v1476_v59 }
 0x13a   :  { %v2359_v57 = vrot.slane %v2358_v15, 1  ;;  %v2364_v58 = vmax.f32 %v2362_v30, %v2363_v50  ;;  %v2369_v1 = vrot.slane %v2368_v51, 2  ;;  %v1237_v60 = vmax.f32 %v433_v49, 0.0 }
 0x13b   :  { %v2373_v2 = vrot.slane %v2125_v52, 4  ;;  %v1870_v61 = vmax.f32 %v1742_v53, 0.0  ;;  %v1743_v63 = vadd.f32 %v1615_v55, %v1235_v62  ;;  %v1236_v6 = vmax.f32 %v878_v43, 0.0  ;;  %v439_v62 = vpop.f32.mrf.mxu0 }
 0x13c   :  { %v2360_v9 = vmax.f32 %v2358_v15, %v2359_v57  ;;  %v2365_v42 = vrot.slane %v2364_v58, 1  ;;  %v2370_v33 = vmax.f32 %v2368_v51, %v2369_v1  ;;  %v1478_v56 = vmul.f32 %v5139_v0, %v1237_v60 }
 0x13d   :  { %v2374_v21 = vmax.f32 %v2125_v52, %v2373_v2  ;;  %v1998_v16 = vmul.f32 %v1870_v61, %v5143_v3  ;;  %v1871_v17 = vmax.f32 %v1743_v63, 0.0  ;;  %v1616_v18 = vadd.f32 %v5153_v12, %v1477_v54 }
 0x13e   :  { %v4612_v13 = vpack.c.bf16 %v2360_v9, %v2354_v46  ;;  %v2366_v19 = vmax.f32 %v2364_v58, %v2365_v42  ;;  %v2371_v20 = vrot.slane %v2370_v33, 1  ;;  %v1238_v22 = vmax.f32 %v435_v8, 0.0  ;;  %v441_v8 = vpop.f32.mrf.mxu0 }
 0x13f   :  { %v2375_v23 = vrot.slane %v2374_v21, 2  ;;  %v2126_v24 = vadd.f32 %v1998_v16, %v5153_v12  ;;  %v1999_v26 = vmul.f32 %v1871_v17, %v5139_v0  ;;  %v1744_v28 = vadd.f32 %v1616_v18, %v1236_v6 }
 0x140   :  { %v3561_v29 = vunpack.c.l.b16 %v4612_v13  ;;  %v3562_v32 = vunpack.c.h.b16 %v4612_v13  ;;  %v3007_v34 = vmax.f32 %v2354_v46, %v2366_v19  ;;  %v2372_v35 = vmax.f32 %v2370_v33, %v2371_v20  ;;  %v882_v46 = vpop.f32.mrf.mxu1 }
 0x141   :  { %v2376_v37 = vmax.f32 %v2374_v21, %v2375_v23  ;;  %v2379_v38 = vrot.slane %v2126_v24, 4  ;;  %v2127_v39 = vadd.f32 %v1999_v26, %v5145_v4  ;;  %v1872_v45 = vmax.f32 %v1744_v28, 0.0 }
 0x142   :  { %v3691_v59 = vsel %vm3671_vm2, %v3561_v29, %v5444_v14  ;;  %v3698_v11 = vsel %vm3671_vm2, %v3562_v32, %v5447_v27  ;;  %v3065_v30 = vmax.f32 %v5427_v25, %v3007_v34  ;;  %v3008_v47 = vmax.f32 %v2360_v9, %v2372_v35  ;;  %v884_v60 = vpop.f32.mrf.mxu1 }
 0x143   :  { %v4613_v31 = vpack.c.bf16 %v2372_v35, %v2366_v19  ;;  %v2377_v5 = vrot.slane %v2376_v37, 1  ;;  %v2380_v48 = vmax.f32 %v2126_v24, %v2379_v38  ;;  %v2385_v36 = vrot.slane %v2127_v39, 4 }
 0x144   :  { %v3066_v49 = vmax.f32 %v5434_v7, %v3008_v47  ;;  %v4671_v15 = vpack.c.bf16 %v3008_v47, %v3007_v34  ;;  %v2000_v50 = vmul.f32 %v1872_v45, %v5143_v3  ;;  %v1479_v51 = vmul.f32 %v5143_v3, %v1238_v22  ;;  %v888_v22 = vpop.f32.mrf.mxu1 }
 0x145   :  { %v3563_v14 = vunpack.c.l.b16 %v4613_v31  ;;  %v3564_v43 = vunpack.c.h.b16 %v4613_v31  ;;  %v2378_v52 = vmax.f32 %v2376_v37, %v2377_v5  ;;  %v2381_v27 = vrot.slane %v2380_v48, 2 }
 0x146   :  { %v4046_v53 = vunpack.c.l.b16 %v4671_v15  ;;  %v4047_v25 = vunpack.c.h.b16 %v4671_v15  ;;  %v4700_v54 = vpack.c.bf16 %v3066_v49, %v3065_v30  ;;  %v2386_v55 = vmax.f32 %v2127_v39, %v2385_v36  ;;  %v890_v30 = vpop.f32.mrf.mxu1 }
 0x147   :  { %v3692_v57 = vsel %vm3673_vm3, %v3563_v14, %v3691_v59  ;;  %v3699_v58 = vsel %vm3673_vm3, %v3564_v43, %v3698_v11  ;;  %v2382_v1 = vmax.f32 %v2380_v48, %v2381_v27  ;;  %v2128_v7 = vadd.f32 %v2000_v50, %v5153_v12 }
 0x148   :  { %v5483_v2 = vsel %vm3677_vm5, %v4046_v53, %v5452_v40  ;;  %v5487_v61 = vsel %vm3677_vm5, %v4047_v25, %v5456_v10  ;;  %v4284_v63 = vunpack.c.l.b16 %v4700_v54  ;;  %v4285_v6 = vunpack.c.h.b16 %v4700_v54 }
 0x149   :  { %v2383_v9 = vrot.slane %v2382_v1, 1  ;;  %v2387_v42 = vrot.slane %v2386_v55, 2  ;;  %v2391_v33 = vrot.slane %v2128_v7, 4  ;;  %v1239_v21 = vmax.f32 %v882_v46, 0.0 }
 0x14a   :  { %v5491_v16 = vsel %vm3671_vm2, %v4284_v63, %v5415_v41  ;;  %v5495_v17 = vsel %vm3671_vm2, %v4285_v6, %v5420_v44  ;;  %v1617_v40 = vadd.f32 %v5145_v4, %v1478_v56  ;;  %v1241_v18 = vmax.f32 %v439_v62, 0.0  ;;  %v445_v41 = vpop.f32.mrf.mxu0 }
 0x14b   :  { %v2384_v10 = vmax.f32 %v2382_v1, %v2383_v9  ;;  %v2388_v13 = vmax.f32 %v2386_v55, %v2387_v42  ;;  %v2392_v19 = vmax.f32 %v2128_v7, %v2391_v33  ;;  %v1240_v20 = vmax.f32 %v884_v60, 0.0  ;;  %v894_v55 = vpop.f32.mrf.mxu1 }
 0x14c   :  { %v1745_v23 = vadd.f32 %v1617_v40, %v1239_v21  ;;  %v1480_v24 = vmul.f32 %v5139_v0, %v1241_v18  ;;  %v1618_v26 = vadd.f32 %v5153_v12, %v1479_v51  ;;  %v1242_v28 = vmax.f32 %v441_v8, 0.0  ;;  %v447_v36 = vpop.f32.mrf.mxu0 }
 0x14d   :  { %v4614_v29 = vpack.c.bf16 %v2384_v10, %v2378_v52  ;;  %v2389_v32 = vrot.slane %v2388_v13, 1  ;;  %v2393_v34 = vrot.slane %v2392_v19, 2  ;;  %v1243_v44 = vmax.f32 %v888_v22, 0.0 }
 0x14e   :  { %v1873_v35 = vmax.f32 %v1745_v23, 0.0  ;;  %v1746_v37 = vadd.f32 %v1618_v26, %v1240_v20  ;;  %v1481_v56 = vmul.f32 %v5143_v3, %v1242_v28  ;;  %v1619_v38 = vadd.f32 %v5145_v4, %v1480_v24  ;;  %v451_v21 = vpop.f32.mrf.mxu0  ;;  %v896_v24 = vpop.f32.mrf.mxu1 }
 0x14f   :  { %v3565_v39 = vunpack.c.l.b16 %v4614_v29  ;;  %v3566_v45 = vunpack.c.h.b16 %v4614_v29  ;;  %v2390_v59 = vmax.f32 %v2388_v13, %v2389_v32  ;;  %v2394_v11 = vmax.f32 %v2392_v19, %v2393_v34 }
 0x150   :  { %v2001_v47 = vmul.f32 %v1873_v35, %v5139_v0  ;;  %v1874_v31 = vmax.f32 %v1746_v37, 0.0  ;;  %v1747_v5 = vadd.f32 %v1619_v38, %v1243_v44  ;;  %v1245_v48 = vmax.f32 %v445_v41, 0.0  ;;  %v453_v37 = vpop.f32.mrf.mxu0 }
 0x151   :  { %v3693_v46 = vsel %vm3675_vm4, %v3565_v39, %v3692_v57  ;;  %v3700_v49 = vsel %vm3675_vm4, %v3566_v45, %v3699_v58  ;;  %v5505_v15 = vmax.f32 %v2378_v52, %v2390_v59  ;;  %v2395_v50 = vrot.slane %v2394_v11, 1 }
 0x152   :  { %v2129_v51 = vadd.f32 %v2001_v47, %v5145_v4  ;;  %v2002_v62 = vmul.f32 %v1874_v31, %v5143_v3  ;;  %v1875_v14 = vmax.f32 %v1747_v5, 0.0  ;;  %v1482_v43 = vmul.f32 %v5139_v0, %v1245_v48  ;;  %v900_v31 = vpop.f32.mrf.mxu1 }
 0x153   :  { %v2396_v27 = vmax.f32 %v2394_v11, %v2395_v50  ;;  %v1244_v53 = vmax.f32 %v890_v30, 0.0  ;;  %v1620_v25 = vadd.f32 %v5153_v12, %v1481_v56  ;;  %v1246_v54 = vmax.f32 %v447_v36, 0.0 }
 0x154   :  { %v2397_v1 = vrot.slane %v2129_v51, 4  ;;  %v2130_v57 = vadd.f32 %v2002_v62, %v5153_v12  ;;  %v2003_v52 = vmul.f32 %v1875_v14, %v5139_v0  ;;  %v1247_v58 = vmax.f32 %v894_v55, 0.0 }
 0x155   :  { %v5513_v7 = vmax.f32 %v2384_v10, %v2396_v27  ;;  %v4615_v60 = vpack.c.bf16 %v2396_v27, %v2390_v59  ;;  %v1748_v63 = vadd.f32 %v1620_v25, %v1244_v53  ;;  %v1483_v6 = vmul.f32 %v5143_v3, %v1246_v54 }
 0x156   :  { %v2398_v8 = vmax.f32 %v2129_v51, %v2397_v1  ;;  %v2403_v9 = vrot.slane %v2130_v57, 4  ;;  %v2131_v42 = vadd.f32 %v2003_v52, %v5145_v4  ;;  %v1621_v33 = vadd.f32 %v5145_v4, %v1482_v43  ;;  %v457_v51 = vpop.f32.mrf.mxu0  ;;  %v902_v1 = vpop.f32.mrf.mxu1 }
 0x157   :  { %v3567_v40 = vunpack.c.l.b16 %v4615_v60  ;;  %v3568_v18 = vunpack.c.h.b16 %v4615_v60  ;;  %v4672_v13 = vpack.c.bf16 %v5513_v7, %v5505_v15  ;;  %v1876_v19 = vmax.f32 %v1748_v63, 0.0 }
 0x158   :  { %v2399_v20 = vrot.slane %v2398_v8, 2  ;;  %v2404_v10 = vmax.f32 %v2130_v57, %v2403_v9  ;;  %v2409_v22 = vrot.slane %v2131_v42, 4  ;;  %v1749_v23 = vadd.f32 %v1621_v33, %v1247_v58 }
 0x159   :  { %v3694_v26 = vsel %vm3677_vm5, %v3567_v40, %v3693_v46  ;;  %v3701_v28 = vsel %vm3677_vm5, %v3568_v18, %v3700_v49  ;;  %v4048_v41 = vunpack.c.l.b16 %v4672_v13  ;;  %v4049_v29 = vunpack.c.h.b16 %v4672_v13 }
 0x15a   :  { %v2400_v32 = vmax.f32 %v2398_v8, %v2399_v20  ;;  %v2405_v34 = vrot.slane %v2404_v10, 2  ;;  %v2410_v44 = vmax.f32 %v2131_v42, %v2409_v22  ;;  %v2004_v35 = vmul.f32 %v1876_v19, %v5143_v3 }
 0x15b   :  { %v5525_v56 = vsel %vm3679_vm6, %v4048_v41, %v5483_v2  ;;  %v5529_v38 = vsel %vm3679_vm6, %v4049_v29, %v5487_v61  ;;  %v1877_v39 = vmax.f32 %v1749_v23, 0.0  ;;  %v1249_v45 = vmax.f32 %v451_v21, 0.0  ;;  %v459_v41 = vpop.f32.mrf.mxu0 }
 0x15c   :  { %v2401_v59 = vrot.slane %v2400_v32, 1  ;;  %v2406_v11 = vmax.f32 %v2404_v10, %v2405_v34  ;;  %v2411_v30 = vrot.slane %v2410_v44, 2  ;;  %v2132_v47 = vadd.f32 %v2004_v35, %v5153_v12 }
 0x15d   :  { %v2005_v5 = vmul.f32 %v1877_v39, %v5139_v0  ;;  %v1484_v48 = vmul.f32 %v5139_v0, %v1249_v45  ;;  %v1248_v36 = vmax.f32 %v896_v24, 0.0  ;;  %v1622_v2 = vadd.f32 %v5153_v12, %v1483_v6 }
 0x15e   :  { %v2402_v46 = vmax.f32 %v2400_v32, %v2401_v59  ;;  %v2407_v49 = vrot.slane %v2406_v11, 1  ;;  %v2412_v50 = vmax.f32 %v2410_v44, %v2411_v30  ;;  %v2415_v61 = vrot.slane %v2132_v47, 4  ;;  %v906_v59 = vpop.f32.mrf.mxu1 }
 0x15f   :  { %v2133_v62 = vadd.f32 %v2005_v5, %v5145_v4  ;;  %v1750_v14 = vadd.f32 %v1622_v2, %v1248_v36  ;;  %v1250_v43 = vmax.f32 %v453_v37, 0.0  ;;  %v1251_v27 = vmax.f32 %v900_v31, 0.0 }
 0x160   :  { %v2408_v53 = vmax.f32 %v2406_v11, %v2407_v49  ;;  %v2413_v25 = vrot.slane %v2412_v50, 1  ;;  %v2416_v54 = vmax.f32 %v2132_v47, %v2415_v61  ;;  %v1623_v55 = vadd.f32 %v5145_v4, %v1484_v48 }
 0x161   :  { %v2421_v57 = vrot.slane %v2133_v62, 4  ;;  %v1878_v52 = vmax.f32 %v1750_v14, 0.0  ;;  %v1485_v58 = vmul.f32 %v5143_v3, %v1250_v43  ;;  %v1253_v60 = vmax.f32 %v457_v51, 0.0  ;;  %v908_v14 = vpop.f32.mrf.mxu1 }
 0x162   :  { %v4616_v63 = vpack.c.bf16 %v2408_v53, %v2402_v46  ;;  %v2414_v6 = vmax.f32 %v2412_v50, %v2413_v25  ;;  %v2417_v8 = vrot.slane %v2416_v54, 2  ;;  %v1751_v9 = vadd.f32 %v1623_v55, %v1251_v27 }
 0x163   :  { %v2422_v42 = vmax.f32 %v2133_v62, %v2421_v57  ;;  %v2006_v33 = vmul.f32 %v1878_v52, %v5143_v3  ;;  %v1486_v21 = vmul.f32 %v5139_v0, %v1253_v60  ;;  %v1252_v40 = vmax.f32 %v902_v1, 0.0  ;;  %v463_v62 = vpop.f32.mrf.mxu0 }
 0x164   :  { %v3569_v18 = vunpack.c.l.b16 %v4616_v63  ;;  %v3570_v13 = vunpack.c.h.b16 %v4616_v63  ;;  %v3011_v19 = vmax.f32 %v2402_v46, %v2414_v6  ;;  %v2418_v20 = vmax.f32 %v2416_v54, %v2417_v8 }
 0x165   :  { %v2423_v10 = vrot.slane %v2422_v42, 2  ;;  %v2134_v22 = vadd.f32 %v2006_v33, %v5153_v12  ;;  %v1879_v23 = vmax.f32 %v1751_v9, 0.0  ;;  %v1624_v24 = vadd.f32 %v5153_v12, %v1485_v58  ;;  %v465_v33 = vpop.f32.mrf.mxu0 }
 0x166   :  { %v3695_v29 = vsel %vm3679_vm6, %v3569_v18, %v3694_v26  ;;  %v3702_v32 = vsel %vm3679_vm6, %v3570_v13, %v3701_v28  ;;  %v3067_v34 = vmax.f32 %v5505_v15, %v3011_v19  ;;  %v2419_v44 = vrot.slane %v2418_v20, 1 }
 0x167   :  { %v2424_v35 = vmax.f32 %v2422_v42, %v2423_v10  ;;  %v2427_v37 = vrot.slane %v2134_v22, 4  ;;  %v2007_v39 = vmul.f32 %v1879_v23, %v5139_v0  ;;  %v1752_v45 = vadd.f32 %v1624_v24, %v1252_v40 }
 0x168   :  { %v2420_v11 = vmax.f32 %v2418_v20, %v2419_v44  ;;  %v1254_v30 = vmax.f32 %v459_v41, 0.0  ;;  %v1255_v47 = vmax.f32 %v906_v59, 0.0  ;;  %v1625_v31 = vadd.f32 %v5145_v4, %v1486_v21  ;;  %v469_v44 = vpop.f32.mrf.mxu0 }
 0x169   :  { %v2425_v5 = vrot.slane %v2424_v35, 1  ;;  %v2428_v48 = vmax.f32 %v2134_v22, %v2427_v37  ;;  %v2135_v26 = vadd.f32 %v2007_v39, %v5145_v4  ;;  %v1880_v36 = vmax.f32 %v1752_v45, 0.0 }
 0x16a   :  { %v3012_v28 = vmax.f32 %v2408_v53, %v2420_v11  ;;  %v4617_v2 = vpack.c.bf16 %v2420_v11, %v2414_v6  ;;  %v1487_v15 = vmul.f32 %v5143_v3, %v1254_v30  ;;  %v1753_v46 = vadd.f32 %v1625_v31, %v1255_v47 }
 0x16b   :  { %v2426_v49 = vmax.f32 %v2424_v35, %v2425_v5  ;;  %v2429_v50 = vrot.slane %v2428_v48, 2  ;;  %v2433_v61 = vrot.slane %v2135_v26, 4  ;;  %v2008_v51 = vmul.f32 %v1880_v36, %v5143_v3 }
 0x16c   :  { %v3068_v43 = vmax.f32 %v5513_v7, %v3012_v28  ;;  %v3571_v27 = vunpack.c.l.b16 %v4617_v2  ;;  %v3572_v25 = vunpack.c.h.b16 %v4617_v2  ;;  %v4673_v54 = vpack.c.bf16 %v3012_v28, %v3011_v19  ;;  %v912_v7 = vpop.f32.mrf.mxu1 }
 0x16d   :  { %v2430_v55 = vmax.f32 %v2428_v48, %v2429_v50  ;;  %v2434_v1 = vmax.f32 %v2135_v26, %v2433_v61  ;;  %v2136_v53 = vadd.f32 %v2008_v51, %v5153_v12  ;;  %v1881_v57 = vmax.f32 %v1753_v46, 0.0  ;;  %v471_v46 = vpop.f32.mrf.mxu0 }
 0x16e   :  { %v3696_v52 = vsel %vm3681_vm7, %v3571_v27, %v3695_v29  ;;  %v3703_v58 = vsel %vm3681_vm7, %v3572_v25, %v3702_v32  ;;  %v4050_v60 = vunpack.c.l.b16 %v4673_v54  ;;  %v4051_v63 = vunpack.c.h.b16 %v4673_v54  ;;  %v914_v35 = vpop.f32.mrf.mxu1 }
 0x16f   :  { %v3789_v6 = vpack.c.b16 %v3703_v58, %v3696_v52  ;;  %v4701_v8 = vpack.c.bf16 %v3068_v43, %v3067_v34  ;;  %v2431_v9 = vrot.slane %v2430_v55, 1  ;;  %v2435_v42 = vrot.slane %v2434_v1, 2 }
 0x170   :  { %v4106_v21 = vsel %vm3681_vm7, %v4050_v60, %v5525_v56  ;;  %v4113_v40 = vsel %vm3681_vm7, %v4051_v63, %v5529_v38  ;;  %v2439_v18 = vrot.slane %v2136_v53, 4  ;;  %v2009_v13 = vmul.f32 %v1881_v57, %v5139_v0  ;;  %v918_v50 = vpop.f32.mrf.mxu1  ;;  %v475_v60 = vpop.f32.mrf.mxu0 }
 0x171   :  { %3805 = vst [vmem:[#allocation2 + $0x8] sm:$0xff] %v3789_v6  ;;  %v4156_v19 = vpack.c.b16 %v4113_v40, %v4106_v21  ;;  %v4286_v20 = vunpack.c.l.b16 %v4701_v8  ;;  %v4287_v10 = vunpack.c.h.b16 %v4701_v8  ;;  %v2432_v22 = vmax.f32 %v2430_v55, %v2431_v9 }
 0x172   :  { %v2436_v23 = vmax.f32 %v2434_v1, %v2435_v42  ;;  %v2440_v24 = vmax.f32 %v2136_v53, %v2439_v18  ;;  %v2137_v41 = vadd.f32 %v2009_v13, %v5145_v4  ;;  %v1257_v29 = vmax.f32 %v463_v62, 0.0  ;;  %v920_v63 = vpop.f32.mrf.mxu1 }
 0x173   :  { %4164 = vst [vmem:[#allocation2 + $0x20] sm:$0xff] %v4156_v19  ;;  %v5562_v56 = vsel %vm3673_vm3, %v4286_v20, %v5491_v16  ;;  %v5566_v38 = vsel %vm3673_vm3, %v4287_v10, %v5495_v17  ;;  %v4618_v32 = vpack.c.bf16 %v2432_v22, %v2426_v49  ;;  %v1256_v34 = vmax.f32 %v908_v14, 0.0 }
 0x174   :  { %v2437_v37 = vrot.slane %v2436_v23, 1  ;;  %v2441_v39 = vrot.slane %v2440_v24, 2  ;;  %v2445_v45 = vrot.slane %v2137_v41, 4  ;;  %v1488_v59 = vmul.f32 %v5139_v0, %v1257_v29  ;;  %v924_v29 = vpop.f32.mrf.mxu1 }
 0x175   :  { %v3573_v11 = vunpack.c.l.b16 %v4618_v32  ;;  %v3574_v30 = vunpack.c.h.b16 %v4618_v32  ;;  %v1626_v47 = vadd.f32 %v5153_v12, %v1487_v15  ;;  %v1258_v31 = vmax.f32 %v465_v33, 0.0 }
 0x176   :  { %v2438_v16 = vmax.f32 %v2436_v23, %v2437_v37  ;;  %v2442_v5 = vmax.f32 %v2440_v24, %v2441_v39  ;;  %v2446_v48 = vmax.f32 %v2137_v41, %v2445_v45  ;;  %v1259_v26 = vmax.f32 %v912_v7, 0.0  ;;  %v477_v41 = vpop.f32.mrf.mxu0 }
 0x177   :  { %v1754_v17 = vadd.f32 %v1626_v47, %v1256_v34  ;;  %v1489_v36 = vmul.f32 %v5143_v3, %v1258_v31  ;;  %v1627_v28 = vadd.f32 %v5145_v4, %v1488_v59  ;;  %v1261_v2 = vmax.f32 %v469_v44, 0.0 }
 0x178   :  { %v5572_v61 = vmax.f32 %v2426_v49, %v2438_v16  ;;  %v2443_v51 = vrot.slane %v2442_v5, 1  ;;  %v2447_v62 = vrot.slane %v2446_v48, 2  ;;  %v1260_v14 = vmax.f32 %v914_v35, 0.0 }
 0x179   :  { %v1882_v43 = vmax.f32 %v1754_v17, 0.0  ;;  %v1755_v15 = vadd.f32 %v1627_v28, %v1259_v26  ;;  %v1490_v27 = vmul.f32 %v5139_v0, %v1261_v2  ;;  %v1628_v25 = vadd.f32 %v5153_v12, %v1489_v36  ;;  %v481_v17 = vpop.f32.mrf.mxu0  ;;  %v926_v36 = vpop.f32.mrf.mxu1 }
 0x17a   :  { %v2444_v54 = vmax.f32 %v2442_v5, %v2443_v51  ;;  %v2448_v55 = vmax.f32 %v2446_v48, %v2447_v62  ;;  %v1262_v1 = vmax.f32 %v471_v46, 0.0  ;;  %v1263_v53 = vmax.f32 %v918_v50, 0.0 }
 0x17b   :  { %v2010_v57 = vmul.f32 %v1882_v43, %v5143_v3  ;;  %v1883_v52 = vmax.f32 %v1755_v15, 0.0  ;;  %v1756_v58 = vadd.f32 %v1628_v25, %v1260_v14  ;;  %v1629_v49 = vadd.f32 %v5145_v4, %v1490_v27 }
 0x17c   :  { %v5578_v6 = vmax.f32 %v2432_v22, %v2444_v54  ;;  %v4619_v8 = vpack.c.bf16 %v2444_v54, %v2438_v16  ;;  %v2449_v9 = vrot.slane %v2448_v55, 1  ;;  %v1491_v42 = vmul.f32 %v5143_v3, %v1262_v1 }
 0x17d   :  { %v2138_v33 = vadd.f32 %v2010_v57, %v5153_v12  ;;  %v2011_v7 = vmul.f32 %v1883_v52, %v5139_v0  ;;  %v1884_v21 = vmax.f32 %v1756_v58, 0.0  ;;  %v1757_v40 = vadd.f32 %v1629_v49, %v1263_v53  ;;  %v483_v52 = vpop.f32.mrf.mxu0 }
 0x17e   :  { %v3575_v18 = vunpack.c.l.b16 %v4619_v8  ;;  %v3576_v13 = vunpack.c.h.b16 %v4619_v8  ;;  %v5585_v19 = vpack.c.bf16 %v5578_v6, %v5572_v61  ;;  %v5587_v20 = vmax.f32 %v2448_v55, %v2449_v9 }
 0x17f   :  { %v2451_v10 = vrot.slane %v2138_v33, 4  ;;  %v2139_v22 = vadd.f32 %v2011_v7, %v5145_v4  ;;  %v2012_v23 = vmul.f32 %v1884_v21, %v5143_v3  ;;  %v1885_v24 = vmax.f32 %v1757_v40, 0.0 }
 0x180   :  { %v5592_v32 = vsel %vm3669_vm1, %v3575_v18, %v3573_v11  ;;  %v5595_v34 = vsel %vm3669_vm1, %v3576_v13, %v3574_v30  ;;  %v4052_v44 = vunpack.c.l.b16 %v5585_v19  ;;  %v4053_v35 = vunpack.c.h.b16 %v5585_v19 }
 0x181   :  { %v2452_v37 = vmax.f32 %v2138_v33, %v2451_v10  ;;  %v2457_v39 = vrot.slane %v2139_v22, 4  ;;  %v2140_v45 = vadd.f32 %v2012_v23, %v5153_v12  ;;  %v2013_v59 = vmul.f32 %v1885_v24, %v5139_v0 }
 0x182   :  { %v1265_v47 = vmax.f32 %v475_v60, 0.0  ;;  %v1264_v31 = vmax.f32 %v920_v63, 0.0  ;;  %v1630_v16 = vadd.f32 %v5153_v12, %v1491_v42  ;;  %v1266_v5 = vmax.f32 %v477_v41, 0.0 }
 0x183   :  { %v2453_v11 = vrot.slane %v2452_v37, 2  ;;  %v2458_v48 = vmax.f32 %v2139_v22, %v2457_v39  ;;  %v2463_v26 = vrot.slane %v2140_v45, 4  ;;  %v2141_v30 = vadd.f32 %v2013_v59, %v5145_v4 }
 0x184   :  { %v1492_v28 = vmul.f32 %v5139_v0, %v1265_v47  ;;  %v1758_v2 = vadd.f32 %v1630_v16, %v1264_v31  ;;  %v1493_v46 = vmul.f32 %v5143_v3, %v1266_v5  ;;  %v1267_v50 = vmax.f32 %v924_v29, 0.0 }
 0x185   :  { %v2454_v51 = vmax.f32 %v2452_v37, %v2453_v11  ;;  %v2459_v62 = vrot.slane %v2458_v48, 2  ;;  %v2464_v14 = vmax.f32 %v2140_v45, %v2463_v26  ;;  %v2469_v43 = vrot.slane %v2141_v30, 4 }
 0x186   :  { %v1886_v15 = vmax.f32 %v1758_v2, 0.0  ;;  %v1631_v27 = vadd.f32 %v5145_v4, %v1492_v28  ;;  %v1269_v25 = vmax.f32 %v481_v17, 0.0  ;;  %v1268_v54 = vmax.f32 %v926_v36, 0.0  ;;  %v930_v36 = vpop.f32.mrf.mxu1  ;;  %v487_v28 = vpop.f32.mrf.mxu0 }
 0x187   :  { %v2455_v55 = vrot.slane %v2454_v51, 1  ;;  %v2460_v1 = vmax.f32 %v2458_v48, %v2459_v62  ;;  %v2465_v53 = vrot.slane %v2464_v14, 2  ;;  %v2470_v57 = vmax.f32 %v2141_v30, %v2469_v43 }
 0x188   :  { %v2014_v58 = vmul.f32 %v1886_v15, %v5143_v3  ;;  %v1759_v49 = vadd.f32 %v1631_v27, %v1267_v50  ;;  %v1494_v60 = vmul.f32 %v5139_v0, %v1269_v25  ;;  %v1632_v63 = vadd.f32 %v5153_v12, %v1493_v46 }
 0x189   :  { %v2456_v8 = vmax.f32 %v2454_v51, %v2455_v55  ;;  %v2461_v9 = vrot.slane %v2460_v1, 1  ;;  %v2466_v42 = vmax.f32 %v2464_v14, %v2465_v53  ;;  %v2471_v33 = vrot.slane %v2470_v57, 2  ;;  %v489_v53 = vpop.f32.mrf.mxu0 }
 0x18a   :  { %v2142_v7 = vadd.f32 %v2014_v58, %v5153_v12  ;;  %v1887_v21 = vmax.f32 %v1759_v49, 0.0  ;;  %v1760_v40 = vadd.f32 %v1632_v63, %v1268_v54  ;;  %v1270_v18 = vmax.f32 %v483_v52, 0.0 }
 0x18b   :  { %v4620_v13 = vpack.c.bf16 %v2456_v8, %v5587_v20  ;;  %v2462_v10 = vmax.f32 %v2460_v1, %v2461_v9  ;;  %v2467_v22 = vrot.slane %v2466_v42, 1  ;;  %v2472_v23 = vmax.f32 %v2470_v57, %v2471_v33  ;;  %v932_v1 = vpop.f32.mrf.mxu1 }
 0x18c   :  { %v2475_v24 = vrot.slane %v2142_v7, 4  ;;  %v2015_v41 = vmul.f32 %v1887_v21, %v5139_v0  ;;  %v1888_v29 = vmax.f32 %v1760_v40, 0.0  ;;  %v1495_v37 = vmul.f32 %v5143_v3, %v1270_v18 }
 0x18d   :  { %v3577_v39 = vunpack.c.l.b16 %v4620_v13  ;;  %v3578_v45 = vunpack.c.h.b16 %v4620_v13  ;;  %v3015_v59 = vmax.f32 %v5587_v20, %v2462_v10  ;;  %v2468_v47 = vmax.f32 %v2466_v42, %v2467_v22  ;;  %v936_v13 = vpop.f32.mrf.mxu1 }
 0x18e   :  { %v2473_v31 = vrot.slane %v2472_v23, 1  ;;  %v2476_v16 = vmax.f32 %v2142_v7, %v2475_v24  ;;  %v2143_v5 = vadd.f32 %v2015_v41, %v5145_v4  ;;  %v2016_v11 = vmul.f32 %v1888_v29, %v5143_v3 }
 0x18f   :  { %v3705_v48 = vsel %vm3671_vm2, %v3577_v39, %v5592_v32  ;;  %v3712_v26 = vsel %vm3671_vm2, %v3578_v45, %v5595_v34  ;;  %v3069_v30 = vmax.f32 %v5572_v61, %v3015_v59  ;;  %v3016_v17 = vmax.f32 %v2456_v8, %v2468_v47 }
 0x190   :  { %v4621_v2 = vpack.c.bf16 %v2468_v47, %v2462_v10  ;;  %v2474_v20 = vmax.f32 %v2472_v23, %v2473_v31  ;;  %v2477_v46 = vrot.slane %v2476_v16, 2  ;;  %v2481_v50 = vrot.slane %v2143_v5, 4 }
 0x191   :  { %v3070_v51 = vmax.f32 %v5578_v6, %v3016_v17  ;;  %v4675_v62 = vpack.c.bf16 %v3016_v17, %v3015_v59  ;;  %v2144_v14 = vadd.f32 %v2016_v11, %v5153_v12  ;;  %v1271_v43 = vmax.f32 %v930_v36, 0.0  ;;  %v938_v11 = vpop.f32.mrf.mxu1 }
 0x192   :  { %v3579_v15 = vunpack.c.l.b16 %v4621_v2  ;;  %v3580_v32 = vunpack.c.h.b16 %v4621_v2  ;;  %v2478_v27 = vmax.f32 %v2476_v16, %v2477_v46  ;;  %v2482_v25 = vmax.f32 %v2143_v5, %v2481_v50 }
 0x193   :  { %v4054_v34 = vunpack.c.l.b16 %v4675_v62  ;;  %v4055_v54 = vunpack.c.h.b16 %v4675_v62  ;;  %v4702_v61 = vpack.c.bf16 %v3070_v51, %v3069_v30  ;;  %v2487_v55 = vrot.slane %v2144_v14, 4 }
 0x194   :  { %v3706_v57 = vsel %vm3673_vm3, %v3579_v15, %v3705_v48  ;;  %v3713_v52 = vsel %vm3673_vm3, %v3580_v32, %v3712_v26  ;;  %v2479_v58 = vrot.slane %v2478_v27, 1  ;;  %v2483_v6 = vrot.slane %v2482_v25, 2 }
 0x195   :  { %v5628_v49 = vsel %vm3669_vm1, %v4054_v34, %v4052_v44  ;;  %v5633_v63 = vsel %vm3669_vm1, %v4055_v54, %v4053_v35  ;;  %v4288_v8 = vunpack.c.l.b16 %v4702_v61  ;;  %v4289_v9 = vunpack.c.h.b16 %v4702_v61  ;;  %v493_v35 = vpop.f32.mrf.mxu0 }
 0x196   :  { %v2480_v42 = vmax.f32 %v2478_v27, %v2479_v58  ;;  %v2484_v33 = vmax.f32 %v2482_v25, %v2483_v6  ;;  %v2488_v7 = vmax.f32 %v2144_v14, %v2487_v55  ;;  %v1633_v21 = vadd.f32 %v5145_v4, %v1494_v60 }
 0x197   :  { %v5638_v40 = vsel %vm3675_vm4, %v4288_v8, %v5562_v56  ;;  %v5642_v44 = vsel %vm3675_vm4, %v4289_v9, %v5566_v38  ;;  %v1273_v18 = vmax.f32 %v487_v28, 0.0  ;;  %v1272_v19 = vmax.f32 %v932_v1, 0.0  ;;  %v495_v48 = vpop.f32.mrf.mxu0 }
 0x198   :  { %v4622_v10 = vpack.c.bf16 %v2480_v42, %v2474_v20  ;;  %v2485_v22 = vrot.slane %v2484_v33, 1  ;;  %v2489_v23 = vrot.slane %v2488_v7, 2  ;;  %v1761_v24 = vadd.f32 %v1633_v21, %v1271_v43 }
 0x199   :  { %v1496_v41 = vmul.f32 %v5139_v0, %v1273_v18  ;;  %v1634_v60 = vadd.f32 %v5153_v12, %v1495_v37  ;;  %v1274_v29 = vmax.f32 %v489_v53, 0.0  ;;  %v1275_v39 = vmax.f32 %v936_v13, 0.0  ;;  %v499_v9 = vpop.f32.mrf.mxu0 }
 0x19a   :  { %v3581_v56 = vunpack.c.l.b16 %v4622_v10  ;;  %v3582_v45 = vunpack.c.h.b16 %v4622_v10  ;;  %v2486_v59 = vmax.f32 %v2484_v33, %v2485_v22  ;;  %v2490_v47 = vmax.f32 %v2488_v7, %v2489_v23 }
 0x19b   :  { %v1889_v38 = vmax.f32 %v1761_v24, 0.0  ;;  %v1762_v31 = vadd.f32 %v1634_v60, %v1272_v19  ;;  %v1497_v16 = vmul.f32 %v5143_v3, %v1274_v29  ;;  %v1635_v5 = vadd.f32 %v5145_v4, %v1496_v41 }
 0x19c   :  { %v3707_v26 = vsel %vm3675_vm4, %v3581_v56, %v3706_v57  ;;  %v3714_v30 = vsel %vm3675_vm4, %v3582_v45, %v3713_v52  ;;  %v5650_v17 = vmax.f32 %v2474_v20, %v2486_v59  ;;  %v2491_v37 = vrot.slane %v2490_v47, 1  ;;  %v942_v20 = vpop.f32.mrf.mxu1  ;;  %v501_v45 = vpop.f32.mrf.mxu0 }
 0x19d   :  { %v2017_v36 = vmul.f32 %v1889_v38, %v5139_v0  ;;  %v1890_v28 = vmax.f32 %v1762_v31, 0.0  ;;  %v1763_v2 = vadd.f32 %v1635_v5, %v1275_v39  ;;  %v1277_v46 = vmax.f32 %v493_v35, 0.0 }
 0x19e   :  { %v2492_v50 = vmax.f32 %v2490_v47, %v2491_v37  ;;  %v1276_v51 = vmax.f32 %v938_v11, 0.0  ;;  %v1636_v62 = vadd.f32 %v5153_v12, %v1497_v16  ;;  %v1278_v14 = vmax.f32 %v495_v48, 0.0  ;;  %v944_v18 = vpop.f32.mrf.mxu1 }
 0x19f   :  { %v2145_v43 = vadd.f32 %v2017_v36, %v5145_v4  ;;  %v2018_v15 = vmul.f32 %v1890_v28, %v5143_v3  ;;  %v1891_v32 = vmax.f32 %v1763_v2, 0.0  ;;  %v1498_v27 = vmul.f32 %v5139_v0, %v1277_v46 }
 0x1a0   :  { %v5657_v25 = vmax.f32 %v2480_v42, %v2492_v50  ;;  %v4623_v34 = vpack.c.bf16 %v2492_v50, %v2486_v59  ;;  %v1764_v54 = vadd.f32 %v1636_v62, %v1276_v51  ;;  %v1499_v61 = vmul.f32 %v5143_v3, %v1278_v14  ;;  %v948_v16 = vpop.f32.mrf.mxu1  ;;  %v505_v50 = vpop.f32.mrf.mxu0 }
 0x1a1   :  { %v2493_v55 = vrot.slane %v2145_v43, 4  ;;  %v2146_v1 = vadd.f32 %v2018_v15, %v5153_v12  ;;  %v2019_v53 = vmul.f32 %v1891_v32, %v5139_v0  ;;  %v1279_v57 = vmax.f32 %v942_v20, 0.0 }
 0x1a2   :  { %v3583_v52 = vunpack.c.l.b16 %v4623_v34  ;;  %v3584_v58 = vunpack.c.h.b16 %v4623_v34  ;;  %v4676_v6 = vpack.c.bf16 %v5657_v25, %v5650_v17  ;;  %v1892_v8 = vmax.f32 %v1764_v54, 0.0  ;;  %v950_v15 = vpop.f32.mrf.mxu1 }
 0x1a3   :  { %v2494_v33 = vmax.f32 %v2145_v43, %v2493_v55  ;;  %v2499_v42 = vrot.slane %v2146_v1, 4  ;;  %v2147_v7 = vadd.f32 %v2019_v53, %v5145_v4  ;;  %v1637_v21 = vadd.f32 %v5145_v4, %v1498_v27 }
 0x1a4   :  { %v5667_v19 = vsel %vm3677_vm5, %v3583_v52, %v3707_v26  ;;  %v5670_v13 = vsel %vm3677_vm5, %v3584_v58, %v3714_v30  ;;  %v4056_v35 = vunpack.c.l.b16 %v4676_v6  ;;  %v4057_v10 = vunpack.c.h.b16 %v4676_v6 }
 0x1a5   :  { %v2495_v22 = vrot.slane %v2494_v33, 2  ;;  %v2500_v23 = vmax.f32 %v2146_v1, %v2499_v42  ;;  %v2505_v24 = vrot.slane %v2147_v7, 4  ;;  %v2020_v41 = vmul.f32 %v1892_v8, %v5143_v3 }
 0x1a6   :  { %v5675_v60 = vsel %vm3671_vm2, %v4056_v35, %v5628_v49  ;;  %v5679_v29 = vsel %vm3671_vm2, %v4057_v10, %v5633_v63  ;;  %v1765_v39 = vadd.f32 %v1637_v21, %v1279_v57  ;;  %v1281_v56 = vmax.f32 %v499_v9, 0.0 }
 0x1a7   :  { %v2496_v59 = vmax.f32 %v2494_v33, %v2495_v22  ;;  %v2501_v47 = vrot.slane %v2500_v23, 2  ;;  %v2506_v38 = vmax.f32 %v2147_v7, %v2505_v24  ;;  %v2148_v31 = vadd.f32 %v2020_v41, %v5153_v12  ;;  %v507_v24 = vpop.f32.mrf.mxu0 }
 0x1a8   :  { %v1893_v5 = vmax.f32 %v1765_v39, 0.0  ;;  %v1500_v11 = vmul.f32 %v5139_v0, %v1281_v56  ;;  %v1280_v48 = vmax.f32 %v944_v18, 0.0  ;;  %v1638_v49 = vadd.f32 %v5153_v12, %v1499_v61 }
 0x1a9   :  { %v2497_v26 = vrot.slane %v2496_v59, 1  ;;  %v2502_v30 = vmax.f32 %v2500_v23, %v2501_v47  ;;  %v2507_v37 = vrot.slane %v2506_v38, 2  ;;  %v2511_v63 = vrot.slane %v2148_v31, 4 }
 0x1aa   :  { %v2021_v36 = vmul.f32 %v1893_v5, %v5139_v0  ;;  %v1766_v28 = vadd.f32 %v1638_v49, %v1280_v48  ;;  %v1282_v2 = vmax.f32 %v501_v45, 0.0  ;;  %v1283_v46 = vmax.f32 %v948_v16, 0.0  ;;  %v954_v49 = vpop.f32.mrf.mxu1 }
 0x1ab   :  { %v2498_v51 = vmax.f32 %v2496_v59, %v2497_v26  ;;  %v2503_v62 = vrot.slane %v2502_v30, 1  ;;  %v2508_v14 = vmax.f32 %v2506_v38, %v2507_v37  ;;  %v2512_v43 = vmax.f32 %v2148_v31, %v2511_v63 }
 0x1ac   :  { %v2149_v32 = vadd.f32 %v2021_v36, %v5145_v4  ;;  %v1894_v27 = vmax.f32 %v1766_v28, 0.0  ;;  %v1501_v20 = vmul.f32 %v5143_v3, %v1282_v2  ;;  %v1639_v34 = vadd.f32 %v5145_v4, %v1500_v11  ;;  %v511_v36 = vpop.f32.mrf.mxu0 }
 0x1ad   :  { %v2504_v54 = vmax.f32 %v2502_v30, %v2503_v62  ;;  %v2509_v61 = vrot.slane %v2508_v14, 1  ;;  %v2513_v55 = vrot.slane %v2512_v43, 2  ;;  %v1285_v1 = vmax.f32 %v505_v50, 0.0 }
 0x1ae   :  { %v2517_v53 = vrot.slane %v2149_v32, 4  ;;  %v2022_v57 = vmul.f32 %v1894_v27, %v5143_v3  ;;  %v1767_v52 = vadd.f32 %v1639_v34, %v1283_v46  ;;  %v1284_v58 = vmax.f32 %v950_v15, 0.0 }
 0x1af   :  { %v4624_v6 = vpack.c.bf16 %v2504_v54, %v2498_v51  ;;  %v2510_v8 = vmax.f32 %v2508_v14, %v2509_v61  ;;  %v2514_v9 = vmax.f32 %v2512_v43, %v2513_v55  ;;  %v1502_v33 = vmul.f32 %v5139_v0, %v1285_v1  ;;  %v513_v61 = vpop.f32.mrf.mxu0 }
 0x1b0   :  { %v2518_v42 = vmax.f32 %v2149_v32, %v2517_v53  ;;  %v2150_v7 = vadd.f32 %v2022_v57, %v5153_v12  ;;  %v1895_v21 = vmax.f32 %v1767_v52, 0.0  ;;  %v1640_v18 = vadd.f32 %v5153_v12, %v1501_v20  ;;  %v956_v32 = vpop.f32.mrf.mxu1 }
 0x1b1   :  { %v3585_v35 = vunpack.c.l.b16 %v4624_v6  ;;  %v3586_v10 = vunpack.c.h.b16 %v4624_v6  ;;  %v3019_v22 = vmax.f32 %v2498_v51, %v2510_v8  ;;  %v2515_v23 = vrot.slane %v2514_v9, 1 }
 0x1b2   :  { %v2519_v41 = vrot.slane %v2518_v42, 2  ;;  %v2523_v39 = vrot.slane %v2150_v7, 4  ;;  %v2023_v56 = vmul.f32 %v1895_v21, %v5139_v0  ;;  %v1768_v45 = vadd.f32 %v1640_v18, %v1284_v58  ;;  %v960_v21 = vpop.f32.mrf.mxu1 }
 0x1b3   :  { %v3709_v59 = vsel %vm3679_vm6, %v3585_v35, %v5667_v19  ;;  %v3716_v47 = vsel %vm3679_vm6, %v3586_v10, %v5670_v13  ;;  %v3071_v38 = vmax.f32 %v5650_v17, %v3019_v22  ;;  %v2516_v31 = vmax.f32 %v2514_v9, %v2515_v23 }
 0x1b4   :  { %v2520_v16 = vmax.f32 %v2518_v42, %v2519_v41  ;;  %v2524_v5 = vmax.f32 %v2150_v7, %v2523_v39  ;;  %v2151_v11 = vadd.f32 %v2023_v56, %v5145_v4  ;;  %v1896_v48 = vmax.f32 %v1768_v45, 0.0 }
 0x1b5   :  { %v3020_v26 = vmax.f32 %v2504_v54, %v2516_v31  ;;  %v4625_v30 = vpack.c.bf16 %v2516_v31, %v2510_v8  ;;  %v1286_v37 = vmax.f32 %v507_v24, 0.0  ;;  %v1287_v63 = vmax.f32 %v954_v49, 0.0 }
 0x1b6   :  { %v2521_v28 = vrot.slane %v2520_v16, 1  ;;  %v2525_v2 = vrot.slane %v2524_v5, 2  ;;  %v2529_v19 = vrot.slane %v2151_v11, 4  ;;  %v2024_v46 = vmul.f32 %v1896_v48, %v5143_v3 }
 0x1b7   :  { %v3072_v13 = vmax.f32 %v5657_v25, %v3020_v26  ;;  %v3587_v17 = vunpack.c.l.b16 %v4625_v30  ;;  %v3588_v50 = vunpack.c.h.b16 %v4625_v30  ;;  %v4677_v51 = vpack.c.bf16 %v3020_v26, %v3019_v22 }
 0x1b8   :  { %v2522_v62 = vmax.f32 %v2520_v16, %v2521_v28  ;;  %v2526_v14 = vmax.f32 %v2524_v5, %v2525_v2  ;;  %v2530_v43 = vmax.f32 %v2151_v11, %v2529_v19  ;;  %v2152_v15 = vadd.f32 %v2024_v46, %v5153_v12  ;;  %v962_v16 = vpop.f32.mrf.mxu1 }
 0x1b9   :  { %v3710_v27 = vsel %vm3681_vm7, %v3587_v17, %v3709_v59  ;;  %v3717_v20 = vsel %vm3681_vm7, %v3588_v50, %v3716_v47  ;;  %v4058_v34 = vunpack.c.l.b16 %v4677_v51  ;;  %v4059_v54 = vunpack.c.h.b16 %v4677_v51 }
 0x1ba   :  { %v3790_v55 = vpack.c.b16 %v3717_v20, %v3710_v27  ;;  %v4703_v1 = vpack.c.bf16 %v3072_v13, %v3071_v38  ;;  %v2527_v53 = vrot.slane %v2526_v14, 1  ;;  %v2531_v25 = vrot.slane %v2530_v43, 2  ;;  %v966_v50 = vpop.f32.mrf.mxu1 }
 0x1bb   :  { %v5706_v57 = vsel %vm3673_vm3, %v4058_v34, %v5675_v60  ;;  %v5710_v52 = vsel %vm3673_vm3, %v4059_v54, %v5679_v29  ;;  %v2535_v58 = vrot.slane %v2152_v15, 4  ;;  %v1503_v6 = vmul.f32 %v5143_v3, %v1286_v37  ;;  %v517_v60 = vpop.f32.mrf.mxu0 }
 0x1bc   :  { %3806 = vst [vmem:[#allocation2 + $0x10] sm:$0xff] %v3790_v55  ;;  %v4290_v8 = vunpack.c.l.b16 %v4703_v1  ;;  %v4291_v9 = vunpack.c.h.b16 %v4703_v1  ;;  %v2528_v42 = vmax.f32 %v2526_v14, %v2527_v53  ;;  %v2532_v7 = vmax.f32 %v2530_v43, %v2531_v25 }
 0x1bd   :  { %v2536_v18 = vmax.f32 %v2152_v15, %v2535_v58  ;;  %v1641_v35 = vadd.f32 %v5145_v4, %v1502_v33  ;;  %v1289_v10 = vmax.f32 %v511_v36, 0.0  ;;  %v1288_v22 = vmax.f32 %v956_v32, 0.0  ;;  %v519_v49 = vpop.f32.mrf.mxu0 }
 0x1be   :  { %v5716_v23 = vsel %vm3677_vm5, %v4290_v8, %v5638_v40  ;;  %v5720_v29 = vsel %vm3677_vm5, %v4291_v9, %v5642_v44  ;;  %v4626_v24 = vpack.c.bf16 %v2528_v42, %v2522_v62  ;;  %v2533_v41 = vrot.slane %v2532_v7, 1 }
 0x1bf   :  { %v2537_v39 = vrot.slane %v2536_v18, 2  ;;  %v1769_v56 = vadd.f32 %v1641_v35, %v1287_v63  ;;  %v1504_v45 = vmul.f32 %v5139_v0, %v1289_v10  ;;  %v1642_v59 = vadd.f32 %v5153_v12, %v1503_v6  ;;  %v523_v15 = vpop.f32.mrf.mxu0 }
 0x1c0   :  { %v3589_v33 = vunpack.c.l.b16 %v4626_v24  ;;  %v3590_v47 = vunpack.c.h.b16 %v4626_v24  ;;  %v2534_v38 = vmax.f32 %v2532_v7, %v2533_v41  ;;  %v1290_v31 = vmax.f32 %v513_v61, 0.0 }
 0x1c1   :  { %v2538_v5 = vmax.f32 %v2536_v18, %v2537_v39  ;;  %v1897_v40 = vmax.f32 %v1769_v56, 0.0  ;;  %v1770_v11 = vadd.f32 %v1642_v59, %v1288_v22  ;;  %v1291_v48 = vmax.f32 %v960_v21, 0.0  ;;  %v968_v18 = vpop.f32.mrf.mxu1 }
 0x1c2   :  { %v5724_v44 = vmax.f32 %v2522_v62, %v2534_v38  ;;  %v1505_v26 = vmul.f32 %v5143_v3, %v1290_v31  ;;  %v1643_v30 = vadd.f32 %v5145_v4, %v1504_v45  ;;  %v1293_v37 = vmax.f32 %v517_v60, 0.0  ;;  %v525_v31 = vpop.f32.mrf.mxu0 }
 0x1c3   :  { %v2539_v63 = vrot.slane %v2538_v5, 1  ;;  %v2025_v36 = vmul.f32 %v1897_v40, %v5139_v0  ;;  %v1898_v28 = vmax.f32 %v1770_v11, 0.0  ;;  %v1292_v2 = vmax.f32 %v962_v16, 0.0  ;;  %v972_v40 = vpop.f32.mrf.mxu1 }
 0x1c4   :  { %v1771_v19 = vadd.f32 %v1643_v30, %v1291_v48  ;;  %v1506_v46 = vmul.f32 %v5139_v0, %v1293_v37  ;;  %v1644_v13 = vadd.f32 %v5153_v12, %v1505_v26  ;;  %v1294_v17 = vmax.f32 %v519_v49, 0.0 }
 0x1c5   :  { %v2540_v51 = vmax.f32 %v2538_v5, %v2539_v63  ;;  %v2153_v62 = vadd.f32 %v2025_v36, %v5145_v4  ;;  %v2026_v14 = vmul.f32 %v1898_v28, %v5143_v3  ;;  %v1295_v43 = vmax.f32 %v966_v50, 0.0 }
 0x1c6   :  { %v1899_v32 = vmax.f32 %v1771_v19, 0.0  ;;  %v1772_v27 = vadd.f32 %v1644_v13, %v1292_v2  ;;  %v1507_v20 = vmul.f32 %v5143_v3, %v1294_v17  ;;  %v1645_v34 = vadd.f32 %v5145_v4, %v1506_v46  ;;  %v529_v19 = vpop.f32.mrf.mxu0 }
 0x1c7   :  { %v5735_v54 = vmax.f32 %v2528_v42, %v2540_v51  ;;  %v4627_v61 = vpack.c.bf16 %v2540_v51, %v2534_v38  ;;  %v2541_v55 = vrot.slane %v2153_v62, 4  ;;  %v2154_v1 = vadd.f32 %v2026_v14, %v5153_v12  ;;  %v974_v51 = vpop.f32.mrf.mxu1 }
 0x1c8   :  { %v2027_v53 = vmul.f32 %v1899_v32, %v5139_v0  ;;  %v1900_v25 = vmax.f32 %v1772_v27, 0.0  ;;  %v1773_v58 = vadd.f32 %v1645_v34, %v1295_v43  ;;  %v1297_v6 = vmax.f32 %v523_v15, 0.0 }
 0x1c9   :  { %v3591_v8 = vunpack.c.l.b16 %v4627_v61  ;;  %v3592_v9 = vunpack.c.h.b16 %v4627_v61  ;;  %v4678_v7 = vpack.c.bf16 %v5735_v54, %v5724_v44  ;;  %v2542_v21 = vmax.f32 %v2153_v62, %v2541_v55 }
 0x1ca   :  { %v2547_v35 = vrot.slane %v2154_v1, 4  ;;  %v2155_v42 = vadd.f32 %v2027_v53, %v5145_v4  ;;  %v2028_v10 = vmul.f32 %v1900_v25, %v5143_v3  ;;  %v1901_v22 = vmax.f32 %v1773_v58, 0.0  ;;  %v531_v25 = vpop.f32.mrf.mxu0 }
 0x1cb   :  { %v5744_v60 = vsel %vm3669_vm1, %v3591_v8, %v3589_v33  ;;  %v5747_v24 = vsel %vm3669_vm1, %v3592_v9, %v3590_v47  ;;  %v4060_v41 = vunpack.c.l.b16 %v4678_v7  ;;  %v4061_v39 = vunpack.c.h.b16 %v4678_v7 }
 0x1cc   :  { %v2543_v56 = vrot.slane %v2542_v21, 2  ;;  %v2548_v45 = vmax.f32 %v2154_v1, %v2547_v35  ;;  %v2553_v59 = vrot.slane %v2155_v42, 4  ;;  %v2156_v38 = vadd.f32 %v2028_v10, %v5153_v12 }
 0x1cd   :  { %v5752_v16 = vsel %vm3675_vm4, %v4060_v41, %v5706_v57  ;;  %v5756_v5 = vsel %vm3675_vm4, %v4061_v39, %v5710_v52  ;;  %v2029_v33 = vmul.f32 %v1901_v22, %v5139_v0  ;;  %v1508_v47 = vmul.f32 %v5139_v0, %v1297_v6 }
 0x1ce   :  { %v2544_v11 = vmax.f32 %v2542_v21, %v2543_v56  ;;  %v2549_v48 = vrot.slane %v2548_v45, 2  ;;  %v2554_v49 = vmax.f32 %v2155_v42, %v2553_v59  ;;  %v2559_v26 = vrot.slane %v2156_v38, 4 }
 0x1cf   :  { %v2157_v30 = vadd.f32 %v2029_v33, %v5145_v4  ;;  %v1296_v37 = vmax.f32 %v968_v18, 0.0  ;;  %v1646_v63 = vadd.f32 %v5153_v12, %v1507_v20  ;;  %v1298_v57 = vmax.f32 %v525_v31, 0.0 }
 0x1d0   :  { %v2545_v36 = vrot.slane %v2544_v11, 1  ;;  %v2550_v28 = vmax.f32 %v2548_v45, %v2549_v48  ;;  %v2555_v2 = vrot.slane %v2554_v49, 2  ;;  %v2560_v52 = vmax.f32 %v2156_v38, %v2559_v26 }
 0x1d1   :  { %v2565_v46 = vrot.slane %v2157_v30, 4  ;;  %v1774_v13 = vadd.f32 %v1646_v63, %v1296_v37  ;;  %v1509_v17 = vmul.f32 %v5143_v3, %v1298_v57  ;;  %v1299_v50 = vmax.f32 %v972_v40, 0.0  ;;  %v978_v57 = vpop.f32.mrf.mxu1 }
 0x1d2   :  { %v2546_v62 = vmax.f32 %v2544_v11, %v2545_v36  ;;  %v2551_v14 = vrot.slane %v2550_v28, 1  ;;  %v2556_v43 = vmax.f32 %v2554_v49, %v2555_v2  ;;  %v2561_v15 = vrot.slane %v2560_v52, 2  ;;  %v535_v36 = vpop.f32.mrf.mxu0 }
 0x1d3   :  { %v2566_v32 = vmax.f32 %v2157_v30, %v2565_v46  ;;  %v1902_v27 = vmax.f32 %v1774_v13, 0.0  ;;  %v1647_v20 = vadd.f32 %v5145_v4, %v1508_v47  ;;  %v1301_v34 = vmax.f32 %v529_v19, 0.0 }
 0x1d4   :  { %v2552_v61 = vmax.f32 %v2550_v28, %v2551_v14  ;;  %v2557_v55 = vrot.slane %v2556_v43, 1  ;;  %v2562_v1 = vmax.f32 %v2560_v52, %v2561_v15  ;;  %v1300_v53 = vmax.f32 %v974_v51, 0.0 }
 0x1d5   :  { %v2567_v58 = vrot.slane %v2566_v32, 2  ;;  %v2030_v6 = vmul.f32 %v1902_v27, %v5143_v3  ;;  %v1775_v8 = vadd.f32 %v1647_v20, %v1299_v50  ;;  %v1510_v9 = vmul.f32 %v5139_v0, %v1301_v34 }
 0x1d6   :  { %v4628_v7 = vpack.c.bf16 %v2552_v61, %v2546_v62  ;;  %v2558_v21 = vmax.f32 %v2556_v43, %v2557_v55  ;;  %v2563_v18 = vrot.slane %v2562_v1, 1  ;;  %v1648_v35 = vadd.f32 %v5153_v12, %v1509_v17 }
 0x1d7   :  { %v2568_v42 = vmax.f32 %v2566_v32, %v2567_v58  ;;  %v2158_v10 = vadd.f32 %v2030_v6, %v5153_v12  ;;  %v1903_v22 = vmax.f32 %v1775_v8, 0.0  ;;  %v1302_v41 = vmax.f32 %v531_v25, 0.0  ;;  %v537_v32 = vpop.f32.mrf.mxu0 }
 0x1d8   :  { %v3593_v39 = vunpack.c.l.b16 %v4628_v7  ;;  %v3594_v56 = vunpack.c.h.b16 %v4628_v7  ;;  %v3023_v45 = vmax.f32 %v2546_v62, %v2558_v21  ;;  %v2564_v59 = vmax.f32 %v2562_v1, %v2563_v18 }
 0x1d9   :  { %v2569_v38 = vrot.slane %v2568_v42, 1  ;;  %v2571_v31 = vrot.slane %v2158_v10, 4  ;;  %v2031_v33 = vmul.f32 %v1903_v22, %v5139_v0  ;;  %v1776_v47 = vadd.f32 %v1648_v35, %v1300_v53 }
 0x1da   :  { %v3719_v40 = vsel %vm3671_vm2, %v3593_v39, %v5744_v60  ;;  %v3726_v11 = vsel %vm3671_vm2, %v3594_v56, %v5747_v24  ;;  %v3073_v48 = vmax.f32 %v5724_v44, %v3023_v45  ;;  %v3024_v49 = vmax.f32 %v2552_v61, %v2564_v59 }
 0x1db   :  { %v4629_v26 = vpack.c.bf16 %v2564_v59, %v2558_v21  ;;  %v5774_v30 = vmax.f32 %v2568_v42, %v2569_v38  ;;  %v2572_v37 = vmax.f32 %v2158_v10, %v2571_v31  ;;  %v2159_v63 = vadd.f32 %v2031_v33, %v5145_v4  ;;  %v541_v42 = vpop.f32.mrf.mxu0 }
 0x1dc   :  { %v3074_v28 = vmax.f32 %v5735_v54, %v3024_v49  ;;  %v4679_v2 = vpack.c.bf16 %v3024_v49, %v3023_v45  ;;  %v1904_v52 = vmax.f32 %v1776_v47, 0.0  ;;  %v1511_v60 = vmul.f32 %v5143_v3, %v1302_v41  ;;  %v980_v54 = vpop.f32.mrf.mxu1 }
 0x1dd   :  { %v3595_v19 = vunpack.c.l.b16 %v4629_v26  ;;  %v3596_v46 = vunpack.c.h.b16 %v4629_v26  ;;  %v2573_v24 = vrot.slane %v2572_v37, 2  ;;  %v2577_v13 = vrot.slane %v2159_v63, 4  ;;  %v543_v49 = vpop.f32.mrf.mxu0 }
 0x1de   :  { %v4062_v44 = vunpack.c.l.b16 %v4679_v2  ;;  %v4063_v17 = vunpack.c.h.b16 %v4679_v2  ;;  %v4704_v50 = vpack.c.bf16 %v3074_v28, %v3073_v48  ;;  %v2032_v51 = vmul.f32 %v1904_v52, %v5143_v3  ;;  %v984_v35 = vpop.f32.mrf.mxu1 }
 0x1df   :  { %v3720_v62 = vsel %vm3673_vm3, %v3595_v19, %v3719_v40  ;;  %v3727_v14 = vsel %vm3673_vm3, %v3596_v46, %v3726_v11  ;;  %v2574_v43 = vmax.f32 %v2572_v37, %v2573_v24  ;;  %v2578_v15 = vmax.f32 %v2159_v63, %v2577_v13 }
 0x1e0   :  { %v5784_v27 = vsel %vm3677_vm5, %v4062_v44, %v5752_v16  ;;  %v5788_v20 = vsel %vm3677_vm5, %v4063_v17, %v5756_v5  ;;  %v4292_v34 = vunpack.c.l.b16 %v4704_v50  ;;  %v4293_v61 = vunpack.c.h.b16 %v4704_v50  ;;  %v986_v48 = vpop.f32.mrf.mxu1 }
 0x1e1   :  { %v2575_v55 = vrot.slane %v2574_v43, 1  ;;  %v2579_v1 = vrot.slane %v2578_v15, 2  ;;  %v2160_v53 = vadd.f32 %v2032_v51, %v5153_v12  ;;  %v1303_v25 = vmax.f32 %v978_v57, 0.0 }
 0x1e2   :  { %v5793_v58 = vsel %vm3679_vm6, %v4292_v34, %v5716_v23  ;;  %v5797_v6 = vsel %vm3679_vm6, %v4293_v61, %v5720_v29  ;;  %v1649_v16 = vadd.f32 %v5145_v4, %v1510_v9  ;;  %v1305_v8 = vmax.f32 %v535_v36, 0.0  ;;  %v990_v51 = vpop.f32.mrf.mxu1 }
 0x1e3   :  { %v2576_v5 = vmax.f32 %v2574_v43, %v2575_v55  ;;  %v2580_v7 = vmax.f32 %v2578_v15, %v2579_v1  ;;  %v2583_v21 = vrot.slane %v2160_v53, 4  ;;  %v1304_v18 = vmax.f32 %v980_v54, 0.0 }
 0x1e4   :  { %v1777_v10 = vadd.f32 %v1649_v16, %v1303_v25  ;;  %v1512_v22 = vmul.f32 %v5139_v0, %v1305_v8  ;;  %v1650_v41 = vadd.f32 %v5153_v12, %v1511_v60  ;;  %v1306_v23 = vmax.f32 %v537_v32, 0.0 }
 0x1e5   :  { %v4630_v39 = vpack.c.bf16 %v2576_v5, %v5774_v30  ;;  %v2581_v56 = vrot.slane %v2580_v7, 1  ;;  %v2584_v29 = vmax.f32 %v2160_v53, %v2583_v21  ;;  %v1307_v45 = vmax.f32 %v984_v35, 0.0 }
 0x1e6   :  { %v1905_v59 = vmax.f32 %v1777_v10, 0.0  ;;  %v1778_v9 = vadd.f32 %v1650_v41, %v1304_v18  ;;  %v1513_v38 = vmul.f32 %v5143_v3, %v1306_v23  ;;  %v1651_v31 = vadd.f32 %v5145_v4, %v1512_v22  ;;  %v992_v22 = vpop.f32.mrf.mxu1 }
 0x1e7   :  { %v3597_v33 = vunpack.c.l.b16 %v4630_v39  ;;  %v3598_v47 = vunpack.c.h.b16 %v4630_v39  ;;  %v2582_v40 = vmax.f32 %v2580_v7, %v2581_v56  ;;  %v2585_v11 = vrot.slane %v2584_v29, 2 }
 0x1e8   :  { %v2033_v26 = vmul.f32 %v1905_v59, %v5139_v0  ;;  %v1906_v37 = vmax.f32 %v1778_v9, 0.0  ;;  %v1779_v63 = vadd.f32 %v1651_v31, %v1307_v45  ;;  %v1309_v57 = vmax.f32 %v541_v42, 0.0 }
 0x1e9   :  { %v3721_v36 = vsel %vm3675_vm4, %v3597_v33, %v3720_v62  ;;  %v3728_v28 = vsel %vm3675_vm4, %v3598_v47, %v3727_v14  ;;  %v5809_v2 = vmax.f32 %v5774_v30, %v2582_v40  ;;  %v2586_v52 = vmax.f32 %v2584_v29, %v2585_v11  ;;  %v547_v62 = vpop.f32.mrf.mxu0 }
 0x1ea   :  { %v2161_v60 = vadd.f32 %v2033_v26, %v5145_v4  ;;  %v2034_v19 = vmul.f32 %v1906_v37, %v5143_v3  ;;  %v1907_v46 = vmax.f32 %v1779_v63, 0.0  ;;  %v1514_v24 = vmul.f32 %v5139_v0, %v1309_v57  ;;  %v996_v26 = vpop.f32.mrf.mxu1 }
 0x1eb   :  { %v2587_v13 = vrot.slane %v2586_v52, 1  ;;  %v1308_v44 = vmax.f32 %v986_v48, 0.0  ;;  %v1652_v17 = vadd.f32 %v5153_v12, %v1513_v38  ;;  %v1310_v50 = vmax.f32 %v543_v49, 0.0  ;;  %v549_v9 = vpop.f32.mrf.mxu0 }
 0x1ec   :  { %v2589_v43 = vrot.slane %v2161_v60, 4  ;;  %v2162_v14 = vadd.f32 %v2034_v19, %v5153_v12  ;;  %v2035_v30 = vmul.f32 %v1907_v46, %v5139_v0  ;;  %v1311_v15 = vmax.f32 %v990_v51, 0.0 }
 0x1ed   :  { %v2588_v54 = vmax.f32 %v2586_v52, %v2587_v13  ;;  %v1780_v32 = vadd.f32 %v1652_v17, %v1308_v44  ;;  %v1515_v34 = vmul.f32 %v5143_v3, %v1310_v50  ;;  %v1653_v61 = vadd.f32 %v5145_v4, %v1514_v24  ;;  %v553_v46 = vpop.f32.mrf.mxu0 }
 0x1ee   :  { %v2590_v55 = vmax.f32 %v2161_v60, %v2589_v43  ;;  %v2595_v1 = vrot.slane %v2162_v14, 4  ;;  %v2163_v53 = vadd.f32 %v2035_v30, %v5145_v4  ;;  %v1313_v25 = vmax.f32 %v547_v62, 0.0  ;;  %v998_v62 = vpop.f32.mrf.mxu1 }
 0x1ef   :  { %v5820_v16 = vmax.f32 %v2576_v5, %v2588_v54  ;;  %v4631_v8 = vpack.c.bf16 %v2588_v54, %v2582_v40  ;;  %v1908_v7 = vmax.f32 %v1780_v32, 0.0  ;;  %v1781_v21 = vadd.f32 %v1653_v61, %v1311_v15 }
 0x1f0   :  { %v2591_v18 = vrot.slane %v2590_v55, 2  ;;  %v2596_v35 = vmax.f32 %v2162_v14, %v2595_v1  ;;  %v2601_v42 = vrot.slane %v2163_v53, 4  ;;  %v1516_v10 = vmul.f32 %v5139_v0, %v1313_v25 }
 0x1f1   :  { %v3599_v41 = vunpack.c.l.b16 %v4631_v8  ;;  %v3600_v23 = vunpack.c.h.b16 %v4631_v8  ;;  %v4680_v39 = vpack.c.bf16 %v5820_v16, %v5809_v2  ;;  %v2036_v56 = vmul.f32 %v1908_v7, %v5143_v3 }
 0x1f2   :  { %v2592_v29 = vmax.f32 %v2590_v55, %v2591_v18  ;;  %v2597_v45 = vrot.slane %v2596_v35, 2  ;;  %v2602_v5 = vmax.f32 %v2163_v53, %v2601_v42  ;;  %v1909_v59 = vmax.f32 %v1781_v21, 0.0 }
 0x1f3   :  { %v3722_v38 = vsel %vm3677_vm5, %v3599_v41, %v3721_v36  ;;  %v3729_v31 = vsel %vm3677_vm5, %v3600_v23, %v3728_v28  ;;  %v4064_v33 = vunpack.c.l.b16 %v4680_v39  ;;  %v4065_v47 = vunpack.c.h.b16 %v4680_v39  ;;  %v555_v41 = vpop.f32.mrf.mxu0 }
 0x1f4   :  { %v2593_v40 = vrot.slane %v2592_v29, 1  ;;  %v2598_v11 = vmax.f32 %v2596_v35, %v2597_v45  ;;  %v2603_v48 = vrot.slane %v2602_v5, 2  ;;  %v2164_v49 = vadd.f32 %v2036_v56, %v5153_v12 }
 0x1f5   :  { %v5831_v37 = vsel %vm3679_vm6, %v4064_v33, %v5784_v27  ;;  %v5835_v63 = vsel %vm3679_vm6, %v4065_v47, %v5788_v20  ;;  %v2037_v57 = vmul.f32 %v1909_v59, %v5139_v0  ;;  %v1312_v36 = vmax.f32 %v992_v22, 0.0  ;;  %v1002_v33 = vpop.f32.mrf.mxu1 }
 0x1f6   :  { %v2594_v28 = vmax.f32 %v2592_v29, %v2593_v40  ;;  %v2599_v52 = vrot.slane %v2598_v11, 1  ;;  %v2604_v60 = vmax.f32 %v2602_v5, %v2603_v48  ;;  %v2607_v19 = vrot.slane %v2164_v49, 4 }
 0x1f7   :  { %v2165_v24 = vadd.f32 %v2037_v57, %v5145_v4  ;;  %v1654_v13 = vadd.f32 %v5153_v12, %v1515_v34  ;;  %v1314_v44 = vmax.f32 %v549_v9, 0.0  ;;  %v1315_v17 = vmax.f32 %v996_v26, 0.0 }
 0x1f8   :  { %v2600_v27 = vmax.f32 %v2598_v11, %v2599_v52  ;;  %v2605_v50 = vrot.slane %v2604_v60, 1  ;;  %v2608_v51 = vmax.f32 %v2164_v49, %v2607_v19  ;;  %v1655_v20 = vadd.f32 %v5145_v4, %v1516_v10 }
 0x1f9   :  { %v2613_v43 = vrot.slane %v2165_v24, 4  ;;  %v1782_v14 = vadd.f32 %v1654_v13, %v1312_v36  ;;  %v1517_v30 = vmul.f32 %v5143_v3, %v1314_v44  ;;  %v1317_v15 = vmax.f32 %v553_v46, 0.0  ;;  %v1004_v13 = vpop.f32.mrf.mxu1 }
 0x1fa   :  { %v4632_v54 = vpack.c.bf16 %v2600_v27, %v2594_v28  ;;  %v2606_v32 = vmax.f32 %v2604_v60, %v2605_v50  ;;  %v2609_v61 = vrot.slane %v2608_v51, 2  ;;  %v1783_v55 = vadd.f32 %v1655_v20, %v1315_v17 }
 0x1fb   :  { %v2614_v1 = vmax.f32 %v2165_v24, %v2613_v43  ;;  %v1910_v53 = vmax.f32 %v1782_v14, 0.0  ;;  %v1518_v34 = vmul.f32 %v5139_v0, %v1317_v15  ;;  %v1316_v25 = vmax.f32 %v998_v62, 0.0  ;;  %v559_v24 = vpop.f32.mrf.mxu0 }
 0x1fc   :  { %v3601_v8 = vunpack.c.l.b16 %v4632_v54  ;;  %v3602_v7 = vunpack.c.h.b16 %v4632_v54  ;;  %v3027_v21 = vmax.f32 %v2594_v28, %v2606_v32  ;;  %v2610_v18 = vmax.f32 %v2608_v51, %v2609_v61 }
 0x1fd   :  { %v2615_v35 = vrot.slane %v2614_v1, 2  ;;  %v2038_v42 = vmul.f32 %v1910_v53, %v5143_v3  ;;  %v1911_v10 = vmax.f32 %v1783_v55, 0.0  ;;  %v1656_v22 = vadd.f32 %v5153_v12, %v1517_v30  ;;  %v561_v53 = vpop.f32.mrf.mxu0 }
 0x1fe   :  { %v3723_v23 = vsel %vm3679_vm6, %v3601_v8, %v3722_v38  ;;  %v3730_v39 = vsel %vm3679_vm6, %v3602_v7, %v3729_v31  ;;  %v3075_v56 = vmax.f32 %v5809_v2, %v3027_v21  ;;  %v2611_v29 = vrot.slane %v2610_v18, 1 }
 0x1ff   :  { %v2616_v45 = vmax.f32 %v2614_v1, %v2615_v35  ;;  %v2166_v5 = vadd.f32 %v2038_v42, %v5153_v12  ;;  %v2039_v59 = vmul.f32 %v1911_v10, %v5139_v0  ;;  %v1784_v9 = vadd.f32 %v1656_v22, %v1316_v25 }
 0x200   :  { %v2612_v47 = vmax.f32 %v2610_v18, %v2611_v29  ;;  %v1318_v40 = vmax.f32 %v555_v41, 0.0  ;;  %v1319_v11 = vmax.f32 %v1002_v33, 0.0  ;;  %v1657_v48 = vadd.f32 %v5145_v4, %v1518_v34  ;;  %v565_v29 = vpop.f32.mrf.mxu0 }
 0x201   :  { %v2617_v49 = vrot.slane %v2616_v45, 1  ;;  %v2619_v26 = vrot.slane %v2166_v5, 4  ;;  %v2167_v38 = vadd.f32 %v2039_v59, %v5145_v4  ;;  %v1912_v31 = vmax.f32 %v1784_v9, 0.0 }
 0x202   :  { %v3028_v57 = vmax.f32 %v2600_v27, %v2612_v47  ;;  %v4633_v2 = vpack.c.bf16 %v2612_v47, %v2606_v32  ;;  %v1519_v36 = vmul.f32 %v5143_v3, %v1318_v40  ;;  %v1785_v28 = vadd.f32 %v1657_v48, %v1319_v11 }
 0x203   :  { %v5853_v52 = vmax.f32 %v2616_v45, %v2617_v49  ;;  %v2620_v60 = vmax.f32 %v2166_v5, %v2619_v26  ;;  %v2625_v19 = vrot.slane %v2167_v38, 4  ;;  %v2040_v46 = vmul.f32 %v1912_v31, %v5143_v3 }
 0x204   :  { %v3076_v44 = vmax.f32 %v5820_v16, %v3028_v57  ;;  %v3603_v17 = vunpack.c.l.b16 %v4633_v2  ;;  %v3604_v50 = vunpack.c.h.b16 %v4633_v2  ;;  %v4681_v51 = vpack.c.bf16 %v3028_v57, %v3027_v21  ;;  %v1008_v16 = vpop.f32.mrf.mxu1 }
 0x205   :  { %v2621_v20 = vrot.slane %v2620_v60, 2  ;;  %v2626_v62 = vmax.f32 %v2167_v38, %v2625_v19  ;;  %v2168_v27 = vadd.f32 %v2040_v46, %v5153_v12  ;;  %v1913_v43 = vmax.f32 %v1785_v28, 0.0  ;;  %v567_v28 = vpop.f32.mrf.mxu0 }
 0x206   :  { %v3724_v14 = vsel %vm3681_vm7, %v3603_v17, %v3723_v23  ;;  %v3731_v30 = vsel %vm3681_vm7, %v3604_v50, %v3730_v39  ;;  %v4066_v15 = vunpack.c.l.b16 %v4681_v51  ;;  %v4067_v54 = vunpack.c.h.b16 %v4681_v51  ;;  %v1010_v45 = vpop.f32.mrf.mxu1 }
 0x207   :  { %v3791_v32 = vpack.c.b16 %v3731_v30, %v3724_v14  ;;  %v4705_v61 = vpack.c.bf16 %v3076_v44, %v3075_v56  ;;  %v2622_v55 = vmax.f32 %v2620_v60, %v2621_v20  ;;  %v2627_v1 = vrot.slane %v2626_v62, 2 }
 0x208   :  { %v4120_v34 = vsel %vm3681_vm7, %v4066_v15, %v5831_v37  ;;  %v4127_v25 = vsel %vm3681_vm7, %v4067_v54, %v5835_v63  ;;  %v2631_v8 = vrot.slane %v2168_v27, 4  ;;  %v2041_v7 = vmul.f32 %v1913_v43, %v5139_v0  ;;  %v1014_v60 = vpop.f32.mrf.mxu1  ;;  %v571_v15 = vpop.f32.mrf.mxu0 }
 0x209   :  { %3807 = vst [vmem:[#allocation2 + $0x18] sm:$0xff] %v3791_v32  ;;  %v4157_v21 = vpack.c.b16 %v4127_v25, %v4120_v34  ;;  %v4294_v18 = vunpack.c.l.b16 %v4705_v61  ;;  %v4295_v35 = vunpack.c.h.b16 %v4705_v61  ;;  %v2623_v42 = vrot.slane %v2622_v55, 1 }
 0x20a   :  { %v2628_v10 = vmax.f32 %v2626_v62, %v2627_v1  ;;  %v2632_v22 = vmax.f32 %v2168_v27, %v2631_v8  ;;  %v2169_v41 = vadd.f32 %v2041_v7, %v5145_v4  ;;  %v1321_v23 = vmax.f32 %v559_v24, 0.0  ;;  %v1016_v54 = vpop.f32.mrf.mxu1 }
 0x20b   :  { %4165 = vst [vmem:[#allocation2 + $0x28] sm:$0xff] %v4157_v21  ;;  %v4318_v37 = vsel %vm3681_vm7, %v4294_v18, %v5793_v58  ;;  %v4325_v63 = vsel %vm3681_vm7, %v4295_v35, %v5797_v6  ;;  %v2624_v39 = vmax.f32 %v2622_v55, %v2623_v42  ;;  %v1320_v56 = vmax.f32 %v1004_v13, 0.0 }
 0x20c   :  { %v4340_v5 = vpack.c.b16 %v4325_v63, %v4318_v37  ;;  %v2629_v59 = vrot.slane %v2628_v10, 1  ;;  %v2633_v9 = vrot.slane %v2632_v22, 2  ;;  %v2637_v33 = vrot.slane %v2169_v41, 4 }
 0x20d   :  { %v4634_v47 = vpack.c.bf16 %v2624_v39, %v5853_v52  ;;  %v1520_v40 = vmul.f32 %v5139_v0, %v1321_v23  ;;  %v1658_v11 = vadd.f32 %v5153_v12, %v1519_v36  ;;  %v1322_v48 = vmax.f32 %v561_v53, 0.0  ;;  %v1020_v23 = vpop.f32.mrf.mxu1 }
 0x20e   :  { %4344 = vst [vmem:[#allocation2 + $0x30] sm:$0xff] %v4340_v5  ;;  %v2630_v58 = vmax.f32 %v2628_v10, %v2629_v59  ;;  %v2634_v49 = vmax.f32 %v2632_v22, %v2633_v9  ;;  %v2638_v26 = vmax.f32 %v2169_v41, %v2637_v33  ;;  %v1323_v6 = vmax.f32 %v1008_v16, 0.0  ;;  %v573_v41 = vpop.f32.mrf.mxu0 }
 0x20f   :  { %v3605_v38 = vunpack.c.l.b16 %v4634_v47  ;;  %v3606_v31 = vunpack.c.h.b16 %v4634_v47  ;;  %v1786_v57 = vadd.f32 %v1658_v11, %v1320_v56  ;;  %v1521_v2 = vmul.f32 %v5143_v3, %v1322_v48 }
 0x210   :  { %v5875_v19 = vmax.f32 %v5853_v52, %v2630_v58  ;;  %v2635_v46 = vrot.slane %v2634_v49, 1  ;;  %v2639_v24 = vrot.slane %v2638_v26, 2  ;;  %v1659_v36 = vadd.f32 %v5145_v4, %v1520_v40 }
 0x211   :  { %v1914_v13 = vmax.f32 %v1786_v57, 0.0  ;;  %v1325_v44 = vmax.f32 %v565_v29, 0.0  ;;  %v1324_v17 = vmax.f32 %v1010_v45, 0.0  ;;  %v1660_v50 = vadd.f32 %v5153_v12, %v1521_v2 }
 0x212   :  { %v2636_v51 = vmax.f32 %v2634_v49, %v2635_v46  ;;  %v2640_v20 = vmax.f32 %v2638_v26, %v2639_v24  ;;  %v1787_v62 = vadd.f32 %v1659_v36, %v1323_v6  ;;  %v1326_v27 = vmax.f32 %v567_v28, 0.0  ;;  %v577_v26 = vpop.f32.mrf.mxu0  ;;  %v1022_v6 = vpop.f32.mrf.mxu1 }
 0x213   :  { %v2042_v43 = vmul.f32 %v1914_v13, %v5143_v3  ;;  %v1522_v14 = vmul.f32 %v5139_v0, %v1325_v44  ;;  %v1788_v30 = vadd.f32 %v1660_v50, %v1324_v17  ;;  %v1327_v52 = vmax.f32 %v1014_v60, 0.0 }
 0x214   :  { %v5881_v32 = vmax.f32 %v2624_v39, %v2636_v51  ;;  %v4635_v61 = vpack.c.bf16 %v2636_v51, %v2630_v58  ;;  %v2641_v55 = vrot.slane %v2640_v20, 1  ;;  %v1915_v1 = vmax.f32 %v1787_v62, 0.0 }
 0x215   :  { %v2170_v53 = vadd.f32 %v2042_v43, %v5153_v12  ;;  %v1916_v16 = vmax.f32 %v1788_v30, 0.0  ;;  %v1523_v34 = vmul.f32 %v5143_v3, %v1326_v27  ;;  %v1661_v25 = vadd.f32 %v5145_v4, %v1522_v14  ;;  %v579_v27 = vpop.f32.mrf.mxu0 }
 0x216   :  { %v3607_v8 = vunpack.c.l.b16 %v4635_v61  ;;  %v3608_v7 = vunpack.c.h.b16 %v4635_v61  ;;  %v5888_v21 = vpack.c.bf16 %v5881_v32, %v5875_v19  ;;  %v5890_v18 = vmax.f32 %v2640_v20, %v2641_v55 }
 0x217   :  { %v2643_v35 = vrot.slane %v2170_v53, 4  ;;  %v2043_v42 = vmul.f32 %v1915_v1, %v5139_v0  ;;  %v2044_v10 = vmul.f32 %v1916_v16, %v5143_v3  ;;  %v1789_v22 = vadd.f32 %v1661_v25, %v1327_v52 }
 0x218   :  { %v5895_v37 = vsel %vm3669_vm1, %v3607_v8, %v3605_v38  ;;  %v5898_v63 = vsel %vm3669_vm1, %v3608_v7, %v3606_v31  ;;  %v4068_v39 = vunpack.c.l.b16 %v5888_v21  ;;  %v4069_v56 = vunpack.c.h.b16 %v5888_v21 }
 0x219   :  { %v2644_v29 = vmax.f32 %v2170_v53, %v2643_v35  ;;  %v2171_v45 = vadd.f32 %v2043_v42, %v5145_v4  ;;  %v2172_v5 = vadd.f32 %v2044_v10, %v5153_v12  ;;  %v1917_v59 = vmax.f32 %v1789_v22, 0.0 }
 0x21a   :  { %v1329_v9 = vmax.f32 %v571_v15, 0.0  ;;  %v1328_v33 = vmax.f32 %v1016_v54, 0.0  ;;  %v1662_v47 = vadd.f32 %v5153_v12, %v1523_v34  ;;  %v1330_v40 = vmax.f32 %v573_v41, 0.0 }
 0x21b   :  { %v2645_v11 = vrot.slane %v2644_v29, 2  ;;  %v2649_v48 = vrot.slane %v2171_v45, 4  ;;  %v2655_v58 = vrot.slane %v2172_v5, 4  ;;  %v2045_v49 = vmul.f32 %v1917_v59, %v5139_v0 }
 0x21c   :  { %v1524_v38 = vmul.f32 %v5139_v0, %v1329_v9  ;;  %v1790_v31 = vadd.f32 %v1662_v47, %v1328_v33  ;;  %v1525_v57 = vmul.f32 %v5143_v3, %v1330_v40  ;;  %v1331_v2 = vmax.f32 %v1020_v23, 0.0 }
 0x21d   :  { %v2646_v28 = vmax.f32 %v2644_v29, %v2645_v11  ;;  %v2650_v60 = vmax.f32 %v2171_v45, %v2649_v48  ;;  %v2656_v46 = vmax.f32 %v2172_v5, %v2655_v58  ;;  %v2173_v24 = vadd.f32 %v2045_v49, %v5145_v4  ;;  %v1026_v49 = vpop.f32.mrf.mxu1 }
 0x21e   :  { %v1918_v36 = vmax.f32 %v1790_v31, 0.0  ;;  %v1663_v13 = vadd.f32 %v5145_v4, %v1524_v38  ;;  %v1333_v44 = vmax.f32 %v577_v26, 0.0  ;;  %v1332_v17 = vmax.f32 %v1022_v6, 0.0 }
 0x21f   :  { %v2647_v50 = vrot.slane %v2646_v28, 1  ;;  %v2651_v51 = vrot.slane %v2650_v60, 2  ;;  %v2657_v20 = vrot.slane %v2656_v46, 2  ;;  %v2661_v62 = vrot.slane %v2173_v24, 4 }
 0x220   :  { %v2046_v43 = vmul.f32 %v1918_v36, %v5143_v3  ;;  %v1791_v14 = vadd.f32 %v1663_v13, %v1331_v2  ;;  %v1526_v30 = vmul.f32 %v5139_v0, %v1333_v44  ;;  %v1664_v52 = vadd.f32 %v5153_v12, %v1525_v57 }
 0x221   :  { %v2648_v15 = vmax.f32 %v2646_v28, %v2647_v50  ;;  %v2652_v54 = vmax.f32 %v2650_v60, %v2651_v51  ;;  %v2658_v61 = vmax.f32 %v2656_v46, %v2657_v20  ;;  %v2662_v55 = vmax.f32 %v2173_v24, %v2661_v62  ;;  %v583_v46 = vpop.f32.mrf.mxu0  ;;  %v1028_v50 = vpop.f32.mrf.mxu1 }
 0x222   :  { %v2174_v1 = vadd.f32 %v2046_v43, %v5153_v12  ;;  %v1919_v53 = vmax.f32 %v1791_v14, 0.0  ;;  %v1792_v16 = vadd.f32 %v1664_v52, %v1332_v17  ;;  %v1334_v34 = vmax.f32 %v579_v27, 0.0 }
 0x223   :  { %v4636_v25 = vpack.c.bf16 %v2648_v15, %v5890_v18  ;;  %v2653_v8 = vrot.slane %v2652_v54, 1  ;;  %v2659_v7 = vrot.slane %v2658_v61, 1  ;;  %v2663_v35 = vrot.slane %v2662_v55, 2  ;;  %v585_v52 = vpop.f32.mrf.mxu0 }
 0x224   :  { %v2667_v42 = vrot.slane %v2174_v1, 4  ;;  %v2047_v10 = vmul.f32 %v1919_v53, %v5139_v0  ;;  %v1920_v22 = vmax.f32 %v1792_v16, 0.0  ;;  %v1527_v41 = vmul.f32 %v5143_v3, %v1334_v34  ;;  %v1032_v34 = vpop.f32.mrf.mxu1 }
 0x225   :  { %v3609_v23 = vunpack.c.l.b16 %v4636_v25  ;;  %v3610_v29 = vunpack.c.h.b16 %v4636_v25  ;;  %v2654_v45 = vmax.f32 %v2652_v54, %v2653_v8  ;;  %v2660_v5 = vmax.f32 %v2658_v61, %v2659_v7 }
 0x226   :  { %v2664_v59 = vmax.f32 %v2662_v55, %v2663_v35  ;;  %v2668_v9 = vmax.f32 %v2174_v1, %v2667_v42  ;;  %v2175_v33 = vadd.f32 %v2047_v10, %v5145_v4  ;;  %v2048_v47 = vmul.f32 %v1920_v22, %v5143_v3  ;;  %v589_v22 = vpop.f32.mrf.mxu0 }
 0x227   :  { %v3733_v40 = vsel %vm3671_vm2, %v3609_v23, %v5895_v37  ;;  %v3740_v11 = vsel %vm3671_vm2, %v3610_v29, %v5898_v63  ;;  %v3031_v48 = vmax.f32 %v5890_v18, %v2654_v45  ;;  %v3032_v58 = vmax.f32 %v2648_v15, %v2660_v5 }
 0x228   :  { %v4637_v26 = vpack.c.bf16 %v2660_v5, %v2654_v45  ;;  %v2665_v6 = vrot.slane %v2664_v59, 1  ;;  %v2669_v38 = vrot.slane %v2668_v9, 2  ;;  %v2673_v31 = vrot.slane %v2175_v33, 4 }
 0x229   :  { %v3077_v57 = vmax.f32 %v5875_v19, %v3031_v48  ;;  %v3078_v2 = vmax.f32 %v5881_v32, %v3032_v58  ;;  %v4683_v28 = vpack.c.bf16 %v3032_v58, %v3031_v48  ;;  %v2176_v60 = vadd.f32 %v2048_v47, %v5153_v12 }
 0x22a   :  { %v3611_v37 = vunpack.c.l.b16 %v4637_v26  ;;  %v3612_v24 = vunpack.c.h.b16 %v4637_v26  ;;  %v2666_v36 = vmax.f32 %v2664_v59, %v2665_v6  ;;  %v2670_v63 = vmax.f32 %v2668_v9, %v2669_v38  ;;  %v591_v38 = vpop.f32.mrf.mxu0 }
 0x22b   :  { %v4070_v13 = vunpack.c.l.b16 %v4683_v28  ;;  %v4071_v18 = vunpack.c.h.b16 %v4683_v28  ;;  %v5927_v44 = vpack.c.bf16 %v3078_v2, %v3077_v57  ;;  %v2674_v17 = vmax.f32 %v2175_v33, %v2673_v31  ;;  %v1034_v33 = vpop.f32.mrf.mxu1 }
 0x22c   :  { %v3734_v51 = vsel %vm3673_vm3, %v3611_v37, %v3733_v40  ;;  %v3741_v19 = vsel %vm3673_vm3, %v3612_v24, %v3740_v11  ;;  %v2671_v20 = vrot.slane %v2670_v63, 1  ;;  %v2679_v32 = vrot.slane %v2176_v60, 4 }
 0x22d   :  { %v5934_v62 = vsel %vm3669_vm1, %v4070_v13, %v4068_v39  ;;  %v5939_v27 = vsel %vm3669_vm1, %v4071_v18, %v4069_v56  ;;  %v4296_v43 = vunpack.c.l.b16 %v5927_v44  ;;  %v4297_v14 = vunpack.c.h.b16 %v5927_v44 }
 0x22e   :  { %v2672_v15 = vmax.f32 %v2670_v63, %v2671_v20  ;;  %v2675_v54 = vrot.slane %v2674_v17, 2  ;;  %v2680_v61 = vmax.f32 %v2176_v60, %v2679_v32  ;;  %v1335_v55 = vmax.f32 %v1026_v49, 0.0  ;;  %v1038_v63 = vpop.f32.mrf.mxu1 }
 0x22f   :  { %v1665_v1 = vadd.f32 %v5145_v4, %v1526_v30  ;;  %v1337_v53 = vmax.f32 %v583_v46, 0.0  ;;  %v1336_v16 = vmax.f32 %v1028_v50, 0.0  ;;  %v1666_v39 = vadd.f32 %v5153_v12, %v1527_v41 }
 0x230   :  { %v4638_v21 = vpack.c.bf16 %v2672_v15, %v2666_v36  ;;  %v2676_v25 = vmax.f32 %v2674_v17, %v2675_v54  ;;  %v2681_v56 = vrot.slane %v2680_v61, 2  ;;  %v1338_v8 = vmax.f32 %v585_v52, 0.0 }
 0x231   :  { %v1793_v7 = vadd.f32 %v1665_v1, %v1335_v55  ;;  %v1528_v35 = vmul.f32 %v5139_v0, %v1337_v53  ;;  %v1794_v42 = vadd.f32 %v1666_v39, %v1336_v16  ;;  %v1339_v10 = vmax.f32 %v1032_v34, 0.0  ;;  %v595_v55 = vpop.f32.mrf.mxu0  ;;  %v1040_v39 = vpop.f32.mrf.mxu1 }
 0x232   :  { %v3613_v23 = vunpack.c.l.b16 %v4638_v21  ;;  %v3614_v29 = vunpack.c.h.b16 %v4638_v21  ;;  %v2677_v45 = vrot.slane %v2676_v25, 1  ;;  %v2682_v5 = vmax.f32 %v2680_v61, %v2681_v56 }
 0x233   :  { %v1921_v30 = vmax.f32 %v1793_v7, 0.0  ;;  %v1922_v59 = vmax.f32 %v1794_v42, 0.0  ;;  %v1529_v9 = vmul.f32 %v5143_v3, %v1338_v8  ;;  %v1667_v41 = vadd.f32 %v5145_v4, %v1528_v35 }
 0x234   :  { %v3735_v47 = vsel %vm3675_vm4, %v3613_v23, %v3734_v51  ;;  %v3742_v40 = vsel %vm3675_vm4, %v3614_v29, %v3741_v19  ;;  %v2678_v11 = vmax.f32 %v2676_v25, %v2677_v45  ;;  %v2683_v48 = vrot.slane %v2682_v5, 1  ;;  %v597_v45 = vpop.f32.mrf.mxu0 }
 0x235   :  { %v2049_v58 = vmul.f32 %v1921_v30, %v5139_v0  ;;  %v2050_v49 = vmul.f32 %v1922_v59, %v5143_v3  ;;  %v1795_v26 = vadd.f32 %v1667_v41, %v1339_v10  ;;  %v1341_v6 = vmax.f32 %v589_v22, 0.0  ;;  %v1044_v41 = vpop.f32.mrf.mxu1 }
 0x236   :  { %v5952_v31 = vmax.f32 %v2666_v36, %v2678_v11  ;;  %v2684_v57 = vmax.f32 %v2682_v5, %v2683_v48  ;;  %v1340_v2 = vmax.f32 %v1034_v33, 0.0  ;;  %v1668_v28 = vadd.f32 %v5153_v12, %v1529_v9 }
 0x237   :  { %v2177_v60 = vadd.f32 %v2049_v58, %v5145_v4  ;;  %v2178_v46 = vadd.f32 %v2050_v49, %v5153_v12  ;;  %v1923_v37 = vmax.f32 %v1795_v26, 0.0  ;;  %v1530_v24 = vmul.f32 %v5139_v0, %v1341_v6 }
 0x238   :  { %v5958_v13 = vmax.f32 %v2672_v15, %v2684_v57  ;;  %v4639_v18 = vpack.c.bf16 %v2684_v57, %v2678_v11  ;;  %v1796_v17 = vadd.f32 %v1668_v28, %v1340_v2  ;;  %v1342_v50 = vmax.f32 %v591_v38, 0.0  ;;  %v601_v57 = vpop.f32.mrf.mxu0 }
 0x239   :  { %v2685_v51 = vrot.slane %v2177_v60, 4  ;;  %v2691_v36 = vrot.slane %v2178_v46, 4  ;;  %v2051_v19 = vmul.f32 %v1923_v37, %v5139_v0  ;;  %v1343_v20 = vmax.f32 %v1038_v63, 0.0  ;;  %v1046_v37 = vpop.f32.mrf.mxu1 }
 0x23a   :  { %v3615_v32 = vunpack.c.l.b16 %v4639_v18  ;;  %v3616_v52 = vunpack.c.h.b16 %v4639_v18  ;;  %v4684_v54 = vpack.c.bf16 %v5958_v13, %v5952_v31  ;;  %v1924_v61 = vmax.f32 %v1796_v17, 0.0 }
 0x23b   :  { %v2686_v1 = vmax.f32 %v2177_v60, %v2685_v51  ;;  %v2692_v53 = vmax.f32 %v2178_v46, %v2691_v36  ;;  %v2179_v15 = vadd.f32 %v2051_v19, %v5145_v4  ;;  %v1531_v16 = vmul.f32 %v5143_v3, %v1342_v50 }
 0x23c   :  { %v3736_v34 = vsel %vm3677_vm5, %v3615_v32, %v3735_v47  ;;  %v3743_v21 = vsel %vm3677_vm5, %v3616_v52, %v3742_v40  ;;  %v4072_v25 = vunpack.c.l.b16 %v4684_v54  ;;  %v4073_v56 = vunpack.c.h.b16 %v4684_v54 }
 0x23d   :  { %v2687_v8 = vrot.slane %v2686_v1, 2  ;;  %v2693_v7 = vrot.slane %v2692_v53, 2  ;;  %v2697_v35 = vrot.slane %v2179_v15, 4  ;;  %v2052_v42 = vmul.f32 %v1924_v61, %v5143_v3 }
 0x23e   :  { %v5970_v10 = vsel %vm3671_vm2, %v4072_v25, %v5934_v62  ;;  %v5974_v22 = vsel %vm3671_vm2, %v4073_v56, %v5939_v27  ;;  %v1669_v23 = vadd.f32 %v5145_v4, %v1530_v24  ;;  %v1345_v29 = vmax.f32 %v595_v55, 0.0  ;;  %v603_v56 = vpop.f32.mrf.mxu0 }
 0x23f   :  { %v2688_v5 = vmax.f32 %v2686_v1, %v2687_v8  ;;  %v2694_v30 = vmax.f32 %v2692_v53, %v2693_v7  ;;  %v2698_v59 = vmax.f32 %v2179_v15, %v2697_v35  ;;  %v2180_v9 = vadd.f32 %v2052_v42, %v5153_v12 }
 0x240   :  { %v1797_v33 = vadd.f32 %v1669_v23, %v1343_v20  ;;  %v1532_v47 = vmul.f32 %v5139_v0, %v1345_v29  ;;  %v1344_v40 = vmax.f32 %v1040_v39, 0.0  ;;  %v1670_v62 = vadd.f32 %v5153_v12, %v1531_v16 }
 0x241   :  { %v2689_v11 = vrot.slane %v2688_v5, 1  ;;  %v2695_v48 = vrot.slane %v2694_v30, 1  ;;  %v2699_v27 = vrot.slane %v2698_v59, 2  ;;  %v2703_v58 = vrot.slane %v2180_v9, 4 }
 0x242   :  { %v1925_v49 = vmax.f32 %v1797_v33, 0.0  ;;  %v1798_v26 = vadd.f32 %v1670_v62, %v1344_v40  ;;  %v1346_v6 = vmax.f32 %v597_v45, 0.0  ;;  %v1347_v38 = vmax.f32 %v1044_v41, 0.0 }
 0x243   :  { %v2690_v2 = vmax.f32 %v2688_v5, %v2689_v11  ;;  %v2696_v28 = vmax.f32 %v2694_v30, %v2695_v48  ;;  %v2700_v60 = vmax.f32 %v2698_v59, %v2699_v27  ;;  %v2704_v46 = vmax.f32 %v2180_v9, %v2703_v58  ;;  %v1050_v30 = vpop.f32.mrf.mxu1 }
 0x244   :  { %v2053_v24 = vmul.f32 %v1925_v49, %v5139_v0  ;;  %v1926_v63 = vmax.f32 %v1798_v26, 0.0  ;;  %v1533_v18 = vmul.f32 %v5143_v3, %v1346_v6  ;;  %v1671_v17 = vadd.f32 %v5145_v4, %v1532_v47 }
 0x245   :  { %v4640_v50 = vpack.c.bf16 %v2696_v28, %v2690_v2  ;;  %v2701_v51 = vrot.slane %v2700_v60, 1  ;;  %v2705_v36 = vrot.slane %v2704_v46, 2  ;;  %v1349_v19 = vmax.f32 %v601_v57, 0.0 }
 0x246   :  { %v2181_v20 = vadd.f32 %v2053_v24, %v5145_v4  ;;  %v2054_v32 = vmul.f32 %v1926_v63, %v5143_v3  ;;  %v1799_v52 = vadd.f32 %v1671_v17, %v1347_v38  ;;  %v1348_v54 = vmax.f32 %v1046_v37, 0.0  ;;  %v607_v38 = vpop.f32.mrf.mxu0  ;;  %v1052_v63 = vpop.f32.mrf.mxu1 }
 0x247   :  { %v3617_v61 = vunpack.c.l.b16 %v4640_v50  ;;  %v3618_v55 = vunpack.c.h.b16 %v4640_v50  ;;  %v2702_v1 = vmax.f32 %v2700_v60, %v2701_v51  ;;  %v2706_v53 = vmax.f32 %v2704_v46, %v2705_v36 }
 0x248   :  { %v2709_v15 = vrot.slane %v2181_v20, 4  ;;  %v2182_v16 = vadd.f32 %v2054_v32, %v5153_v12  ;;  %v1927_v39 = vmax.f32 %v1799_v52, 0.0  ;;  %v1534_v25 = vmul.f32 %v5139_v0, %v1349_v19 }
 0x249   :  { %v3737_v8 = vsel %vm3679_vm6, %v3617_v61, %v3736_v34  ;;  %v3744_v7 = vsel %vm3679_vm6, %v3618_v55, %v3743_v21  ;;  %v3035_v35 = vmax.f32 %v2690_v2, %v2702_v1  ;;  %v2707_v42 = vrot.slane %v2706_v53, 1 }
 0x24a   :  { %v2710_v23 = vmax.f32 %v2181_v20, %v2709_v15  ;;  %v2715_v29 = vrot.slane %v2182_v16, 4  ;;  %v2055_v45 = vmul.f32 %v1927_v39, %v5139_v0  ;;  %v1672_v5 = vadd.f32 %v5153_v12, %v1533_v18  ;;  %v1056_v39 = vpop.f32.mrf.mxu1 }
 0x24b   :  { %v3079_v59 = vmax.f32 %v5952_v31, %v3035_v35  ;;  %v2708_v9 = vmax.f32 %v2706_v53, %v2707_v42  ;;  %v1350_v41 = vmax.f32 %v603_v56, 0.0  ;;  %v1351_v33 = vmax.f32 %v1050_v30, 0.0 }
 0x24c   :  { %v2711_v47 = vrot.slane %v2710_v23, 2  ;;  %v2716_v40 = vmax.f32 %v2182_v16, %v2715_v29  ;;  %v2183_v34 = vadd.f32 %v2055_v45, %v5145_v4  ;;  %v1800_v62 = vadd.f32 %v1672_v5, %v1348_v54 }
 0x24d   :  { %v3036_v21 = vmax.f32 %v2696_v28, %v2708_v9  ;;  %v4641_v11 = vpack.c.bf16 %v2708_v9, %v2702_v1  ;;  %v1535_v48 = vmul.f32 %v5143_v3, %v1350_v41  ;;  %v1673_v27 = vadd.f32 %v5145_v4, %v1534_v25 }
 0x24e   :  { %v2712_v58 = vmax.f32 %v2710_v23, %v2711_v47  ;;  %v2717_v49 = vrot.slane %v2716_v40, 2  ;;  %v2721_v26 = vrot.slane %v2183_v34, 4  ;;  %v1928_v6 = vmax.f32 %v1800_v62, 0.0 }
 0x24f   :  { %v3080_v31 = vmax.f32 %v5958_v13, %v3036_v21  ;;  %v3619_v57 = vunpack.c.l.b16 %v4641_v11  ;;  %v3620_v2 = vunpack.c.h.b16 %v4641_v11  ;;  %v4685_v60 = vpack.c.bf16 %v3036_v21, %v3035_v35  ;;  %v609_v13 = vpop.f32.mrf.mxu0 }
 0x250   :  { %v2713_v46 = vrot.slane %v2712_v58, 1  ;;  %v2718_v37 = vmax.f32 %v2716_v40, %v2717_v49  ;;  %v2722_v24 = vmax.f32 %v2183_v34, %v2721_v26  ;;  %v2056_v28 = vmul.f32 %v1928_v6, %v5143_v3 }
 0x251   :  { %v3738_v18 = vsel %vm3681_vm7, %v3619_v57, %v3737_v8  ;;  %v3745_v17 = vsel %vm3681_vm7, %v3620_v2, %v3744_v7  ;;  %v4074_v50 = vunpack.c.l.b16 %v4685_v60  ;;  %v4075_v51 = vunpack.c.h.b16 %v4685_v60  ;;  %v613_v23 = vpop.f32.mrf.mxu0 }
 0x252   :  { %v3792_v36 = vpack.c.b16 %v3745_v17, %v3738_v18  ;;  %v4707_v19 = vpack.c.bf16 %v3080_v31, %v3079_v59  ;;  %v2714_v20 = vmax.f32 %v2712_v58, %v2713_v46  ;;  %v2719_v32 = vrot.slane %v2718_v37, 1 }
 0x253   :  { %v6001_v52 = vsel %vm3673_vm3, %v4074_v50, %v5970_v10  ;;  %v6005_v54 = vsel %vm3673_vm3, %v4075_v51, %v5974_v22  ;;  %v2723_v61 = vrot.slane %v2722_v24, 2  ;;  %v2184_v55 = vadd.f32 %v2056_v28, %v5153_v12  ;;  %v615_v21 = vpop.f32.mrf.mxu0 }
 0x254   :  { %3808 = vst [vmem:[#allocation2 + $0x38] sm:$0xff] %v3792_v36  ;;  %v4298_v1 = vunpack.c.l.b16 %v4707_v19  ;;  %v4299_v53 = vunpack.c.h.b16 %v4707_v19  ;;  %v2720_v15 = vmax.f32 %v2718_v37, %v2719_v32  ;;  %v1801_v16 = vadd.f32 %v1673_v27, %v1351_v33 }
 0x255   :  { %v2724_v25 = vmax.f32 %v2722_v24, %v2723_v61  ;;  %v2727_v56 = vrot.slane %v2184_v55, 4  ;;  %v1353_v8 = vmax.f32 %v607_v38, 0.0  ;;  %v1352_v7 = vmax.f32 %v1052_v63, 0.0  ;;  %v619_v18 = vpop.f32.mrf.mxu0 }
 0x256   :  { %v6011_v10 = vsel %vm3669_vm1, %v4298_v1, %v4296_v43  ;;  %v6016_v22 = vsel %vm3669_vm1, %v4299_v53, %v4297_v14  ;;  %v6018_v35 = vpack.c.bf16 %v2720_v15, %v2714_v20  ;;  %v1929_v42 = vmax.f32 %v1801_v16, 0.0  ;;  %v1058_v43 = vpop.f32.mrf.mxu1 }
 0x257   :  { %v2725_v29 = vrot.slane %v2724_v25, 1  ;;  %v2728_v45 = vmax.f32 %v2184_v55, %v2727_v56  ;;  %v1536_v5 = vmul.f32 %v5139_v0, %v1353_v8  ;;  %v1674_v30 = vadd.f32 %v5153_v12, %v1535_v48 }
 0x258   :  { %v2057_v59 = vmul.f32 %v1929_v42, %v5139_v0  ;;  %v1354_v9 = vmax.f32 %v609_v13, 0.0  ;;  %v3621_v41 = vunpack.c.l.b16 %v6018_v35  ;;  %v1355_v14 = vmax.f32 %v1056_v39, 0.0  ;;  %v1062_v31 = vpop.f32.mrf.mxu1 }
 0x259   :  { %v2729_v44 = vrot.slane %v2728_v45, 2  ;;  %v1802_v33 = vadd.f32 %v1674_v30, %v1352_v7  ;;  %v1675_v34 = vadd.f32 %v5145_v4, %v1536_v5  ;;  %v1357_v62 = vmax.f32 %v613_v23, 0.0 }
 0x25a   :  { %v2185_v47 = vadd.f32 %v2057_v59, %v5145_v4  ;;  %v1537_v40 = vmul.f32 %v5143_v3, %v1354_v9  ;;  %v2726_v11 = vmax.f32 %v2724_v25, %v2725_v29  ;;  %v1356_v58 = vmax.f32 %v1058_v43, 0.0  ;;  %v1064_v5 = vpop.f32.mrf.mxu1 }
 0x25b   :  { %v2730_v27 = vmax.f32 %v2728_v45, %v2729_v44  ;;  %v1930_v48 = vmax.f32 %v1802_v33, 0.0  ;;  %v1803_v26 = vadd.f32 %v1675_v34, %v1355_v14  ;;  %v1538_v6 = vmul.f32 %v5139_v0, %v1357_v62 }
 0x25c   :  { %v2733_v49 = vrot.slane %v2185_v47, 4  ;;  %v1676_v38 = vadd.f32 %v5153_v12, %v1537_v40  ;;  %v3622_v57 = vunpack.c.h.b16 %v6018_v35  ;;  %v1359_v46 = vmax.f32 %v1062_v31, 0.0 }
 0x25d   :  { %v2731_v2 = vrot.slane %v2730_v27, 1  ;;  %v2058_v60 = vmul.f32 %v1930_v48, %v5143_v3  ;;  %v1931_v24 = vmax.f32 %v1803_v26, 0.0  ;;  %v1677_v63 = vadd.f32 %v5145_v4, %v1538_v6 }
 0x25e   :  { %v2734_v37 = vmax.f32 %v2185_v47, %v2733_v49  ;;  %v1804_v28 = vadd.f32 %v1676_v38, %v1356_v58  ;;  %v6032_v17 = vmax.f32 %v2714_v20, %v2726_v11  ;;  %v1358_v36 = vmax.f32 %v615_v21, 0.0  ;;  %v621_v47 = vpop.f32.mrf.mxu0  ;;  %v1068_v58 = vpop.f32.mrf.mxu1 }
 0x25f   :  { %v2732_v50 = vmax.f32 %v2730_v27, %v2731_v2  ;;  %v2186_v51 = vadd.f32 %v2058_v60, %v5153_v12  ;;  %v2059_v32 = vmul.f32 %v1931_v24, %v5139_v0  ;;  %v1805_v61 = vadd.f32 %v1677_v63, %v1359_v46 }
 0x260   :  { %v2735_v19 = vrot.slane %v2734_v37, 2  ;;  %v1932_v13 = vmax.f32 %v1804_v28, 0.0  ;;  %v1361_v16 = vmax.f32 %v619_v18, 0.0  ;;  %v1360_v21 = vmax.f32 %v1064_v5, 0.0  ;;  %v625_v46 = vpop.f32.mrf.mxu0 }
 0x261   :  { %v6036_v55 = vmax.f32 %v2720_v15, %v2732_v50  ;;  %v4643_v1 = vpack.c.bf16 %v2732_v50, %v2726_v11  ;;  %v2739_v53 = vrot.slane %v2186_v51, 4  ;;  %v2187_v25 = vadd.f32 %v2059_v32, %v5145_v4 }
 0x262   :  { %v2736_v39 = vmax.f32 %v2734_v37, %v2735_v19  ;;  %v2060_v20 = vmul.f32 %v1932_v13, %v5143_v3  ;;  %v1933_v56 = vmax.f32 %v1805_v61, 0.0  ;;  %v1539_v15 = vmul.f32 %v5143_v3, %v1358_v36  ;;  %v1070_v19 = vpop.f32.mrf.mxu1 }
 0x263   :  { %v3623_v8 = vunpack.c.l.b16 %v4643_v1  ;;  %v3624_v7 = vunpack.c.h.b16 %v4643_v1  ;;  %v4686_v35 = vpack.c.bf16 %v6036_v55, %v6032_v17  ;;  %v2740_v42 = vmax.f32 %v2186_v51, %v2739_v53 }
 0x264   :  { %v2745_v23 = vrot.slane %v2187_v25, 4  ;;  %v2188_v29 = vadd.f32 %v2060_v20, %v5153_v12  ;;  %v2061_v45 = vmul.f32 %v1933_v56, %v5139_v0  ;;  %v2737_v59 = vrot.slane %v2736_v39, 1 }
 0x265   :  { %v6046_v30 = vsel %vm3669_vm1, %v3623_v8, %v3621_v41  ;;  %v1540_v9 = vmul.f32 %v5139_v0, %v1361_v16  ;;  %v6050_v43 = vsel %vm3669_vm1, %v3624_v7, %v3622_v57  ;;  %v2741_v44 = vrot.slane %v2740_v42, 2 }
 0x266   :  { %v2746_v33 = vmax.f32 %v2187_v25, %v2745_v23  ;;  %v2751_v14 = vrot.slane %v2188_v29, 4  ;;  %v4076_v40 = vunpack.c.l.b16 %v4686_v35  ;;  %v4077_v34 = vunpack.c.h.b16 %v4686_v35  ;;  %v627_v35 = vpop.f32.mrf.mxu0 }
 0x267   :  { %v2189_v62 = vadd.f32 %v2061_v45, %v5145_v4  ;;  %v2742_v11 = vmax.f32 %v2740_v42, %v2741_v44  ;;  %v1678_v41 = vadd.f32 %v5153_v12, %v1539_v15  ;;  %v1362_v26 = vmax.f32 %v621_v47, 0.0  ;;  %v1074_v47 = vpop.f32.mrf.mxu1 }
 0x268   :  { %v2747_v27 = vrot.slane %v2746_v33, 2  ;;  %v2752_v48 = vmax.f32 %v2188_v29, %v2751_v14  ;;  %v1363_v6 = vmax.f32 %v1068_v58, 0.0  ;;  %v1679_v38 = vadd.f32 %v5145_v4, %v1540_v9 }
 0x269   :  { %v2757_v49 = vrot.slane %v2189_v62, 4  ;;  %v2743_v31 = vrot.slane %v2742_v11, 1  ;;  %v1806_v60 = vadd.f32 %v1678_v41, %v1360_v21  ;;  %v2738_v37 = vmax.f32 %v2736_v39, %v2737_v59  ;;  %v631_v41 = vpop.f32.mrf.mxu0 }
 0x26a   :  { %v2748_v57 = vmax.f32 %v2746_v33, %v2747_v27  ;;  %v2753_v2 = vrot.slane %v2752_v48, 2  ;;  %v1541_v28 = vmul.f32 %v5143_v3, %v1362_v26  ;;  %v1807_v63 = vadd.f32 %v1679_v38, %v1363_v6 }
 0x26b   :  { %v2758_v24 = vmax.f32 %v2189_v62, %v2757_v49  ;;  %v2744_v18 = vmax.f32 %v2742_v11, %v2743_v31  ;;  %v1934_v36 = vmax.f32 %v1806_v60, 0.0  ;;  %v6058_v32 = vsel %vm3675_vm4, %v4076_v40, %v6001_v52 }
 0x26c   :  { %v2749_v50 = vrot.slane %v2748_v57, 1  ;;  %v2754_v51 = vmax.f32 %v2752_v48, %v2753_v2  ;;  %v1935_v61 = vmax.f32 %v1807_v63, 0.0  ;;  %v1365_v1 = vmax.f32 %v625_v46, 0.0  ;;  %v1076_v2 = vpop.f32.mrf.mxu1  ;;  %v633_v63 = vpop.f32.mrf.mxu0 }
 0x26d   :  { %v2759_v13 = vrot.slane %v2758_v24, 2  ;;  %v4644_v53 = vpack.c.bf16 %v2744_v18, %v2738_v37  ;;  %v2062_v39 = vmul.f32 %v1934_v36, %v5143_v3  ;;  %v1364_v8 = vmax.f32 %v1070_v19, 0.0 }
 0x26e   :  { %v2750_v16 = vmax.f32 %v2748_v57, %v2749_v50  ;;  %v2755_v25 = vrot.slane %v2754_v51, 1  ;;  %v2063_v56 = vmul.f32 %v1935_v61, %v5139_v0  ;;  %v1680_v7 = vadd.f32 %v5153_v12, %v1541_v28 }
 0x26f   :  { %v2760_v20 = vmax.f32 %v2758_v24, %v2759_v13  ;;  %v6065_v42 = vsel %vm3675_vm4, %v4077_v34, %v6005_v54  ;;  %v3625_v52 = vunpack.c.l.b16 %v4644_v53  ;;  %v3626_v15 = vunpack.c.h.b16 %v4644_v53  ;;  %v1080_v53 = vpop.f32.mrf.mxu1 }
 0x270   :  { %v3039_v23 = vmax.f32 %v2738_v37, %v2750_v16  ;;  %v2756_v29 = vmax.f32 %v2754_v51, %v2755_v25  ;;  %v2190_v45 = vadd.f32 %v2062_v39, %v5153_v12  ;;  %v2191_v5 = vadd.f32 %v2063_v56, %v5145_v4 }
 0x271   :  { %v1808_v59 = vadd.f32 %v1680_v7, %v1364_v8  ;;  %v2761_v33 = vrot.slane %v2760_v20, 1  ;;  %v1366_v14 = vmax.f32 %v627_v35, 0.0  ;;  %v1542_v54 = vmul.f32 %v5139_v0, %v1365_v1 }
 0x272   :  { %v3081_v9 = vmax.f32 %v6032_v17, %v3039_v23  ;;  %v3040_v44 = vmax.f32 %v2744_v18, %v2756_v29  ;;  %v4645_v40 = vpack.c.bf16 %v2756_v29, %v2750_v16  ;;  %v2763_v62 = vrot.slane %v2190_v45, 4 }
 0x273   :  { %v2769_v21 = vrot.slane %v2191_v5, 4  ;;  %v3747_v34 = vsel %vm3671_vm2, %v3625_v52, %v6046_v30  ;;  %v1936_v48 = vmax.f32 %v1808_v59, 0.0  ;;  %v3754_v17 = vsel %vm3671_vm2, %v3626_v15, %v6050_v43 }
 0x274   :  { %v3082_v11 = vmax.f32 %v6036_v55, %v3040_v44  ;;  %v6074_v27 = vpack.c.bf16 %v3040_v44, %v3039_v23  ;;  %v3627_v58 = vunpack.c.l.b16 %v4645_v40  ;;  %v2764_v49 = vmax.f32 %v2190_v45, %v2763_v62 }
 0x275   :  { %v2770_v26 = vmax.f32 %v2191_v5, %v2769_v21  ;;  %v2762_v38 = vmax.f32 %v2760_v20, %v2761_v33  ;;  %v2064_v31 = vmul.f32 %v1936_v48, %v5143_v3  ;;  %v1543_v57 = vmul.f32 %v5143_v3, %v1366_v14 }
 0x276   :  { %v4708_v6 = vpack.c.bf16 %v3082_v11, %v3081_v9  ;;  %v3628_v30 = vunpack.c.h.b16 %v4645_v40  ;;  %v4078_v55 = vunpack.c.l.b16 %v6074_v27  ;;  %v2765_v60 = vrot.slane %v2764_v49, 2  ;;  %v1082_v9 = vpop.f32.mrf.mxu1 }
 0x277   :  { %v2771_v46 = vrot.slane %v2770_v26, 2  ;;  %v3748_v37 = vsel %vm3673_vm3, %v3627_v58, %v3747_v34  ;;  %v4079_v24 = vunpack.c.h.b16 %v6074_v27  ;;  %v2192_v51 = vadd.f32 %v2064_v31, %v5153_v12 }
 0x278   :  { %v4300_v43 = vunpack.c.l.b16 %v4708_v6  ;;  %v4301_v28 = vunpack.c.h.b16 %v4708_v6  ;;  %v2766_v18 = vmax.f32 %v2764_v49, %v2765_v60  ;;  %v1367_v36 = vmax.f32 %v1074_v47, 0.0 }
 0x279   :  { %v2772_v50 = vmax.f32 %v2770_v26, %v2771_v46  ;;  %v1681_v61 = vadd.f32 %v5145_v4, %v1542_v54  ;;  %v1369_v1 = vmax.f32 %v631_v41, 0.0  ;;  %v2775_v39 = vrot.slane %v2192_v51, 4 }
 0x27a   :  { %v6086_v19 = vsel %vm3671_vm2, %v4300_v43, %v6011_v10  ;;  %v6090_v13 = vsel %vm3671_vm2, %v4301_v28, %v6016_v22  ;;  %v2767_v16 = vrot.slane %v2766_v18, 1  ;;  %v1368_v20 = vmax.f32 %v1076_v2, 0.0  ;;  %v637_v10 = vpop.f32.mrf.mxu0  ;;  %v1086_v43 = vpop.f32.mrf.mxu1 }
 0x27b   :  { %v2773_v25 = vrot.slane %v2772_v50, 1  ;;  %v1809_v56 = vadd.f32 %v1681_v61, %v1367_v36  ;;  %v1544_v8 = vmul.f32 %v5139_v0, %v1369_v1  ;;  %v1682_v7 = vadd.f32 %v5153_v12, %v1543_v57 }
 0x27c   :  { %v1370_v35 = vmax.f32 %v633_v63, 0.0  ;;  %v3755_v52 = vsel %vm3673_vm3, %v3628_v30, %v3754_v17  ;;  %v2768_v23 = vmax.f32 %v2766_v18, %v2767_v16  ;;  %v2776_v22 = vmax.f32 %v2192_v51, %v2775_v39  ;;  %v639_v34 = vpop.f32.mrf.mxu0 }
 0x27d   :  { %v1371_v29 = vmax.f32 %v1080_v53, 0.0  ;;  %v1937_v15 = vmax.f32 %v1809_v56, 0.0  ;;  %v1810_v45 = vadd.f32 %v1682_v7, %v1368_v20  ;;  %v1683_v59 = vadd.f32 %v5145_v4, %v1544_v8 }
 0x27e   :  { %v1545_v5 = vmul.f32 %v5143_v3, %v1370_v35  ;;  %v4646_v44 = vpack.c.bf16 %v2768_v23, %v2762_v38  ;;  %v2774_v33 = vmax.f32 %v2772_v50, %v2773_v25  ;;  %v2777_v14 = vrot.slane %v2776_v22, 2  ;;  %v643_v28 = vpop.f32.mrf.mxu0 }
 0x27f   :  { %v1373_v47 = vmax.f32 %v637_v10, 0.0  ;;  %v6100_v40 = vsel %vm3677_vm5, %v4078_v55, %v6058_v32  ;;  %v2065_v62 = vmul.f32 %v1937_v15, %v5139_v0  ;;  %v1938_v21 = vmax.f32 %v1810_v45, 0.0 }
 0x280   :  { %v1811_v54 = vadd.f32 %v1683_v59, %v1371_v29  ;;  %v3629_v11 = vunpack.c.l.b16 %v4646_v44  ;;  %v2778_v48 = vmax.f32 %v2776_v22, %v2777_v14  ;;  %v1372_v17 = vmax.f32 %v1082_v9, 0.0 }
 0x281   :  { %v1546_v41 = vmul.f32 %v5139_v0, %v1373_v47  ;;  %v2193_v58 = vadd.f32 %v2065_v62, %v5145_v4  ;;  %v2066_v49 = vmul.f32 %v1938_v21, %v5143_v3  ;;  %v1684_v6 = vadd.f32 %v5153_v12, %v1545_v5 }
 0x282   :  { %v1939_v26 = vmax.f32 %v1811_v54, 0.0  ;;  %v3630_v31 = vunpack.c.h.b16 %v4646_v44  ;;  %v3749_v32 = vsel %vm3675_vm4, %v3629_v11, %v3748_v37  ;;  %v6108_v57 = vmax.f32 %v2762_v38, %v2774_v33  ;;  %v645_v54 = vpop.f32.mrf.mxu0 }
 0x283   :  { %v2779_v2 = vrot.slane %v2778_v48, 1  ;;  %v2781_v30 = vrot.slane %v2193_v58, 4  ;;  %v2194_v55 = vadd.f32 %v2066_v49, %v5153_v12  ;;  %v1812_v46 = vadd.f32 %v1684_v6, %v1372_v17 }
 0x284   :  { %v2067_v60 = vmul.f32 %v1939_v26, %v5139_v0  ;;  %v1374_v18 = vmax.f32 %v639_v34, 0.0  ;;  %v1375_v50 = vmax.f32 %v1086_v43, 0.0  ;;  %v1685_v51 = vadd.f32 %v5145_v4, %v1546_v41 }
 0x285   :  { %v2780_v63 = vmax.f32 %v2778_v48, %v2779_v2  ;;  %v2782_v36 = vmax.f32 %v2193_v58, %v2781_v30  ;;  %v2787_v61 = vrot.slane %v2194_v55, 4  ;;  %v1940_v38 = vmax.f32 %v1812_v46, 0.0 }
 0x286   :  { %v2195_v37 = vadd.f32 %v2067_v60, %v5145_v4  ;;  %v1813_v16 = vadd.f32 %v1685_v51, %v1375_v50  ;;  %v1377_v25 = vmax.f32 %v643_v28, 0.0  ;;  %v4139_v5 = vsel %vm3677_vm5, %v4079_v24, %v6065_v42 }
 0x287   :  { %v6114_v1 = vmax.f32 %v2768_v23, %v2780_v63  ;;  %v4647_v53 = vpack.c.bf16 %v2780_v63, %v2774_v33  ;;  %v2783_v39 = vrot.slane %v2782_v36, 2  ;;  %v2788_v20 = vmax.f32 %v2194_v55, %v2787_v61  ;;  %v1088_v33 = vpop.f32.mrf.mxu1  ;;  %v649_v55 = vpop.f32.mrf.mxu0 }
 0x288   :  { %v2793_v56 = vrot.slane %v2195_v37, 4  ;;  %v2068_v8 = vmul.f32 %v1940_v38, %v5143_v3  ;;  %v1941_v22 = vmax.f32 %v1813_v16, 0.0  ;;  %v3756_v59 = vsel %vm3675_vm4, %v3630_v31, %v3755_v52 }
 0x289   :  { %v3631_v7 = vunpack.c.l.b16 %v4647_v53  ;;  %v3632_v35 = vunpack.c.h.b16 %v4647_v53  ;;  %v4688_v10 = vpack.c.bf16 %v6114_v1, %v6108_v57  ;;  %v2784_v29 = vmax.f32 %v2782_v36, %v2783_v39  ;;  %v1092_v6 = vpop.f32.mrf.mxu1 }
 0x28a   :  { %v2789_v15 = vrot.slane %v2788_v20, 2  ;;  %v2794_v45 = vmax.f32 %v2195_v37, %v2793_v56  ;;  %v2196_v23 = vadd.f32 %v2068_v8, %v5153_v12  ;;  %v1547_v44 = vmul.f32 %v5143_v3, %v1374_v18 }
 0x28b   :  { %v3750_v9 = vsel %vm3677_vm5, %v3631_v7, %v3749_v32  ;;  %v2785_v14 = vrot.slane %v2784_v29, 1  ;;  %v3757_v34 = vsel %vm3677_vm5, %v3632_v35, %v3756_v59  ;;  %v4080_v11 = vunpack.c.l.b16 %v4688_v10  ;;  %v1094_v53 = vpop.f32.mrf.mxu1 }
 0x28c   :  { %v2790_v47 = vmax.f32 %v2788_v20, %v2789_v15  ;;  %v2795_v62 = vrot.slane %v2794_v45, 2  ;;  %v2799_v21 = vrot.slane %v2196_v23, 4  ;;  %v2069_v48 = vmul.f32 %v1941_v22, %v5139_v0 }
 0x28d   :  { %v1548_v27 = vmul.f32 %v5139_v0, %v1377_v25  ;;  %v2786_v42 = vmax.f32 %v2784_v29, %v2785_v14  ;;  %v1376_v58 = vmax.f32 %v1088_v33, 0.0  ;;  %v1686_v49 = vadd.f32 %v5153_v12, %v1547_v44 }
 0x28e   :  { %v2791_v24 = vrot.slane %v2790_v47, 1  ;;  %v2796_v52 = vmax.f32 %v2794_v45, %v2795_v62  ;;  %v2800_v41 = vmax.f32 %v2196_v23, %v2799_v21  ;;  %v2197_v17 = vadd.f32 %v2069_v48, %v5145_v4  ;;  %v651_v45 = vpop.f32.mrf.mxu0 }
 0x28f   :  { %v1378_v26 = vmax.f32 %v645_v54, 0.0  ;;  %v1379_v30 = vmax.f32 %v1092_v6, 0.0  ;;  %v4081_v60 = vunpack.c.h.b16 %v4688_v10  ;;  %v1814_v43 = vadd.f32 %v1686_v49, %v1376_v58 }
 0x290   :  { %v2792_v31 = vmax.f32 %v2790_v47, %v2791_v24  ;;  %v2797_v32 = vrot.slane %v2796_v52, 1  ;;  %v2801_v2 = vrot.slane %v2800_v41, 2  ;;  %v2805_v46 = vrot.slane %v2197_v17, 4 }
 0x291   :  { %v1687_v28 = vadd.f32 %v5145_v4, %v1548_v27  ;;  %v1549_v51 = vmul.f32 %v5143_v3, %v1378_v26  ;;  %v1942_v61 = vmax.f32 %v1814_v43, 0.0  ;;  %v1381_v38 = vmax.f32 %v649_v55, 0.0 }
 0x292   :  { %v4648_v63 = vpack.c.bf16 %v2792_v31, %v2786_v42  ;;  %v2798_v18 = vmax.f32 %v2796_v52, %v2797_v32  ;;  %v2802_v50 = vmax.f32 %v2800_v41, %v2801_v2  ;;  %v2806_v36 = vmax.f32 %v2197_v17, %v2805_v46  ;;  %v655_v52 = vpop.f32.mrf.mxu0 }
 0x293   :  { %v1815_v37 = vadd.f32 %v1687_v28, %v1379_v30  ;;  %v4133_v56 = vsel %vm3679_vm6, %v4080_v11, %v6100_v40  ;;  %v2070_v7 = vmul.f32 %v1942_v61, %v5143_v3  ;;  %v4140_v10 = vsel %vm3679_vm6, %v4081_v60, %v4139_v5  ;;  %v1098_v11 = vpop.f32.mrf.mxu1 }
 0x294   :  { %v3633_v16 = vunpack.c.l.b16 %v4648_v63  ;;  %v3634_v25 = vunpack.c.h.b16 %v4648_v63  ;;  %v3043_v39 = vmax.f32 %v2786_v42, %v2798_v18  ;;  %v2803_v20 = vrot.slane %v2802_v50, 1  ;;  %v657_v28 = vpop.f32.mrf.mxu0 }
 0x295   :  { %v2807_v8 = vrot.slane %v2806_v36, 2  ;;  %v1943_v35 = vmax.f32 %v1815_v37, 0.0  ;;  %v1380_v15 = vmax.f32 %v1094_v53, 0.0  ;;  %v2198_v23 = vadd.f32 %v2070_v7, %v5153_v12  ;;  %v1100_v55 = vpop.f32.mrf.mxu1 }
 0x296   :  { %v3083_v22 = vmax.f32 %v6108_v57, %v3043_v39  ;;  %v2804_v29 = vmax.f32 %v2802_v50, %v2803_v20  ;;  %v1550_v44 = vmul.f32 %v5139_v0, %v1381_v38  ;;  %v1688_v33 = vadd.f32 %v5153_v12, %v1549_v51 }
 0x297   :  { %v2071_v59 = vmul.f32 %v1943_v35, %v5139_v0  ;;  %v3751_v40 = vsel %vm3679_vm6, %v3633_v16, %v3750_v9  ;;  %v3758_v14 = vsel %vm3679_vm6, %v3634_v25, %v3757_v34  ;;  %v2808_v5 = vmax.f32 %v2806_v36, %v2807_v8  ;;  %v1104_v20 = vpop.f32.mrf.mxu1 }
 0x298   :  { %v3044_v47 = vmax.f32 %v2792_v31, %v2804_v29  ;;  %v4649_v62 = vpack.c.bf16 %v2804_v29, %v2798_v18  ;;  %v2811_v21 = vrot.slane %v2198_v23, 4  ;;  %v1816_v54 = vadd.f32 %v1688_v33, %v1380_v15 }
 0x299   :  { %v2199_v57 = vadd.f32 %v2071_v59, %v5145_v4  ;;  %v1382_v9 = vmax.f32 %v651_v45, 0.0  ;;  %v1383_v43 = vmax.f32 %v1098_v11, 0.0  ;;  %v1689_v37 = vadd.f32 %v5145_v4, %v1550_v44 }
 0x29a   :  { %v3084_v48 = vmax.f32 %v6114_v1, %v3044_v47  ;;  %v3635_v27 = vunpack.c.l.b16 %v4649_v62  ;;  %v3636_v42 = vunpack.c.h.b16 %v4649_v62  ;;  %v4689_v24 = vpack.c.bf16 %v3044_v47, %v3043_v39  ;;  %v1106_v47 = vpop.f32.mrf.mxu1 }
 0x29b   :  { %v2812_v41 = vmax.f32 %v2198_v23, %v2811_v21  ;;  %v2817_v17 = vrot.slane %v2199_v57, 4  ;;  %v1944_v58 = vmax.f32 %v1816_v54, 0.0  ;;  %v1551_v51 = vmul.f32 %v5143_v3, %v1382_v9 }
 0x29c   :  { %v3752_v34 = vsel %vm3681_vm7, %v3635_v27, %v3751_v40  ;;  %v3759_v49 = vsel %vm3681_vm7, %v3636_v42, %v3758_v14  ;;  %v4082_v26 = vunpack.c.l.b16 %v4689_v24  ;;  %v4083_v6 = vunpack.c.h.b16 %v4689_v24 }
 0x29d   :  { %v3793_v31 = vpack.c.b16 %v3759_v49, %v3752_v34  ;;  %v4709_v32 = vpack.c.bf16 %v3084_v48, %v3083_v22  ;;  %v2813_v2 = vrot.slane %v2812_v41, 2  ;;  %v2818_v30 = vmax.f32 %v2199_v57, %v2817_v17  ;;  %v1110_v34 = vpop.f32.mrf.mxu1 }
 0x29e   :  { %v4134_v1 = vsel %vm3681_vm7, %v4082_v26, %v4133_v56  ;;  %v4141_v60 = vsel %vm3681_vm7, %v4083_v6, %v4140_v10  ;;  %v2072_v46 = vmul.f32 %v1944_v58, %v5143_v3  ;;  %v1385_v38 = vmax.f32 %v655_v52, 0.0  ;;  %v661_v10 = vpop.f32.mrf.mxu0 }
 0x29f   :  { %3809 = vst [vmem:[#allocation2 + $0x40] sm:$0xff] %v3793_v31  ;;  %v4158_v63 = vpack.c.b16 %v4141_v60, %v4134_v1  ;;  %v4302_v18 = vunpack.c.l.b16 %v4709_v32  ;;  %v4303_v50 = vunpack.c.h.b16 %v4709_v32  ;;  %v2819_v36 = vrot.slane %v2818_v30, 2 }
 0x2a0   :  { %v2200_v61 = vadd.f32 %v2072_v46, %v5153_v12  ;;  %v2809_v25 = vrot.slane %v2808_v5, 1  ;;  %v2814_v39 = vmax.f32 %v2812_v41, %v2813_v2  ;;  %v1817_v7 = vadd.f32 %v1689_v37, %v1383_v43  ;;  %v663_v42 = vpop.f32.mrf.mxu0 }
 0x2a1   :  { %4166 = vst [vmem:[#allocation2 + $0x58] sm:$0xff] %v4158_v63  ;;  %v6157_v53 = vsel %vm3673_vm3, %v4302_v18, %v6086_v19  ;;  %v6161_v16 = vsel %vm3673_vm3, %v4303_v50, %v6090_v13  ;;  %v2820_v56 = vmax.f32 %v2818_v30, %v2819_v36  ;;  %v1552_v35 = vmul.f32 %v5139_v0, %v1385_v38 }
 0x2a2   :  { %v2823_v8 = vrot.slane %v2200_v61, 4  ;;  %v1384_v22 = vmax.f32 %v1100_v55, 0.0  ;;  %v1690_v29 = vadd.f32 %v5153_v12, %v1551_v51  ;;  %v1386_v15 = vmax.f32 %v657_v28, 0.0  ;;  %v667_v1 = vpop.f32.mrf.mxu0 }
 0x2a3   :  { %v1387_v45 = vmax.f32 %v1104_v20, 0.0  ;;  %v2821_v19 = vrot.slane %v2820_v56, 1  ;;  %v1945_v59 = vmax.f32 %v1817_v7, 0.0  ;;  %v1691_v13 = vadd.f32 %v5145_v4, %v1552_v35  ;;  %v1112_v20 = vpop.f32.mrf.mxu1 }
 0x2a4   :  { %v2824_v23 = vmax.f32 %v2200_v61, %v2823_v8  ;;  %v6166_v44 = vmax.f32 %v2808_v5, %v2809_v25  ;;  %v1818_v33 = vadd.f32 %v1690_v29, %v1384_v22  ;;  %v1553_v40 = vmul.f32 %v5143_v3, %v1386_v15  ;;  %v669_v15 = vpop.f32.mrf.mxu0 }
 0x2a5   :  { %v1389_v14 = vmax.f32 %v661_v10, 0.0  ;;  %v6169_v62 = vmax.f32 %v2820_v56, %v2821_v19  ;;  %v2073_v57 = vmul.f32 %v1945_v59, %v5139_v0  ;;  %v1819_v54 = vadd.f32 %v1691_v13, %v1387_v45 }
 0x2a6   :  { %v2825_v21 = vrot.slane %v2824_v23, 2  ;;  %v2815_v11 = vrot.slane %v2814_v39, 1  ;;  %v1946_v48 = vmax.f32 %v1818_v33, 0.0  ;;  %v1388_v58 = vmax.f32 %v1106_v47, 0.0  ;;  %v1116_v33 = vpop.f32.mrf.mxu1 }
 0x2a7   :  { %v1554_v27 = vmul.f32 %v5139_v0, %v1389_v14  ;;  %v6175_v5 = vmax.f32 %v6166_v44, %v6169_v62  ;;  %v2201_v52 = vadd.f32 %v2073_v57, %v5145_v4  ;;  %v1947_v41 = vmax.f32 %v1819_v54, 0.0 }
 0x2a8   :  { %v2826_v24 = vmax.f32 %v2824_v23, %v2825_v21  ;;  %v2074_v17 = vmul.f32 %v1946_v48, %v5143_v3  ;;  %v1692_v9 = vadd.f32 %v5153_v12, %v1553_v40  ;;  %v1391_v31 = vmax.f32 %v1110_v34, 0.0 }
 0x2a9   :  { %v2829_v26 = vrot.slane %v2201_v52, 4  ;;  %v2075_v6 = vmul.f32 %v1947_v41, %v5139_v0  ;;  %v2816_v32 = vmax.f32 %v2814_v39, %v2815_v11  ;;  %v1693_v55 = vadd.f32 %v5145_v4, %v1554_v27 }
 0x2aa   :  { %v2827_v49 = vrot.slane %v2826_v24, 1  ;;  %v2202_v2 = vadd.f32 %v2074_v17, %v5153_v12  ;;  %v1820_v30 = vadd.f32 %v1692_v9, %v1388_v58  ;;  %v1390_v28 = vmax.f32 %v663_v42, 0.0  ;;  %v1118_v17 = vpop.f32.mrf.mxu1 }
 0x2ab   :  { %v2830_v46 = vmax.f32 %v2201_v52, %v2829_v26  ;;  %v2203_v43 = vadd.f32 %v2075_v6, %v5145_v4  ;;  %v1821_v50 = vadd.f32 %v1693_v55, %v1391_v31  ;;  %v1393_v37 = vmax.f32 %v667_v1, 0.0 }
 0x2ac   :  { %v2828_v60 = vmax.f32 %v2826_v24, %v2827_v49  ;;  %v2835_v63 = vrot.slane %v2202_v2, 4  ;;  %v1948_v18 = vmax.f32 %v1820_v30, 0.0  ;;  %v1555_v7 = vmul.f32 %v5143_v3, %v1390_v28  ;;  %v673_v30 = vpop.f32.mrf.mxu0 }
 0x2ad   :  { %v2831_v36 = vrot.slane %v2830_v46, 2  ;;  %v2841_v61 = vrot.slane %v2203_v43, 4  ;;  %v1949_v39 = vmax.f32 %v1821_v50, 0.0  ;;  %v1556_v45 = vmul.f32 %v5139_v0, %v1393_v37 }
 0x2ae   :  { %v6184_v51 = vmax.f32 %v2816_v32, %v2828_v60  ;;  %v2836_v38 = vmax.f32 %v2202_v2, %v2835_v63  ;;  %v2076_v25 = vmul.f32 %v1948_v18, %v5143_v3  ;;  %v1392_v13 = vmax.f32 %v1112_v20, 0.0 }
 0x2af   :  { %v2832_v8 = vmax.f32 %v2830_v46, %v2831_v36  ;;  %v2842_v10 = vmax.f32 %v2203_v43, %v2841_v61  ;;  %v2077_v29 = vmul.f32 %v1949_v39, %v5139_v0  ;;  %v1694_v14 = vadd.f32 %v5153_v12, %v1555_v7  ;;  %v675_v39 = vpop.f32.mrf.mxu0 }
 0x2b0   :  { %v6189_v56 = vpack.c.bf16 %v6184_v51, %v6175_v5  ;;  %v2837_v35 = vrot.slane %v2836_v38, 2  ;;  %v2204_v22 = vadd.f32 %v2076_v25, %v5153_v12  ;;  %v1394_v47 = vmax.f32 %v669_v15, 0.0 }
 0x2b1   :  { %v2833_v19 = vrot.slane %v2832_v8, 1  ;;  %v2843_v23 = vrot.slane %v2842_v10, 2  ;;  %v2205_v40 = vadd.f32 %v2077_v29, %v5145_v4  ;;  %v1395_v21 = vmax.f32 %v1116_v33, 0.0  ;;  %v1122_v33 = vpop.f32.mrf.mxu1 }
 0x2b2   :  { %v2847_v59 = vrot.slane %v2204_v22, 4  ;;  %v2838_v57 = vmax.f32 %v2836_v38, %v2837_v35  ;;  %v1822_v27 = vadd.f32 %v1694_v14, %v1392_v13  ;;  %v1557_v42 = vmul.f32 %v5143_v3, %v1394_v47 }
 0x2b3   :  { %v2844_v54 = vmax.f32 %v2842_v10, %v2843_v23  ;;  %v2853_v48 = vrot.slane %v2205_v40, 4  ;;  %v1695_v24 = vadd.f32 %v5145_v4, %v1556_v45  ;;  %v6200_v58 = vpack.c.bf16 %v2816_v32, %v6166_v44 }
 0x2b4   :  { %v2848_v11 = vmax.f32 %v2204_v22, %v2847_v59  ;;  %v2834_v9 = vmax.f32 %v2832_v8, %v2833_v19  ;;  %v1950_v34 = vmax.f32 %v1822_v27, 0.0  ;;  %v2839_v26 = vrot.slane %v2838_v57, 1 }
 0x2b5   :  { %v2845_v52 = vrot.slane %v2844_v54, 1  ;;  %v1823_v49 = vadd.f32 %v1695_v24, %v1395_v21  ;;  %v2854_v2 = vmax.f32 %v2205_v40, %v2853_v48  ;;  %v1396_v46 = vmax.f32 %v1118_v17, 0.0 }
 0x2b6   :  { %v2849_v41 = vrot.slane %v2848_v11, 2  ;;  %v2078_v55 = vmul.f32 %v1950_v34, %v5143_v3  ;;  %v1696_v43 = vadd.f32 %v5153_v12, %v1557_v42  ;;  %v6207_v28 = vpack.c.bf16 %v2828_v60, %v6169_v62  ;;  %v1124_v34 = vpop.f32.mrf.mxu1 }
 0x2b7   :  { %v6202_v6 = vmax.f32 %v2844_v54, %v2845_v52  ;;  %v1951_v1 = vmax.f32 %v1823_v49, 0.0  ;;  %v3637_v63 = vunpack.c.l.b16 %v6200_v58  ;;  %v2840_v61 = vmax.f32 %v2838_v57, %v2839_v26  ;;  %v679_v57 = vpop.f32.mrf.mxu0 }
 0x2b8   :  { %v2850_v31 = vmax.f32 %v2848_v11, %v2849_v41  ;;  %v2206_v18 = vadd.f32 %v2078_v55, %v5153_v12  ;;  %v1824_v36 = vadd.f32 %v1696_v43, %v1396_v46  ;;  %v1397_v25 = vmax.f32 %v673_v30, 0.0 }
 0x2b9   :  { %v3047_v44 = vmax.f32 %v2834_v9, %v6202_v6  ;;  %v2079_v50 = vmul.f32 %v1951_v1, %v5139_v0  ;;  %v2855_v20 = vrot.slane %v2854_v2, 2  ;;  %v3638_v7 = vunpack.c.h.b16 %v6200_v58  ;;  %v681_v30 = vpop.f32.mrf.mxu0 }
 0x2ba   :  { %v2851_v32 = vrot.slane %v2850_v31, 1  ;;  %v2859_v62 = vrot.slane %v2206_v18, 4  ;;  %v1952_v8 = vmax.f32 %v1824_v36, 0.0  ;;  %v3639_v35 = vunpack.c.l.b16 %v6207_v28 }
 0x2bb   :  { %v3085_v37 = vmax.f32 %v6175_v5, %v3047_v44  ;;  %v2207_v60 = vadd.f32 %v2079_v50, %v5145_v4  ;;  %v4084_v10 = vunpack.c.l.b16 %v6189_v56  ;;  %v1398_v45 = vmax.f32 %v675_v39, 0.0  ;;  %v1128_v39 = vpop.f32.mrf.mxu1 }
 0x2bc   :  { %v6214_v38 = vmax.f32 %v2850_v31, %v2851_v32  ;;  %v2860_v29 = vmax.f32 %v2206_v18, %v2859_v62  ;;  %v2080_v5 = vmul.f32 %v1952_v8, %v5143_v3  ;;  %v4085_v19 = vunpack.c.h.b16 %v6189_v56  ;;  %v685_v8 = vpop.f32.mrf.mxu0 }
 0x2bd   :  { %v2865_v15 = vrot.slane %v2207_v60, 4  ;;  %v1558_v13 = vmul.f32 %v5139_v0, %v1397_v25  ;;  %v6225_v40 = vpack.c.bf16 %v2840_v61, %v2834_v9  ;;  %v2856_v14 = vmax.f32 %v2854_v2, %v2855_v20 }
 0x2be   :  { %v3048_v22 = vmax.f32 %v2840_v61, %v6214_v38  ;;  %v2208_v21 = vadd.f32 %v2080_v5, %v5153_v12  ;;  %v2861_v48 = vrot.slane %v2860_v29, 2  ;;  %v1399_v27 = vmax.f32 %v1122_v33, 0.0 }
 0x2bf   :  { %v2866_v47 = vmax.f32 %v2207_v60, %v2865_v15  ;;  %v1697_v17 = vadd.f32 %v5145_v4, %v1558_v13  ;;  %v1401_v9 = vmax.f32 %v679_v57, 0.0  ;;  %v2857_v31 = vrot.slane %v2856_v14, 1 }
 0x2c0   :  { %v3086_v23 = vmax.f32 %v6184_v51, %v3048_v22  ;;  %v4691_v59 = vpack.c.bf16 %v3048_v22, %v3047_v44  ;;  %v2871_v56 = vrot.slane %v2208_v21, 4  ;;  %v1559_v51 = vmul.f32 %v5143_v3, %v1398_v45 }
 0x2c1   :  { %v2867_v24 = vrot.slane %v2866_v47, 2  ;;  %v2862_v55 = vmax.f32 %v2860_v29, %v2861_v48  ;;  %v1825_v46 = vadd.f32 %v1697_v17, %v1399_v27  ;;  %v1560_v43 = vmul.f32 %v5139_v0, %v1401_v9 }
 0x2c2   :  { %v4086_v54 = vunpack.c.l.b16 %v4691_v59  ;;  %v4087_v11 = vunpack.c.h.b16 %v4691_v59  ;;  %v4710_v42 = vpack.c.bf16 %v3086_v23, %v3085_v37  ;;  %v2872_v1 = vmax.f32 %v2208_v21, %v2871_v56 }
 0x2c3   :  { %v2868_v2 = vmax.f32 %v2866_v47, %v2867_v24  ;;  %v1400_v50 = vmax.f32 %v1124_v34, 0.0  ;;  %v1953_v61 = vmax.f32 %v1825_v46, 0.0  ;;  %v1698_v37 = vadd.f32 %v5153_v12, %v1559_v51 }
 0x2c4   :  { %v6230_v52 = vsel %vm3669_vm1, %v4086_v54, %v4084_v10  ;;  %v6233_v41 = vsel %vm3669_vm1, %v4087_v11, %v4085_v19  ;;  %v4304_v49 = vunpack.c.l.b16 %v4710_v42  ;;  %v4305_v26 = vunpack.c.h.b16 %v4710_v42  ;;  %v687_v54 = vpop.f32.mrf.mxu0 }
 0x2c5   :  { %v2869_v18 = vrot.slane %v2868_v2, 1  ;;  %v2873_v36 = vrot.slane %v2872_v1, 2  ;;  %v1402_v25 = vmax.f32 %v681_v30, 0.0  ;;  %v6246_v20 = vmax.f32 %v2856_v14, %v2857_v31  ;;  %v1130_v14 = vpop.f32.mrf.mxu1 }
 0x2c6   :  { %v6239_v44 = vsel %vm3675_vm4, %v4304_v49, %v6157_v53  ;;  %v6243_v32 = vsel %vm3675_vm4, %v4305_v26, %v6161_v16  ;;  %v1403_v60 = vmax.f32 %v1128_v39, 0.0  ;;  %v1699_v53 = vadd.f32 %v5145_v4, %v1560_v43 }
 0x2c7   :  { %v6248_v62 = vmax.f32 %v2868_v2, %v2869_v18  ;;  %v2863_v10 = vrot.slane %v2862_v55, 1  ;;  %v2874_v22 = vmax.f32 %v2872_v1, %v2873_v36  ;;  %v2081_v16 = vmul.f32 %v1953_v61, %v5139_v0  ;;  %v1134_v26 = vpop.f32.mrf.mxu1 }
 0x2c8   :  { %v1826_v29 = vadd.f32 %v1698_v37, %v1400_v50  ;;  %v3640_v15 = vunpack.c.h.b16 %v6207_v28  ;;  %v1561_v45 = vmul.f32 %v5143_v3, %v1402_v25  ;;  %v1827_v19 = vadd.f32 %v1699_v53, %v1403_v60 }
 0x2c9   :  { %v6255_v5 = vmax.f32 %v6246_v20, %v6248_v62  ;;  %v3760_v23 = vsel %vm3669_vm1, %v3639_v35, %v3637_v63  ;;  %v2875_v59 = vrot.slane %v2874_v22, 1  ;;  %v2209_v13 = vadd.f32 %v2081_v16, %v5145_v4  ;;  %v1136_v53 = vpop.f32.mrf.mxu1 }
 0x2ca   :  { %v1954_v33 = vmax.f32 %v1826_v29, 0.0  ;;  %v3641_v47 = vunpack.c.l.b16 %v6225_v40  ;;  %v3642_v28 = vunpack.c.h.b16 %v6225_v40  ;;  %v6266_v21 = vpack.c.bf16 %v6214_v38, %v6202_v6 }
 0x2cb   :  { %v1955_v57 = vmax.f32 %v1827_v19, 0.0  ;;  %v2864_v11 = vmax.f32 %v2862_v55, %v2863_v10  ;;  %v2876_v48 = vmax.f32 %v2874_v22, %v2875_v59  ;;  %v2877_v27 = vrot.slane %v2209_v13, 4 }
 0x2cc   :  { %v2082_v63 = vmul.f32 %v1954_v33, %v5143_v3  ;;  %v1405_v42 = vmax.f32 %v685_v8, 0.0  ;;  %v1404_v24 = vmax.f32 %v1130_v14, 0.0  ;;  %v1700_v56 = vadd.f32 %v5153_v12, %v1561_v45 }
 0x2cd   :  { %v2083_v35 = vmul.f32 %v1955_v57, %v5139_v0  ;;  %v6271_v51 = vmax.f32 %v2864_v11, %v2876_v48  ;;  %v2878_v40 = vmax.f32 %v2209_v13, %v2877_v27  ;;  %v1406_v6 = vmax.f32 %v687_v54, 0.0 }
 0x2ce   :  { %v2210_v17 = vadd.f32 %v2082_v63, %v5153_v12  ;;  %v3767_v38 = vsel %vm3669_vm1, %v3640_v15, %v3638_v7  ;;  %v3761_v9 = vsel %vm3671_vm2, %v3641_v47, %v3760_v23  ;;  %v1828_v49 = vadd.f32 %v1700_v56, %v1404_v24  ;;  %v691_v7 = vpop.f32.mrf.mxu0 }
 0x2cf   :  { %v2211_v34 = vadd.f32 %v2083_v35, %v5145_v4  ;;  %v3768_v31 = vsel %vm3671_vm2, %v3642_v28, %v3767_v38  ;;  %v3643_v2 = vunpack.c.l.b16 %v6266_v21  ;;  %v4692_v30 = vpack.c.bf16 %v6271_v51, %v6255_v5 }
 0x2d0   :  { %v2879_v55 = vrot.slane %v2878_v40, 2  ;;  %v2883_v1 = vrot.slane %v2210_v17, 4  ;;  %v1562_v58 = vmul.f32 %v5139_v0, %v1405_v42  ;;  %v1956_v43 = vmax.f32 %v1828_v49, 0.0  ;;  %v693_v23 = vpop.f32.mrf.mxu0 }
 0x2d1   :  { %v2889_v46 = vrot.slane %v2211_v34, 4  ;;  %v3644_v18 = vunpack.c.h.b16 %v6266_v21  ;;  %v4088_v50 = vunpack.c.l.b16 %v4692_v30  ;;  %v4089_v36 = vunpack.c.h.b16 %v4692_v30  ;;  %v1140_v21 = vpop.f32.mrf.mxu1 }
 0x2d2   :  { %v1563_v61 = vmul.f32 %v5143_v3, %v1406_v6  ;;  %v2880_v37 = vmax.f32 %v2878_v40, %v2879_v55  ;;  %v2884_v25 = vmax.f32 %v2210_v17, %v2883_v1  ;;  %v2084_v60 = vmul.f32 %v1956_v43, %v5143_v3 }
 0x2d3   :  { %v2890_v39 = vmax.f32 %v2211_v34, %v2889_v46  ;;  %v6289_v8 = vsel %vm3671_vm2, %v4088_v50, %v6230_v52  ;;  %v6293_v10 = vsel %vm3671_vm2, %v4089_v36, %v6233_v41  ;;  %v1407_v22 = vmax.f32 %v1134_v26, 0.0  ;;  %v697_v26 = vpop.f32.mrf.mxu0 }
 0x2d4   :  { %v1409_v16 = vmax.f32 %v691_v7, 0.0  ;;  %v2885_v29 = vrot.slane %v2884_v25, 2  ;;  %v2212_v45 = vadd.f32 %v2084_v60, %v5153_v12  ;;  %v1701_v19 = vadd.f32 %v5145_v4, %v1562_v58 }
 0x2d5   :  { %v2891_v15 = vrot.slane %v2890_v39, 2  ;;  %v2881_v59 = vrot.slane %v2880_v37, 1  ;;  %v1408_v33 = vmax.f32 %v1136_v53, 0.0  ;;  %v1702_v52 = vadd.f32 %v5153_v12, %v1563_v61 }
 0x2d6   :  { %v1564_v13 = vmul.f32 %v5139_v0, %v1409_v16  ;;  %v4654_v14 = vpack.c.bf16 %v2864_v11, %v6246_v20  ;;  %v2886_v47 = vmax.f32 %v2884_v25, %v2885_v29  ;;  %v2895_v28 = vrot.slane %v2212_v45, 4 }
 0x2d7   :  { %v2892_v41 = vmax.f32 %v2890_v39, %v2891_v15  ;;  %v4655_v57 = vpack.c.bf16 %v2876_v48, %v6248_v62  ;;  %v1830_v54 = vadd.f32 %v1702_v52, %v1408_v33  ;;  %v1410_v27 = vmax.f32 %v693_v23, 0.0  ;;  %v1142_v62 = vpop.f32.mrf.mxu1 }
 0x2d8   :  { %v1411_v63 = vmax.f32 %v1140_v21, 0.0  ;;  %v2887_v35 = vrot.slane %v2886_v47, 1  ;;  %v2896_v24 = vmax.f32 %v2212_v45, %v2895_v28  ;;  %v1703_v56 = vadd.f32 %v5145_v4, %v1564_v13 }
 0x2d9   :  { %v2893_v42 = vrot.slane %v2892_v41, 1  ;;  %v3762_v40 = vsel %vm3673_vm3, %v3643_v2, %v3761_v9  ;;  %v2882_v17 = vmax.f32 %v2880_v37, %v2881_v59  ;;  %v1829_v6 = vadd.f32 %v1701_v19, %v1407_v22  ;;  %v699_v22 = vpop.f32.mrf.mxu0 }
 0x2da   :  { %v1565_v20 = vmul.f32 %v5143_v3, %v1410_v27  ;;  %v2888_v11 = vmax.f32 %v2886_v47, %v2887_v35  ;;  %v2897_v34 = vrot.slane %v2896_v24, 2  ;;  %v1958_v49 = vmax.f32 %v1830_v54, 0.0 }
 0x2db   :  { %v2894_v38 = vmax.f32 %v2892_v41, %v2893_v42  ;;  %v3769_v48 = vsel %vm3673_vm3, %v3644_v18, %v3768_v31  ;;  %v3645_v30 = vunpack.c.l.b16 %v4654_v14  ;;  %v3646_v55 = vunpack.c.h.b16 %v4654_v14  ;;  %v1146_v14 = vpop.f32.mrf.mxu1 }
 0x2dc   :  { %v1831_v1 = vadd.f32 %v1703_v56, %v1411_v63  ;;  %v3647_v46 = vunpack.c.l.b16 %v4655_v57  ;;  %v4656_v58 = vpack.c.bf16 %v2888_v11, %v2882_v17  ;;  %v2898_v7 = vmax.f32 %v2896_v24, %v2897_v34 }
 0x2dd   :  { %v3051_v43 = vmax.f32 %v2882_v17, %v2894_v38  ;;  %v3648_v9 = vunpack.c.h.b16 %v4655_v57  ;;  %v1413_v2 = vmax.f32 %v697_v26, 0.0  ;;  %v1412_v50 = vmax.f32 %v1142_v62, 0.0  ;;  %v703_v57 = vpop.f32.mrf.mxu0 }
 0x2de   :  { %v1704_v36 = vadd.f32 %v5153_v12, %v1565_v20  ;;  %v2899_v37 = vrot.slane %v2898_v7, 1  ;;  %v1957_v25 = vmax.f32 %v1829_v6, 0.0  ;;  %v2086_v39 = vmul.f32 %v1958_v49, %v5143_v3 }
 0x2df   :  { %v3087_v61 = vmax.f32 %v6255_v5, %v3051_v43  ;;  %v3763_v31 = vsel %vm3675_vm4, %v3645_v30, %v3762_v40  ;;  %v3649_v18 = vunpack.c.l.b16 %v4656_v58  ;;  %v1959_v60 = vmax.f32 %v1831_v1, 0.0 }
 0x2e0   :  { %v1832_v53 = vadd.f32 %v1704_v36, %v1412_v50  ;;  %v3770_v16 = vsel %vm3675_vm4, %v3646_v55, %v3769_v48  ;;  %v3764_v29 = vsel %vm3677_vm5, %v3647_v46, %v3763_v31  ;;  %v2900_v15 = vmax.f32 %v2898_v7, %v2899_v37 }
 0x2e1   :  { %v3771_v45 = vsel %vm3677_vm5, %v3648_v9, %v3770_v16  ;;  %v3650_v19 = vunpack.c.h.b16 %v4656_v58  ;;  %v1566_v5 = vmul.f32 %v5139_v0, %v1413_v2  ;;  %v2085_v33 = vmul.f32 %v1957_v25, %v5139_v0 }
 0x2e2   :  { %v1960_v23 = vmax.f32 %v1832_v53, 0.0  ;;  %v3052_v59 = vmax.f32 %v2888_v11, %v2900_v15  ;;  %v4657_v13 = vpack.c.bf16 %v2900_v15, %v2894_v38  ;;  %v2214_v52 = vadd.f32 %v2086_v39, %v5153_v12  ;;  %v1148_v38 = vpop.f32.mrf.mxu1 }
 0x2e3   :  { %v3765_v47 = vsel %vm3679_vm6, %v3649_v18, %v3764_v29  ;;  %v2087_v41 = vmul.f32 %v1959_v60, %v5139_v0  ;;  %v1414_v21 = vmax.f32 %v699_v22, 0.0  ;;  %v3772_v42 = vsel %vm3679_vm6, %v3650_v19, %v3771_v45 }
 0x2e4   :  { %v2088_v28 = vmul.f32 %v1960_v23, %v5143_v3  ;;  %v3088_v54 = vmax.f32 %v6271_v51, %v3052_v59  ;;  %v3651_v27 = vunpack.c.l.b16 %v4657_v13  ;;  %v3652_v63 = vunpack.c.h.b16 %v4657_v13  ;;  %v705_v51 = vpop.f32.mrf.mxu0  ;;  %v1152_v2 = vpop.f32.mrf.mxu1 }
 0x2e5   :  { %v4693_v35 = vpack.c.bf16 %v3052_v59, %v3051_v43  ;;  %v1415_v56 = vmax.f32 %v1146_v14, 0.0  ;;  %v1705_v40 = vadd.f32 %v5145_v4, %v1566_v5  ;;  %v2213_v48 = vadd.f32 %v2085_v33, %v5145_v4 }
 0x2e6   :  { %v2216_v24 = vadd.f32 %v2088_v28, %v5153_v12  ;;  %v3766_v17 = vsel %vm3681_vm7, %v3651_v27, %v3765_v47  ;;  %v3773_v6 = vsel %vm3681_vm7, %v3652_v63, %v3772_v42  ;;  %v4711_v49 = vpack.c.bf16 %v3088_v54, %v3087_v61  ;;  %v709_v50 = vpop.f32.mrf.mxu0  ;;  %v1154_v16 = vpop.f32.mrf.mxu1 }
 0x2e7   :  { %v4090_v20 = vunpack.c.l.b16 %v4693_v35  ;;  %v4091_v11 = vunpack.c.h.b16 %v4693_v35  ;;  %v3794_v34 = vpack.c.b16 %v3773_v6, %v3766_v17  ;;  %v1567_v30 = vmul.f32 %v5143_v3, %v1414_v21 }
 0x2e8   :  { %v4306_v55 = vunpack.c.l.b16 %v4711_v49  ;;  %v4307_v1 = vunpack.c.h.b16 %v4711_v49  ;;  %v2215_v46 = vadd.f32 %v2087_v41, %v5145_v4  ;;  %v2907_v58 = vrot.slane %v2214_v52, 4  ;;  %v711_v45 = vpop.f32.mrf.mxu0  ;;  %v1158_v21 = vpop.f32.mrf.mxu1 }
 0x2e9   :  { %v6326_v26 = vsel %vm3673_vm3, %v4090_v20, %v6289_v8  ;;  %v6330_v62 = vsel %vm3673_vm3, %v4091_v11, %v6293_v10  ;;  %3810 = vst [vmem:[#allocation2 + $0x48] sm:$0xff] %v3794_v34  ;;  %v2919_v43 = vrot.slane %v2216_v24, 4  ;;  %v1833_v7 = vadd.f32 %v1705_v40, %v1415_v56 }
 0x2ea   :  { %v1417_v9 = vmax.f32 %v703_v57, 0.0  ;;  %v6337_v8 = vsel %vm3677_vm5, %v4306_v55, %v6239_v44  ;;  %v6341_v10 = vsel %vm3677_vm5, %v4307_v1, %v6243_v32  ;;  %v2901_v36 = vrot.slane %v2213_v48, 4  ;;  %v715_v57 = vpop.f32.mrf.mxu0 }
 0x2eb   :  { %v1416_v37 = vmax.f32 %v1148_v38, 0.0  ;;  %v1706_v25 = vadd.f32 %v5153_v12, %v1567_v30  ;;  %v2913_v39 = vrot.slane %v2215_v46, 4  ;;  %v1418_v31 = vmax.f32 %v705_v51, 0.0  ;;  %v1160_v38 = vpop.f32.mrf.mxu1 }
 0x2ec   :  { %v1568_v61 = vmul.f32 %v5139_v0, %v1417_v9  ;;  %v2908_v18 = vmax.f32 %v2214_v52, %v2907_v58  ;;  %v2920_v60 = vmax.f32 %v2216_v24, %v2919_v43  ;;  %v1961_v53 = vmax.f32 %v1833_v7, 0.0  ;;  %v717_v30 = vpop.f32.mrf.mxu0 }
 0x2ed   :  { %v1834_v22 = vadd.f32 %v1706_v25, %v1416_v37  ;;  %v1569_v44 = vmul.f32 %v5143_v3, %v1418_v31  ;;  %v1419_v29 = vmax.f32 %v1152_v2, 0.0  ;;  %v1421_v15 = vmax.f32 %v709_v50, 0.0  ;;  %v1164_v2 = vpop.f32.mrf.mxu1 }
 0x2ee   :  { %v1707_v32 = vadd.f32 %v5145_v4, %v1568_v61  ;;  %v2902_v19 = vmax.f32 %v2213_v48, %v2901_v36  ;;  %v2914_v5 = vmax.f32 %v2215_v46, %v2913_v39  ;;  %v1420_v59 = vmax.f32 %v1154_v16, 0.0 }
 0x2ef   :  { %v1962_v23 = vmax.f32 %v1834_v22, 0.0  ;;  %v1708_v13 = vadd.f32 %v5153_v12, %v1569_v44  ;;  %v2909_v33 = vrot.slane %v2908_v18, 2  ;;  %v2921_v14 = vrot.slane %v2920_v60, 2 }
 0x2f0   :  { %v2089_v52 = vmul.f32 %v1961_v53, %v5139_v0  ;;  %v1835_v47 = vadd.f32 %v1707_v32, %v1419_v29  ;;  %v1570_v41 = vmul.f32 %v5139_v0, %v1421_v15  ;;  %v1422_v54 = vmax.f32 %v711_v45, 0.0  ;;  %v1166_v32 = vpop.f32.mrf.mxu1 }
 0x2f1   :  { %v1836_v28 = vadd.f32 %v1708_v13, %v1420_v59  ;;  %v2903_v27 = vrot.slane %v2902_v19, 2  ;;  %v2915_v63 = vrot.slane %v2914_v5, 2  ;;  %v2090_v35 = vmul.f32 %v1962_v23, %v5143_v3 }
 0x2f2   :  { %v2910_v42 = vmax.f32 %v2908_v18, %v2909_v33  ;;  %v2922_v24 = vmax.f32 %v2920_v60, %v2921_v14  ;;  %v2217_v56 = vadd.f32 %v2089_v52, %v5145_v4  ;;  %v1425_v40 = vmax.f32 %v715_v57, 0.0  ;;  %v721_v52 = vpop.f32.mrf.mxu0 }
 0x2f3   :  { %v1963_v17 = vmax.f32 %v1835_v47, 0.0  ;;  %v1964_v6 = vmax.f32 %v1836_v28, 0.0  ;;  %v1423_v20 = vmax.f32 %v1158_v21, 0.0  ;;  %v1709_v11 = vadd.f32 %v5145_v4, %v1570_v41 }
 0x2f4   :  { %v1571_v34 = vmul.f32 %v5143_v3, %v1422_v54  ;;  %v2904_v49 = vmax.f32 %v2902_v19, %v2903_v27  ;;  %v2916_v51 = vmax.f32 %v2914_v5, %v2915_v63  ;;  %v2218_v48 = vadd.f32 %v2090_v35, %v5153_v12 }
 0x2f5   :  { %v2911_v55 = vrot.slane %v2910_v42, 1  ;;  %v2925_v1 = vrot.slane %v2217_v56, 4  ;;  %v1572_v46 = vmul.f32 %v5139_v0, %v1425_v40  ;;  %v2923_v58 = vrot.slane %v2922_v24, 1 }
 0x2f6   :  { %v2091_v43 = vmul.f32 %v1963_v17, %v5139_v0  ;;  %v2092_v7 = vmul.f32 %v1964_v6, %v5143_v3  ;;  %v1837_v9 = vadd.f32 %v1709_v11, %v1423_v20  ;;  %v1424_v50 = vmax.f32 %v1160_v38, 0.0  ;;  %v723_v11 = vpop.f32.mrf.mxu0 }
 0x2f7   :  { %v1710_v36 = vadd.f32 %v5153_v12, %v1571_v34  ;;  %v1426_v61 = vmax.f32 %v717_v30, 0.0  ;;  %v1427_v37 = vmax.f32 %v1164_v2, 0.0  ;;  %v2905_v25 = vrot.slane %v2904_v49, 1 }
 0x2f8   :  { %v2917_v39 = vrot.slane %v2916_v51, 1  ;;  %v2931_v31 = vrot.slane %v2218_v48, 4  ;;  %v1711_v18 = vadd.f32 %v5145_v4, %v1572_v46  ;;  %v2926_v22 = vmax.f32 %v2217_v56, %v2925_v1  ;;  %v1170_v56 = vpop.f32.mrf.mxu1 }
 0x2f9   :  { %v1838_v60 = vadd.f32 %v1710_v36, %v1424_v50  ;;  %v1573_v53 = vmul.f32 %v5143_v3, %v1426_v61  ;;  %v2219_v16 = vadd.f32 %v2091_v43, %v5145_v4  ;;  %v1965_v44 = vmax.f32 %v1837_v9, 0.0 }
 0x2fa   :  { %v1839_v29 = vadd.f32 %v1711_v18, %v1427_v37  ;;  %v2912_v15 = vmax.f32 %v2910_v42, %v2911_v55  ;;  %v2924_v45 = vmax.f32 %v2922_v24, %v2923_v58  ;;  %v2220_v19 = vadd.f32 %v2092_v7, %v5153_v12  ;;  %v1172_v9 = vpop.f32.mrf.mxu1  ;;  %v727_v37 = vpop.f32.mrf.mxu0 }
 0x2fb   :  { %v1966_v5 = vmax.f32 %v1838_v60, 0.0  ;;  %v2906_v23 = vmax.f32 %v2904_v49, %v2905_v25  ;;  %v2918_v59 = vmax.f32 %v2916_v51, %v2917_v39  ;;  %v2932_v13 = vmax.f32 %v2218_v48, %v2931_v31 }
 0x2fc   :  { %v1967_v14 = vmax.f32 %v1839_v29, 0.0  ;;  %v1428_v47 = vmax.f32 %v1166_v32, 0.0  ;;  %v1712_v41 = vadd.f32 %v5153_v12, %v1573_v53  ;;  %v2927_v28 = vrot.slane %v2926_v22, 2 }
 0x2fd   :  { %v2094_v33 = vmul.f32 %v1966_v5, %v5143_v3  ;;  %v2937_v21 = vrot.slane %v2219_v16, 4  ;;  %v2093_v57 = vmul.f32 %v1965_v44, %v5139_v0  ;;  %v4658_v54 = vpack.c.bf16 %v2912_v15, %v2906_v23 }
 0x2fe   :  { %v4659_v27 = vpack.c.bf16 %v2924_v45, %v2918_v59  ;;  %v2943_v63 = vrot.slane %v2220_v19, 4  ;;  %v1840_v35 = vadd.f32 %v1712_v41, %v1428_v47  ;;  %v6366_v42 = vmax.f32 %v2912_v15, %v2924_v45  ;;  %v1176_v45 = vpop.f32.mrf.mxu1 }
 0x2ff   :  { %v2933_v24 = vrot.slane %v2932_v13, 2  ;;  %v2222_v40 = vadd.f32 %v2094_v33, %v5153_v12  ;;  %v2095_v17 = vmul.f32 %v1967_v14, %v5139_v0  ;;  %v1429_v6 = vmax.f32 %v721_v52, 0.0 }
 0x300   :  { %v1968_v20 = vmax.f32 %v1840_v35, 0.0  ;;  %v6370_v38 = vmax.f32 %v2906_v23, %v2918_v59  ;;  %v2928_v34 = vmax.f32 %v2926_v22, %v2927_v28  ;;  %v2938_v49 = vmax.f32 %v2219_v16, %v2937_v21 }
 0x301   :  { %v2221_v51 = vadd.f32 %v2093_v57, %v5145_v4  ;;  %v3653_v48 = vunpack.c.l.b16 %v4658_v54  ;;  %v3655_v30 = vunpack.c.l.b16 %v4659_v27  ;;  %v3656_v55 = vunpack.c.h.b16 %v4659_v27 }
 0x302   :  { %v2944_v1 = vmax.f32 %v2220_v19, %v2943_v63  ;;  %v6375_v46 = vpack.c.bf16 %v6366_v42, %v6370_v38  ;;  %v2934_v58 = vmax.f32 %v2932_v13, %v2933_v24  ;;  %v2096_v43 = vmul.f32 %v1968_v20, %v5143_v3  ;;  %v729_v13 = vpop.f32.mrf.mxu0  ;;  %v1178_v24 = vpop.f32.mrf.mxu1 }
 0x303   :  { %v1430_v7 = vmax.f32 %v723_v11, 0.0  ;;  %v3654_v2 = vunpack.c.h.b16 %v4658_v54  ;;  %v2955_v50 = vrot.slane %v2222_v40, 4  ;;  %v2223_v36 = vadd.f32 %v2095_v17, %v5145_v4 }
 0x304   :  { %v1574_v61 = vmul.f32 %v5139_v0, %v1429_v6  ;;  %v2929_v25 = vrot.slane %v2928_v34, 1  ;;  %v2939_v39 = vrot.slane %v2938_v49, 2  ;;  %v2949_v31 = vrot.slane %v2221_v51, 4 }
 0x305   :  { %v2224_v18 = vadd.f32 %v2096_v43, %v5153_v12  ;;  %v6382_v60 = vsel %vm3669_vm1, %v3655_v30, %v3653_v48  ;;  %v6385_v53 = vsel %vm3669_vm1, %v3656_v55, %v3654_v2  ;;  %v2945_v22 = vrot.slane %v2944_v1, 2 }
 0x306   :  { %v1431_v16 = vmax.f32 %v1170_v56, 0.0  ;;  %v4092_v44 = vunpack.c.l.b16 %v6375_v46  ;;  %v4093_v29 = vunpack.c.h.b16 %v6375_v46  ;;  %v2935_v32 = vrot.slane %v2934_v58, 1 }
 0x307   :  { %v1575_v15 = vmul.f32 %v5143_v3, %v1430_v7  ;;  %v2956_v19 = vmax.f32 %v2222_v40, %v2955_v50  ;;  %v2961_v5 = vrot.slane %v2223_v36, 4  ;;  %v2967_v23 = vrot.slane %v2224_v18, 4 }
 0x308   :  { %v1713_v59 = vadd.f32 %v5145_v4, %v1574_v61  ;;  %v2930_v33 = vmax.f32 %v2928_v34, %v2929_v25  ;;  %v2940_v14 = vmax.f32 %v2938_v49, %v2939_v39  ;;  %v2950_v52 = vmax.f32 %v2221_v51, %v2949_v31 }
 0x309   :  { %v1433_v47 = vmax.f32 %v727_v37, 0.0  ;;  %v2946_v41 = vmax.f32 %v2944_v1, %v2945_v22  ;;  %v2968_v28 = vmax.f32 %v2224_v18, %v2967_v23  ;;  %v1432_v57 = vmax.f32 %v1172_v9, 0.0 }
 0x30a   :  { %v1841_v21 = vadd.f32 %v1713_v59, %v1431_v16  ;;  %v1714_v27 = vadd.f32 %v5153_v12, %v1575_v15  ;;  %v1434_v63 = vmax.f32 %v729_v13, 0.0  ;;  %v1435_v35 = vmax.f32 %v1176_v45, 0.0 }
 0x30b   :  { %v1576_v54 = vmul.f32 %v5139_v0, %v1433_v47  ;;  %v2936_v56 = vmax.f32 %v2934_v58, %v2935_v32  ;;  %v2957_v40 = vrot.slane %v2956_v19, 2  ;;  %v2962_v17 = vmax.f32 %v2223_v36, %v2961_v5 }
 0x30c   :  { %v1969_v6 = vmax.f32 %v1841_v21, 0.0  ;;  %v6395_v20 = vsel %vm3675_vm4, %v4092_v44, %v6326_v26  ;;  %v1842_v11 = vadd.f32 %v1714_v27, %v1432_v57  ;;  %v1577_v34 = vmul.f32 %v5143_v3, %v1434_v63 }
 0x30d   :  { %v1715_v49 = vadd.f32 %v5145_v4, %v1576_v54  ;;  %v2947_v51 = vrot.slane %v2946_v41, 1  ;;  %v2951_v48 = vrot.slane %v2950_v52, 2  ;;  %v2969_v30 = vrot.slane %v2968_v28, 2 }
 0x30e   :  { %v1436_v55 = vmax.f32 %v1178_v24, 0.0  ;;  %v2097_v1 = vmul.f32 %v1969_v6, %v5139_v0  ;;  %v1970_v46 = vmax.f32 %v1842_v11, 0.0  ;;  %v1716_v43 = vadd.f32 %v5153_v12, %v1577_v34 }
 0x30f   :  { %v1843_v58 = vadd.f32 %v1715_v49, %v1435_v35  ;;  %v6401_v7 = vpack.c.bf16 %v2936_v56, %v2930_v33  ;;  %v2941_v9 = vrot.slane %v2940_v14, 1  ;;  %v2958_v26 = vmax.f32 %v2956_v19, %v2957_v40 }
 0x310   :  { %v2963_v2 = vrot.slane %v2962_v17, 2  ;;  %v2225_v50 = vadd.f32 %v2097_v1, %v5145_v4  ;;  %v2098_v36 = vmul.f32 %v1970_v46, %v5143_v3  ;;  %v1844_v37 = vadd.f32 %v1716_v43, %v1436_v55 }
 0x311   :  { %v1971_v61 = vmax.f32 %v1843_v58, 0.0  ;;  %v6407_v25 = vsel %vm3675_vm4, %v4093_v29, %v6330_v62  ;;  %v2948_v39 = vmax.f32 %v2946_v41, %v2947_v51  ;;  %v2952_v31 = vmax.f32 %v2950_v52, %v2951_v48 }
 0x312   :  { %v2970_v18 = vmax.f32 %v2968_v28, %v2969_v30  ;;  %v2973_v22 = vrot.slane %v2225_v50, 4  ;;  %v2226_v16 = vadd.f32 %v2098_v36, %v5153_v12  ;;  %v1972_v32 = vmax.f32 %v1844_v37, 0.0 }
 0x313   :  { %v2099_v44 = vmul.f32 %v1971_v61, %v5139_v0  ;;  %v3657_v15 = vunpack.c.l.b16 %v6401_v7  ;;  %v2942_v45 = vmax.f32 %v2940_v14, %v2941_v9  ;;  %v2959_v19 = vrot.slane %v2958_v26, 1 }
 0x314   :  { %v2964_v5 = vmax.f32 %v2962_v17, %v2963_v2  ;;  %v2974_v23 = vmax.f32 %v2225_v50, %v2973_v22  ;;  %v2979_v59 = vrot.slane %v2226_v16, 4  ;;  %v2100_v62 = vmul.f32 %v1972_v32, %v5143_v3 }
 0x315   :  { %v2227_v13 = vadd.f32 %v2099_v44, %v5145_v4  ;;  %v3658_v29 = vunpack.c.h.b16 %v6401_v7  ;;  %v3056_v52 = vmax.f32 %v2936_v56, %v2948_v39  ;;  %v2953_v47 = vrot.slane %v2952_v31, 1 }
 0x316   :  { %v2971_v41 = vrot.slane %v2970_v18, 1  ;;  %v2975_v28 = vrot.slane %v2974_v23, 2  ;;  %v2980_v21 = vmax.f32 %v2226_v16, %v2979_v59  ;;  %v2228_v57 = vadd.f32 %v2100_v62, %v5153_v12 }
 0x317   :  { %v2985_v0 = vrot.slane %v2227_v13, 4  ;;  %v3055_v54 = vmax.f32 %v2930_v33, %v2942_v45  ;;  %v4661_v14 = vpack.c.bf16 %v2948_v39, %v2942_v45  ;;  %v2960_v27 = vmax.f32 %v2958_v26, %v2959_v19 }
 0x318   :  { %v2965_v63 = vrot.slane %v2964_v5, 1  ;;  %v2976_v35 = vmax.f32 %v2974_v23, %v2975_v28  ;;  %v2981_v24 = vrot.slane %v2980_v21, 2  ;;  %v2991_v4 = vrot.slane %v2228_v57, 4 }
 0x319   :  { %v2986_v40 = vmax.f32 %v2227_v13, %v2985_v0  ;;  %v3775_v3 = vsel %vm3671_vm2, %v3657_v15, %v6382_v60  ;;  %v4695_v17 = vpack.c.bf16 %v3056_v52, %v3055_v54  ;;  %v2954_v56 = vmax.f32 %v2952_v31, %v2953_v47 }
 0x31a   :  { %v2972_v6 = vmax.f32 %v2970_v18, %v2971_v41  ;;  %v2977_v11 = vrot.slane %v2976_v35, 1  ;;  %v2982_v34 = vmax.f32 %v2980_v21, %v2981_v24  ;;  %v2992_v51 = vmax.f32 %v2228_v57, %v2991_v4 }
 0x31b   :  { %v2987_v49 = vrot.slane %v2986_v40, 2  ;;  %v3089_v12 = vmax.f32 %v6370_v38, %v3055_v54  ;;  %v3090_v33 = vmax.f32 %v6366_v42, %v3056_v52  ;;  %v3659_v48 = vunpack.c.l.b16 %v4661_v14 }
 0x31c   :  { %v2966_v30 = vmax.f32 %v2964_v5, %v2965_v63  ;;  %v4662_v55 = vpack.c.bf16 %v2960_v27, %v2954_v56  ;;  %v2983_v1 = vrot.slane %v2982_v34, 1  ;;  %v2993_v58 = vrot.slane %v2992_v51, 2 }
 0x31d   :  { %v2988_v46 = vmax.f32 %v2986_v40, %v2987_v49  ;;  %v3660_v43 = vunpack.c.h.b16 %v4661_v14  ;;  %v4094_v7 = vunpack.c.l.b16 %v4695_v17  ;;  %v3058_v60 = vmax.f32 %v2960_v27, %v2972_v6 }
 0x31e   :  { %v4663_v9 = vpack.c.bf16 %v2972_v6, %v2966_v30  ;;  %v2978_v26 = vmax.f32 %v2976_v35, %v2977_v11  ;;  %v2984_v2 = vmax.f32 %v2982_v34, %v2983_v1  ;;  %v2994_v36 = vmax.f32 %v2992_v51, %v2993_v58 }
 0x31f   :  { %v2989_v50 = vrot.slane %v2988_v46, 1  ;;  %v3782_v61 = vsel %vm3671_vm2, %v3658_v29, %v6385_v53  ;;  %v4095_v38 = vunpack.c.h.b16 %v4695_v17  ;;  %v4712_v37 = vpack.c.bf16 %v3090_v33, %v3089_v12 }
 0x320   :  { %v3057_v42 = vmax.f32 %v2954_v56, %v2966_v30  ;;  %v3661_v39 = vunpack.c.l.b16 %v4662_v55  ;;  %v4664_v31 = vpack.c.bf16 %v2984_v2, %v2978_v26  ;;  %v2995_v22 = vrot.slane %v2994_v36, 1 }
 0x321   :  { %v2990_v18 = vmax.f32 %v2988_v46, %v2989_v50  ;;  %v3776_v16 = vsel %vm3673_vm3, %v3659_v48, %v3775_v3  ;;  %v3783_v44 = vsel %vm3673_vm3, %v3660_v43, %v3782_v61  ;;  %v3662_v32 = vunpack.c.h.b16 %v4662_v55 }
 0x322   :  { %v4696_v15 = vpack.c.bf16 %v3058_v60, %v3057_v42  ;;  %v4146_v45 = vsel %vm3677_vm5, %v4094_v7, %v6395_v20  ;;  %v3663_v19 = vunpack.c.l.b16 %v4663_v9  ;;  %v2996_v23 = vmax.f32 %v2994_v36, %v2995_v22 }
 0x323   :  { %v3059_v5 = vmax.f32 %v2978_v26, %v2990_v18  ;;  %v4153_v53 = vsel %vm3677_vm5, %v4095_v38, %v6407_v25  ;;  %v4308_v59 = vunpack.c.l.b16 %v4712_v37  ;;  %v3664_v13 = vunpack.c.h.b16 %v4663_v9 }
 0x324   :  { %v3665_v62 = vunpack.c.l.b16 %v4664_v31  ;;  %v4309_v29 = vunpack.c.h.b16 %v4712_v37  ;;  %v3777_v52 = vsel %vm3675_vm4, %v3661_v39, %v3776_v16  ;;  %v3666_v47 = vunpack.c.h.b16 %v4664_v31 }
 0x325   :  { %v3060_v41 = vmax.f32 %v2984_v2, %v2996_v23  ;;  %v3784_v28 = vsel %vm3675_vm4, %v3662_v32, %v3783_v44  ;;  %v4096_v21 = vunpack.c.l.b16 %v4696_v15  ;;  %v4097_v0 = vunpack.c.h.b16 %v4696_v15 }
 0x326   :  { %v4665_v57 = vpack.c.bf16 %v2996_v23, %v2990_v18  ;;  %v3778_v20 = vsel %vm3677_vm5, %v3663_v19, %v3777_v52  ;;  %v3091_v54 = vmax.f32 %v3057_v42, %v3059_v5  ;;  %v3785_v25 = vsel %vm3677_vm5, %v3664_v13, %v3784_v28 }
 0x327   :  { %v3092_v14 = vmax.f32 %v3058_v60, %v3060_v41  ;;  %v4697_v27 = vpack.c.bf16 %v3060_v41, %v3059_v5  ;;  %v3779_v63 = vsel %vm3679_vm6, %v3665_v62, %v3778_v20  ;;  %v3786_v40 = vsel %vm3679_vm6, %v3666_v47, %v3785_v25 }
 0x328   :  { %v3667_v35 = vunpack.c.l.b16 %v4665_v57  ;;  %v3668_v24 = vunpack.c.h.b16 %v4665_v57  ;;  %v4147_v56 = vsel %vm3679_vm6, %v4096_v21, %v4146_v45  ;;  %v4154_v6 = vsel %vm3679_vm6, %v4097_v0, %v4153_v53 }
 0x329   :  { %v4098_v4 = vunpack.c.l.b16 %v4697_v27  ;;  %v4099_v3 = vunpack.c.h.b16 %v4697_v27  ;;  %v4713_v17 = vpack.c.bf16 %v3092_v14, %v3091_v54  ;;  %v4331_v48 = vsel %vm3679_vm6, %v4308_v59, %v6337_v8 }
 0x32a   :  { %v3780_v11 = vsel %vm3681_vm7, %v3667_v35, %v3779_v63  ;;  %v3787_v34 = vsel %vm3681_vm7, %v3668_v24, %v3786_v40  ;;  %v4338_v1 = vsel %vm3679_vm6, %v4309_v29, %v6341_v10 }
 0x32b   :  { %v3795_v49 = vpack.c.b16 %v3787_v34, %v3780_v11  ;;  %v4148_v51 = vsel %vm3681_vm7, %v4098_v4, %v4147_v56  ;;  %v4155_v12 = vsel %vm3681_vm7, %v4099_v3, %v4154_v6  ;;  %v4310_v33 = vunpack.c.l.b16 %v4713_v17 }
 0x32c   :  { %v4159_v30 = vpack.c.b16 %v4155_v12, %v4148_v51  ;;  %v4311_v55 = vunpack.c.h.b16 %v4713_v17 }
 0x32d   :  { %3811 = vst [vmem:[#allocation2 + $0x50] sm:$0xff] %v3795_v49  ;;  %v4332_v46 = vsel %vm3681_vm7, %v4310_v33, %v4331_v48 }
 0x32e   :  { %4167 = vst [vmem:[#allocation2 + $0x60] sm:$0xff] %v4159_v30  ;;  %v4339_v58 = vsel %vm3681_vm7, %v4311_v55, %v4338_v1 }
 0x32f   :  { %v4341_v43 = vpack.c.b16 %v4339_v58, %v4332_v46 }
 0x331   :  { %4345 = vst [vmem:[#allocation2 + $0x68] sm:$0xff] %v4341_v43 }
 0x332   :  { %4729 = shalt.err (!%p4726_p4)
}
 0x333   :  { %s4742_s26 = smov 128   ;;  %s4743_s27 = smov 8  }
 0x334   :  { %4357 = dma.vmem_to_hbm [thread:$0]  %s4352_s25, 1792, %s6453_s4, [#allocation3], %s4742_s26, %s4742_s26, %s4743_s27  }
 0x335   :  { %4738 = dma.done.wait [#allocation3], 1792  }
 0x336   :  { %4739 = vsyncadd [#allocation3], 4294965504 }
 0x337   :  { %4361 = vsyncpa [#allocation3], 1 }

</bundles_post_ra>
